<compile_context>
chip_gen: v5e
topology: v5e:2x2
jax: 0.10.0
libtpu: 0.0.40
codegen_flags: <defaults>
</compile_context>

<pallas_src>
import numpy as np
import jax
import jax.numpy as jnp
from jax.experimental import pallas as pl
from jax.experimental.pallas import tpu as pltpu

N_SENS = 6          # acc_x, acc_y, acc_z, gyro_x, gyro_y, gyro_z
OUT_CH = 4          # conv out_channels
KSZ = 3             # conv kernel_size
L_IN = 12           # conv input length  -> pooled length = 6 = fc_in_dim
POOL_L = 6
FC_IN = POOL_L * OUT_CH          # 24   per-sensor flattened conv features
FC_HID = 256
CONV_K = N_SENS * POOL_L * KSZ   # 108  fused im2col contraction dim
CONV_N = N_SENS * FC_IN          # 144  fused conv output width
FEAT_N = N_SENS * FC_HID         # 1536 concatenated fc1 features
AUX_N = N_SENS * 6               # 36   fused aux-head output width
OUT_W = 6 + 6 + AUX_N            # 48   single output slab width


# ----------------------------------------------------------------------------
# Pallas kernel: fused conv + relu + maxpool + all linears + gating + aux heads
# ----------------------------------------------------------------------------
def conv_net_6_kernel(xeo_ref, wconv_ref, bconv_ref, w1_ref, b1_ref,
                      wall_ref, ball_ref, w2_ref, b2_ref,
                      wout_ref, bout_ref, waux_ref, baux_ref,
                      out_ref):
    B = xeo_ref.shape[0] // 2

    # --- conv stage: single block-diagonal matmul over all 6 sensors, even+odd stacked on rows
    c = jnp.dot(xeo_ref[...], wconv_ref[...],
                preferred_element_type=jnp.float32) + bconv_ref[...]        # (2B, 144)
    ce = c[:B]                                                              # even conv positions
    co = c[B:]                                                              # odd  conv positions
    # ReLU then MaxPool1d(2,2): max over the (even, odd) position pair, clamped at 0
    pooled = jnp.maximum(jnp.maximum(ce, 0.0), jnp.maximum(co, 0.0))        # (B, 144)

    # --- fc1 (6 x Linear(24,256)) as one block-diagonal matmul -> concatenated feats slab
    feats = jnp.maximum(
        jnp.dot(pooled, w1_ref[...], preferred_element_type=jnp.float32) + b1_ref[...],
        0.0)                                                                # (B, 1536)

    # --- fc_all: Linear(1536, 256) + ReLU (single matmul; K-reduction inside MXU)
    h = jnp.maximum(
        jnp.dot(feats, wall_ref[...], preferred_element_type=jnp.float32) + ball_ref[...],
        0.0)                                                                # (B, 256)

    # --- fc_all_2: Linear(256, 6), then F.normalize(p=2, dim=1), (+1)*2, softmax(dim=1)
    g = jnp.dot(h, w2_ref[...], preferred_element_type=jnp.float32) + b2_ref[...]  # (B, 6)
    norm = jnp.sqrt(jnp.sum(g * g, axis=1, keepdims=True))
    g = g / jnp.maximum(norm, 1e-12)
    g = (g + 1.0) * 2.0
    m = jnp.max(g, axis=1, keepdims=True)
    e = jnp.exp(g - m)
    g = e / jnp.sum(e, axis=1, keepdims=True)                               # gate (B, 6)

    # --- gated sum of per-sensor features (lane-aligned 256-wide views), then fc_out
    add = feats[:, 0:FC_HID] * g[:, 0:1]
    for s in range(1, N_SENS):
        add = add + feats[:, s * FC_HID:(s + 1) * FC_HID] * g[:, s:s + 1]
    outv = jnp.dot(add, wout_ref[...], preferred_element_type=jnp.float32) + bout_ref[...]

    # --- aux heads: 6 x Linear(256,6) fused into one block-diagonal (1536,36) matmul
    aux = jnp.dot(feats, waux_ref[...], preferred_element_type=jnp.float32) + baux_ref[...]

    # --- single lane-contiguous output slab: [out(6) | gate(6) | aux(36)]
    out_ref[...] = jnp.concatenate([outv, g, aux], axis=1)                  # (B, 48)


# ----------------------------------------------------------------------------
# Weight preparation (run ONCE, outside the per-call path)
# ----------------------------------------------------------------------------
def prepare_weights(p):
    f32 = jnp.float32

    # per-sensor block-expanded conv weight: wexp[s][p*3+k, q*4+c] = conv_w[s,c,k]*delta(p,q)
    eye = jnp.eye(POOL_L, dtype=f32)
    wexp = jnp.einsum('pq,sck->spkqc', eye, p['conv_w']).reshape(N_SENS, POOL_L * KSZ, FC_IN)
    # block-diagonal across the 6 sensors -> (108, 144)
    wconv_bd = jax.scipy.linalg.block_diag(*[wexp[s] for s in range(N_SENS)])
    bconv_bd = jnp.broadcast_to(p['conv_b'][:, None, :],
                                (N_SENS, POOL_L, OUT_CH)).reshape(1, CONV_N)

    # fc1 weight (6, 256, 24) with PyTorch flatten order (c*6+q) -> reorder to (q*4+c),
    # then block-diagonal across sensors -> (144, 1536)
    w1r = p['fc1_w'].transpose(0, 2, 1).reshape(N_SENS, OUT_CH, POOL_L, FC_HID)
    w1r = w1r.transpose(0, 2, 1, 3).reshape(N_SENS, FC_IN, FC_HID)
    w1_bd = jax.scipy.linalg.block_diag(*[w1r[s] for s in range(N_SENS)])
    b1_bd = p['fc1_b'].reshape(1, FEAT_N)

    wall = p['fc_all_w'].T                                 # (1536, 256)
    ball = p['fc_all_b'][None, :]                          # (1, 256)
    w2 = p['fc_all2_w'].T                                  # (256, 6)
    b2 = p['fc_all2_b'][None, :]                           # (1, 6)
    wout = p['fc_out_w'].T                                 # (256, 6)
    bout = p['fc_out_b'][None, :]                          # (1, 6)

    # aux heads: block-diagonal (1536, 36)
    waux_bd = jax.scipy.linalg.block_diag(*[p['fc_aux_w'][s].T for s in range(N_SENS)])
    baux_bd = p['fc_aux_b'].reshape(1, AUX_N)

    prep = (wconv_bd.astype(f32), bconv_bd.astype(f32), w1_bd.astype(f32), b1_bd.astype(f32),
            wall.astype(f32), ball.astype(f32), w2.astype(f32), b2.astype(f32),
            wout.astype(f32), bout.astype(f32), waux_bd.astype(f32), baux_bd.astype(f32))
    return jax.block_until_ready(prep)


# ----------------------------------------------------------------------------
# Forward: tiny per-call im2col + one fused pallas_call
# ----------------------------------------------------------------------------
_IDX_EVEN = np.array([2 * q + k for q in range(POOL_L) for k in range(KSZ)])
_IDX_ODD = _IDX_EVEN + 1


def _full_spec(shape):
    nd = len(shape)
    return pl.BlockSpec(shape, lambda i, _nd=nd: (0,) * _nd)


def conv_net_6_forward(x, prep):
    # x: (6, B, 1, 12) float32
    B = x.shape[1]
    xi = x[:, :, 0, :]                                     # (6, B, 12)
    xpad = jnp.pad(xi, ((0, 0), (0, 0), (1, 1)))           # (6, B, 14)   conv padding=1
    xe = xpad[:, :, _IDX_EVEN]                             # (6, B, 18)   even conv positions
    xo = xpad[:, :, _IDX_ODD]                              # (6, B, 18)   odd  conv positions
    # sensor-major lane layout (cols s*18 .. s*18+17), even rows then odd rows -> (2B, 108)
    xe2 = jnp.transpose(xe, (1, 0, 2)).reshape(B, CONV_K)
    xo2 = jnp.transpose(xo, (1, 0, 2)).reshape(B, CONV_K)
    xeo = jnp.concatenate([xe2, xo2], axis=0)              # (2B, 108)

    args = (xeo,) + prep
    out_shape = jax.ShapeDtypeStruct((B, OUT_W), jnp.float32)

    slab = pl.pallas_call(
        conv_net_6_kernel,
        out_shape=out_shape,
        grid=(1,),
        in_specs=[_full_spec(a.shape) for a in args],
        out_specs=_full_spec((B, OUT_W)),
        compiler_params=pltpu.CompilerParams(dimension_semantics=("arbitrary",)),
    )(*args)

    out = slab[:, 0:6]
    gate = slab[:, 6:12]
    auxs = tuple(slab[:, 12 + s * 6: 12 + (s + 1) * 6] for s in range(N_SENS))
    return (out, gate) + auxs


# ----------------------------------------------------------------------------
# Deterministic parameter init (PyTorch-layout shapes)
# ----------------------------------------------------------------------------
def init_params(key):
    keys = jax.random.split(key, 12)

    def rn(k, shape, scale=0.1):
        return scale * jax.random.normal(k, shape, dtype=jnp.float32)

    return {
        'conv_w':   rn(keys[0], (N_SENS, OUT_CH, KSZ)),        # Conv1d weight (squeezed in_ch)
        'conv_b':   rn(keys[1], (N_SENS, OUT_CH)),
        'fc1_w':    rn(keys[2], (N_SENS, FC_HID, FC_IN)),      # Linear(24, 256)
        'fc1_b':    rn(keys[3], (N_SENS, FC_HID)),
        'fc_all_w': rn(keys[4], (256, FC_HID * N_SENS), 0.02), # Linear(1536, 256)
        'fc_all_b': rn(keys[5], (256,)),
        'fc_all2_w': rn(keys[6], (6, 256)),                    # Linear(256, 6)
        'fc_all2_b': rn(keys[7], (6,)),
        'fc_out_w': rn(keys[8], (6, FC_HID)),                  # Linear(256, 6)
        'fc_out_b': rn(keys[9], (6,)),
        'fc_aux_w': rn(keys[10], (N_SENS, 6, FC_HID)),         # 6 x Linear(256, 6)
        'fc_aux_b': rn(keys[11], (N_SENS, 6)),
    }


# ----------------------------------------------------------------------------
# Pure-JAX reference following the PyTorch forward exactly
# ----------------------------------------------------------------------------
def reference_forward(x, p):
    B = x.shape[1]
    feats = []
    for s in range(N_SENS):
        xi = x[s, :, 0, :]                                   # (B, 12)
        w, b = p['conv_w'][s], p['conv_b'][s]                # (4, 3), (4,)
        xpad = jnp.pad(xi, ((0, 0), (1, 1)))                 # (B, 14)
        cols = jnp.stack([xpad[:, t:t + KSZ] for t in range(L_IN)], axis=1)  # (B, 12, 3)
        conv = jnp.einsum('btk,ck->bct', cols, w) + b[None, :, None]         # (B, 4, 12)
        conv = jnp.maximum(conv, 0.0)
        pooled = jnp.maximum(conv[:, :, 0::2], conv[:, :, 1::2])             # (B, 4, 6)
        flat = pooled.reshape(B, FC_IN)                       # PyTorch .view -> c*6+p
        feats.append(jnp.maximum(flat @ p['fc1_w'][s].T + p['fc1_b'][s], 0.0))

    cat = jnp.concatenate(feats, axis=1)                      # (B, 1536)
    h = jnp.maximum(cat @ p['fc_all_w'].T + p['fc_all_b'], 0.0)
    g = h @ p['fc_all2_w'].T + p['fc_all2_b']
    g = g / jnp.maximum(jnp.sqrt(jnp.sum(g * g, axis=1, keepdims=True)), 1e-12)
    g = (g + 1.0) * 2.0
    g = jax.nn.softmax(g, axis=1)
    add = sum(g[:, s:s + 1] * feats[s] for s in range(N_SENS))
    out = add @ p['fc_out_w'].T + p['fc_out_b']
    auxs = [feats[s] @ p['fc_aux_w'][s].T + p['fc_aux_b'][s] for s in range(N_SENS)]
    return (out, g, *auxs)


if __name__ == "__main__":
    key = jax.random.PRNGKey(0)
    kx, kp = jax.random.split(key)
    B = 8
    # input matching the PyTorch forward: 6 sensor streams of shape (B, 1, 12)
    x = jax.random.normal(kx, (N_SENS, B, 1, L_IN), dtype=jnp.float32)
    params = init_params(kp)

    # one-time weight transform (hoisted out of the per-call path)
    prep = prepare_weights(params)

    outs = conv_net_6_forward(x, prep)
    outs = jax.block_until_ready(outs)

    refs = reference_forward(x, params)
    for o, r in zip(outs, refs):
        np.testing.assert_allclose(np.asarray(o), np.asarray(r), rtol=1e-4, atol=1e-4)

    print("KERNEL_OK")
</pallas_src>

<mosaic_0001>
module attributes {stable_mosaic.version = 11 : i64} {
  func.func @conv_net_6_kernel(%arg0: i32, %arg1: memref<16x108xf32, #tpu.memory_space<vmem>>, %arg2: memref<108x144xf32, #tpu.memory_space<vmem>>, %arg3: memref<1x144xf32, #tpu.memory_space<vmem>>, %arg4: memref<144x1536xf32, #tpu.memory_space<vmem>>, %arg5: memref<1x1536xf32, #tpu.memory_space<vmem>>, %arg6: memref<1536x256xf32, #tpu.memory_space<vmem>>, %arg7: memref<1x256xf32, #tpu.memory_space<vmem>>, %arg8: memref<256x6xf32, #tpu.memory_space<vmem>>, %arg9: memref<1x6xf32, #tpu.memory_space<vmem>>, %arg10: memref<256x6xf32, #tpu.memory_space<vmem>>, %arg11: memref<1x6xf32, #tpu.memory_space<vmem>>, %arg12: memref<1536x36xf32, #tpu.memory_space<vmem>>, %arg13: memref<1x36xf32, #tpu.memory_space<vmem>>, %arg14: memref<8x48xf32, #tpu.memory_space<vmem>>) attributes {dimension_semantics = [#tpu.dimension_semantics<arbitrary>], iteration_bounds = array<i64: 1>, scalar_prefetch = 0 : i64, scratch_operands = 0 : i64, tpu.core_type = #tpu.core_type<tc>, window_params = [{pipeline_mode = #tpu.pipeline_mode<synchronous>, transform_indices = @transform_0, window_bounds = array<i64: 16, 108>}, {pipeline_mode = #tpu.pipeline_mode<synchronous>, transform_indices = @transform_1, window_bounds = array<i64: 108, 144>}, {pipeline_mode = #tpu.pipeline_mode<synchronous>, transform_indices = @transform_2, window_bounds = array<i64: 1, 144>}, {pipeline_mode = #tpu.pipeline_mode<synchronous>, transform_indices = @transform_3, window_bounds = array<i64: 144, 1536>}, {pipeline_mode = #tpu.pipeline_mode<synchronous>, transform_indices = @transform_4, window_bounds = array<i64: 1, 1536>}, {pipeline_mode = #tpu.pipeline_mode<synchronous>, transform_indices = @transform_5, window_bounds = array<i64: 1536, 256>}, {pipeline_mode = #tpu.pipeline_mode<synchronous>, transform_indices = @transform_6, window_bounds = array<i64: 1, 256>}, {pipeline_mode = #tpu.pipeline_mode<synchronous>, transform_indices = @transform_7, window_bounds = array<i64: 256, 6>}, {pipeline_mode = #tpu.pipeline_mode<synchronous>, transform_indices = @transform_8, window_bounds = array<i64: 1, 6>}, {pipeline_mode = #tpu.pipeline_mode<synchronous>, transform_indices = @transform_9, window_bounds = array<i64: 256, 6>}, {pipeline_mode = #tpu.pipeline_mode<synchronous>, transform_indices = @transform_10, window_bounds = array<i64: 1, 6>}, {pipeline_mode = #tpu.pipeline_mode<synchronous>, transform_indices = @transform_11, window_bounds = array<i64: 1536, 36>}, {pipeline_mode = #tpu.pipeline_mode<synchronous>, transform_indices = @transform_12, window_bounds = array<i64: 1, 36>}, {pipeline_mode = #tpu.pipeline_mode<synchronous>, transform_indices = @transform_13, window_bounds = array<i64: 8, 48>}]} {
    %c0 = arith.constant 0 : index
    %c0_0 = arith.constant 0 : index
    %0 = vector.load %arg1[%c0, %c0_0] : memref<16x108xf32, #tpu.memory_space<vmem>>, vector<16x108xf32>
    %c0_1 = arith.constant 0 : index
    %c0_2 = arith.constant 0 : index
    %1 = vector.load %arg2[%c0_1, %c0_2] : memref<108x144xf32, #tpu.memory_space<vmem>>, vector<108x144xf32>
    %cst = arith.constant dense<0.000000e+00> : vector<16x144xf32>
    %2 = tpu.matmul %0, %1, %cst {dimension_numbers = #tpu.dot_dimension_numbers<[1], [0], [0], [1], [0, 0, 1, 1], [], []>} : vector<16x108xf32>, vector<108x144xf32>, vector<16x144xf32> -> vector<16x144xf32>
    %c0_3 = arith.constant 0 : index
    %c0_4 = arith.constant 0 : index
    %3 = vector.load %arg3[%c0_3, %c0_4] : memref<1x144xf32, #tpu.memory_space<vmem>>, vector<1x144xf32>
    %4 = vector.broadcast %3 : vector<1x144xf32> to vector<16x144xf32>
    %5 = arith.addf %2, %4 : vector<16x144xf32>
    %6 = vector.extract_strided_slice %5 {offsets = [0, 0], sizes = [8, 144], strides = [1, 1]} : vector<16x144xf32> to vector<8x144xf32>
    %7 = vector.extract_strided_slice %5 {offsets = [8, 0], sizes = [8, 144], strides = [1, 1]} : vector<16x144xf32> to vector<8x144xf32>
    %cst_5 = arith.constant 0.000000e+00 : f32
    %8 = vector.broadcast %cst_5 : f32 to vector<8x144xf32>
    %9 = arith.maximumf %6, %8 : vector<8x144xf32>
    %cst_6 = arith.constant 0.000000e+00 : f32
    %10 = vector.broadcast %cst_6 : f32 to vector<8x144xf32>
    %11 = arith.maximumf %7, %10 : vector<8x144xf32>
    %12 = arith.maximumf %9, %11 : vector<8x144xf32>
    %c0_7 = arith.constant 0 : index
    %c0_8 = arith.constant 0 : index
    %13 = vector.load %arg4[%c0_7, %c0_8] : memref<144x1536xf32, #tpu.memory_space<vmem>>, vector<144x1536xf32>
    %cst_9 = arith.constant dense<0.000000e+00> : vector<8x1536xf32>
    %14 = tpu.matmul %12, %13, %cst_9 {dimension_numbers = #tpu.dot_dimension_numbers<[1], [0], [0], [1], [0, 0, 1, 1], [], []>} : vector<8x144xf32>, vector<144x1536xf32>, vector<8x1536xf32> -> vector<8x1536xf32>
    %c0_10 = arith.constant 0 : index
    %c0_11 = arith.constant 0 : index
    %15 = vector.load %arg5[%c0_10, %c0_11] : memref<1x1536xf32, #tpu.memory_space<vmem>>, vector<1x1536xf32>
    %16 = vector.broadcast %15 : vector<1x1536xf32> to vector<8x1536xf32>
    %17 = arith.addf %14, %16 : vector<8x1536xf32>
    %cst_12 = arith.constant 0.000000e+00 : f32
    %18 = vector.broadcast %cst_12 : f32 to vector<8x1536xf32>
    %19 = arith.maximumf %17, %18 : vector<8x1536xf32>
    %c0_13 = arith.constant 0 : index
    %c0_14 = arith.constant 0 : index
    %20 = vector.load %arg6[%c0_13, %c0_14] : memref<1536x256xf32, #tpu.memory_space<vmem>>, vector<1536x256xf32>
    %cst_15 = arith.constant dense<0.000000e+00> : vector<8x256xf32>
    %21 = tpu.matmul %19, %20, %cst_15 {dimension_numbers = #tpu.dot_dimension_numbers<[1], [0], [0], [1], [0, 0, 1, 1], [], []>} : vector<8x1536xf32>, vector<1536x256xf32>, vector<8x256xf32> -> vector<8x256xf32>
    %c0_16 = arith.constant 0 : index
    %c0_17 = arith.constant 0 : index
    %22 = vector.load %arg7[%c0_16, %c0_17] : memref<1x256xf32, #tpu.memory_space<vmem>>, vector<1x256xf32>
    %23 = vector.broadcast %22 : vector<1x256xf32> to vector<8x256xf32>
    %24 = arith.addf %21, %23 : vector<8x256xf32>
    %cst_18 = arith.constant 0.000000e+00 : f32
    %25 = vector.broadcast %cst_18 : f32 to vector<8x256xf32>
    %26 = arith.maximumf %24, %25 : vector<8x256xf32>
    %c0_19 = arith.constant 0 : index
    %c0_20 = arith.constant 0 : index
    %27 = vector.load %arg8[%c0_19, %c0_20] : memref<256x6xf32, #tpu.memory_space<vmem>>, vector<256x6xf32>
    %cst_21 = arith.constant dense<0.000000e+00> : vector<8x6xf32>
    %28 = tpu.matmul %26, %27, %cst_21 {dimension_numbers = #tpu.dot_dimension_numbers<[1], [0], [0], [1], [0, 0, 1, 1], [], []>} : vector<8x256xf32>, vector<256x6xf32>, vector<8x6xf32> -> vector<8x6xf32>
    %c0_22 = arith.constant 0 : index
    %c0_23 = arith.constant 0 : index
    %29 = vector.load %arg9[%c0_22, %c0_23] : memref<1x6xf32, #tpu.memory_space<vmem>>, vector<1x6xf32>
    %30 = vector.broadcast %29 : vector<1x6xf32> to vector<8x6xf32>
    %31 = arith.addf %28, %30 : vector<8x6xf32>
    %32 = arith.mulf %31, %31 : vector<8x6xf32>
    %cst_24 = arith.constant dense<0.000000e+00> : vector<8xf32>
    %33 = vector.multi_reduction <add>, %32, %cst_24 [1] : vector<8x6xf32> to vector<8xf32>
    %34 = vector.shape_cast %33 : vector<8xf32> to vector<8x1xf32>
    %35 = math.sqrt %34 : vector<8x1xf32>
    %cst_25 = arith.constant 9.99999996E-13 : f32
    %36 = vector.broadcast %cst_25 : f32 to vector<8x1xf32>
    %37 = arith.maximumf %35, %36 : vector<8x1xf32>
    %38 = vector.broadcast %37 : vector<8x1xf32> to vector<8x6xf32>
    %39 = arith.divf %31, %38 : vector<8x6xf32>
    %cst_26 = arith.constant 1.000000e+00 : f32
    %40 = vector.broadcast %cst_26 : f32 to vector<8x6xf32>
    %41 = arith.addf %39, %40 : vector<8x6xf32>
    %cst_27 = arith.constant 2.000000e+00 : f32
    %42 = vector.broadcast %cst_27 : f32 to vector<8x6xf32>
    %43 = arith.mulf %41, %42 : vector<8x6xf32>
    %cst_28 = arith.constant dense<0xFF800000> : vector<8xf32>
    %44 = vector.multi_reduction <maximumf>, %43, %cst_28 [1] : vector<8x6xf32> to vector<8xf32>
    %45 = vector.shape_cast %44 : vector<8xf32> to vector<8x1xf32>
    %46 = vector.broadcast %45 : vector<8x1xf32> to vector<8x6xf32>
    %47 = arith.subf %43, %46 : vector<8x6xf32>
    %48 = math.exp %47 : vector<8x6xf32>
    %cst_29 = arith.constant dense<0.000000e+00> : vector<8xf32>
    %49 = vector.multi_reduction <add>, %48, %cst_29 [1] : vector<8x6xf32> to vector<8xf32>
    %50 = vector.shape_cast %49 : vector<8xf32> to vector<8x1xf32>
    %51 = vector.broadcast %50 : vector<8x1xf32> to vector<8x6xf32>
    %52 = arith.divf %48, %51 : vector<8x6xf32>
    %53 = vector.extract_strided_slice %19 {offsets = [0, 0], sizes = [8, 256], strides = [1, 1]} : vector<8x1536xf32> to vector<8x256xf32>
    %54 = vector.extract_strided_slice %52 {offsets = [0, 0], sizes = [8, 1], strides = [1, 1]} : vector<8x6xf32> to vector<8x1xf32>
    %55 = vector.broadcast %54 : vector<8x1xf32> to vector<8x256xf32>
    %56 = arith.mulf %53, %55 : vector<8x256xf32>
    %57 = vector.extract_strided_slice %19 {offsets = [0, 256], sizes = [8, 256], strides = [1, 1]} : vector<8x1536xf32> to vector<8x256xf32>
    %58 = vector.extract_strided_slice %52 {offsets = [0, 1], sizes = [8, 1], strides = [1, 1]} : vector<8x6xf32> to vector<8x1xf32>
    %59 = vector.broadcast %58 : vector<8x1xf32> to vector<8x256xf32>
    %60 = arith.mulf %57, %59 : vector<8x256xf32>
    %61 = arith.addf %56, %60 : vector<8x256xf32>
    %62 = vector.extract_strided_slice %19 {offsets = [0, 512], sizes = [8, 256], strides = [1, 1]} : vector<8x1536xf32> to vector<8x256xf32>
    %63 = vector.extract_strided_slice %52 {offsets = [0, 2], sizes = [8, 1], strides = [1, 1]} : vector<8x6xf32> to vector<8x1xf32>
    %64 = vector.broadcast %63 : vector<8x1xf32> to vector<8x256xf32>
    %65 = arith.mulf %62, %64 : vector<8x256xf32>
    %66 = arith.addf %61, %65 : vector<8x256xf32>
    %67 = vector.extract_strided_slice %19 {offsets = [0, 768], sizes = [8, 256], strides = [1, 1]} : vector<8x1536xf32> to vector<8x256xf32>
    %68 = vector.extract_strided_slice %52 {offsets = [0, 3], sizes = [8, 1], strides = [1, 1]} : vector<8x6xf32> to vector<8x1xf32>
    %69 = vector.broadcast %68 : vector<8x1xf32> to vector<8x256xf32>
    %70 = arith.mulf %67, %69 : vector<8x256xf32>
    %71 = arith.addf %66, %70 : vector<8x256xf32>
    %72 = vector.extract_strided_slice %19 {offsets = [0, 1024], sizes = [8, 256], strides = [1, 1]} : vector<8x1536xf32> to vector<8x256xf32>
    %73 = vector.extract_strided_slice %52 {offsets = [0, 4], sizes = [8, 1], strides = [1, 1]} : vector<8x6xf32> to vector<8x1xf32>
    %74 = vector.broadcast %73 : vector<8x1xf32> to vector<8x256xf32>
    %75 = arith.mulf %72, %74 : vector<8x256xf32>
    %76 = arith.addf %71, %75 : vector<8x256xf32>
    %77 = vector.extract_strided_slice %19 {offsets = [0, 1280], sizes = [8, 256], strides = [1, 1]} : vector<8x1536xf32> to vector<8x256xf32>
    %78 = vector.extract_strided_slice %52 {offsets = [0, 5], sizes = [8, 1], strides = [1, 1]} : vector<8x6xf32> to vector<8x1xf32>
    %79 = vector.broadcast %78 : vector<8x1xf32> to vector<8x256xf32>
    %80 = arith.mulf %77, %79 : vector<8x256xf32>
    %81 = arith.addf %76, %80 : vector<8x256xf32>
    %c0_30 = arith.constant 0 : index
    %c0_31 = arith.constant 0 : index
    %82 = vector.load %arg10[%c0_30, %c0_31] : memref<256x6xf32, #tpu.memory_space<vmem>>, vector<256x6xf32>
    %cst_32 = arith.constant dense<0.000000e+00> : vector<8x6xf32>
    %83 = tpu.matmul %81, %82, %cst_32 {dimension_numbers = #tpu.dot_dimension_numbers<[1], [0], [0], [1], [0, 0, 1, 1], [], []>} : vector<8x256xf32>, vector<256x6xf32>, vector<8x6xf32> -> vector<8x6xf32>
    %c0_33 = arith.constant 0 : index
    %c0_34 = arith.constant 0 : index
    %84 = vector.load %arg11[%c0_33, %c0_34] : memref<1x6xf32, #tpu.memory_space<vmem>>, vector<1x6xf32>
    %85 = vector.broadcast %84 : vector<1x6xf32> to vector<8x6xf32>
    %86 = arith.addf %83, %85 : vector<8x6xf32>
    %c0_35 = arith.constant 0 : index
    %c0_36 = arith.constant 0 : index
    %87 = vector.load %arg12[%c0_35, %c0_36] : memref<1536x36xf32, #tpu.memory_space<vmem>>, vector<1536x36xf32>
    %cst_37 = arith.constant dense<0.000000e+00> : vector<8x36xf32>
    %88 = tpu.matmul %19, %87, %cst_37 {dimension_numbers = #tpu.dot_dimension_numbers<[1], [0], [0], [1], [0, 0, 1, 1], [], []>} : vector<8x1536xf32>, vector<1536x36xf32>, vector<8x36xf32> -> vector<8x36xf32>
    %c0_38 = arith.constant 0 : index
    %c0_39 = arith.constant 0 : index
    %89 = vector.load %arg13[%c0_38, %c0_39] : memref<1x36xf32, #tpu.memory_space<vmem>>, vector<1x36xf32>
    %90 = vector.broadcast %89 : vector<1x36xf32> to vector<8x36xf32>
    %91 = arith.addf %88, %90 : vector<8x36xf32>
    %92 = tpu.concatenate %86, %52, %91 in 1 : vector<8x6xf32>, vector<8x6xf32>, vector<8x36xf32> -> vector<8x48xf32>
    %c0_40 = arith.constant 0 : index
    %c0_41 = arith.constant 0 : index
    %93 = vector.load %arg14[%c0_40, %c0_41] : memref<8x48xf32, #tpu.memory_space<vmem>>, vector<8x48xf32>
    tpu.vector_store %arg14[%c0_40, %c0_41], %92 {strides = array<i32>} : memref<8x48xf32, #tpu.memory_space<vmem>>, vector<8x48xf32>,
    return
  }
  func.func @transform_0(%arg0: i32) -> (i32, i32) {
    %c0_i32 = arith.constant 0 : i32
    %c0_i32_0 = arith.constant 0 : i32
    %c0_i32_1 = arith.constant 0 : i32
    return %c0_i32, %c0_i32_0 : i32, i32
  }
  func.func @transform_1(%arg0: i32) -> (i32, i32) {
    %c0_i32 = arith.constant 0 : i32
    %c0_i32_0 = arith.constant 0 : i32
    %c0_i32_1 = arith.constant 0 : i32
    return %c0_i32, %c0_i32_0 : i32, i32
  }
  func.func @transform_2(%arg0: i32) -> (i32, i32) {
    %c0_i32 = arith.constant 0 : i32
    %c0_i32_0 = arith.constant 0 : i32
    %c0_i32_1 = arith.constant 0 : i32
    return %c0_i32, %c0_i32_0 : i32, i32
  }
  func.func @transform_3(%arg0: i32) -> (i32, i32) {
    %c0_i32 = arith.constant 0 : i32
    %c0_i32_0 = arith.constant 0 : i32
    %c0_i32_1 = arith.constant 0 : i32
    return %c0_i32, %c0_i32_0 : i32, i32
  }
  func.func @transform_4(%arg0: i32) -> (i32, i32) {
    %c0_i32 = arith.constant 0 : i32
    %c0_i32_0 = arith.constant 0 : i32
    %c0_i32_1 = arith.constant 0 : i32
    return %c0_i32, %c0_i32_0 : i32, i32
  }
  func.func @transform_5(%arg0: i32) -> (i32, i32) {
    %c0_i32 = arith.constant 0 : i32
    %c0_i32_0 = arith.constant 0 : i32
    %c0_i32_1 = arith.constant 0 : i32
    return %c0_i32, %c0_i32_0 : i32, i32
  }
  func.func @transform_6(%arg0: i32) -> (i32, i32) {
    %c0_i32 = arith.constant 0 : i32
    %c0_i32_0 = arith.constant 0 : i32
    %c0_i32_1 = arith.constant 0 : i32
    return %c0_i32, %c0_i32_0 : i32, i32
  }
  func.func @transform_7(%arg0: i32) -> (i32, i32) {
    %c0_i32 = arith.constant 0 : i32
    %c0_i32_0 = arith.constant 0 : i32
    %c0_i32_1 = arith.constant 0 : i32
    return %c0_i32, %c0_i32_0 : i32, i32
  }
  func.func @transform_8(%arg0: i32) -> (i32, i32) {
    %c0_i32 = arith.constant 0 : i32
    %c0_i32_0 = arith.constant 0 : i32
    %c0_i32_1 = arith.constant 0 : i32
    return %c0_i32, %c0_i32_0 : i32, i32
  }
  func.func @transform_9(%arg0: i32) -> (i32, i32) {
    %c0_i32 = arith.constant 0 : i32
    %c0_i32_0 = arith.constant 0 : i32
    %c0_i32_1 = arith.constant 0 : i32
    return %c0_i32, %c0_i32_0 : i32, i32
  }
  func.func @transform_10(%arg0: i32) -> (i32, i32) {
    %c0_i32 = arith.constant 0 : i32
    %c0_i32_0 = arith.constant 0 : i32
    %c0_i32_1 = arith.constant 0 : i32
    return %c0_i32, %c0_i32_0 : i32, i32
  }
  func.func @transform_11(%arg0: i32) -> (i32, i32) {
    %c0_i32 = arith.constant 0 : i32
    %c0_i32_0 = arith.constant 0 : i32
    %c0_i32_1 = arith.constant 0 : i32
    return %c0_i32, %c0_i32_0 : i32, i32
  }
  func.func @transform_12(%arg0: i32) -> (i32, i32) {
    %c0_i32 = arith.constant 0 : i32
    %c0_i32_0 = arith.constant 0 : i32
    %c0_i32_1 = arith.constant 0 : i32
    return %c0_i32, %c0_i32_0 : i32, i32
  }
  func.func @transform_13(%arg0: i32) -> (i32, i32) {
    %c0_i32 = arith.constant 0 : i32
    %c0_i32_0 = arith.constant 0 : i32
    %c0_i32_1 = arith.constant 0 : i32
    return %c0_i32, %c0_i32_0 : i32, i32
  }
}

</mosaic_0001>

<bundles_post_ra>
// kernel: tpu_custom_call.1
= control target key start
LH: loop header
LB: loop body
LE: loop exit
PB: predicated region body
PF: predicated region fallthrough
CT: control target
= control target key end

     0   :  { %18 = vsyncpa [#allocation3], 0  ;;  %s4057_s0 = inlined_call_operand.hbm [shape: f32[16,108], index: 0, kind: input, shape index: {}]   ;;  %s4058_s1 = inlined_call_operand.vmem [shape: f32[108,144], index: 1, kind: input, shape index: {}]   ;;  %s4059_s2 = inlined_call_operand.hbm [shape: f32[1,144], index: 2, kind: input, shape index: {}]   ;;  %s4060_s3 = inlined_call_operand.hbm [shape: f32[144,1536], index: 3, kind: input, shape index: {}]   ;;  %s4061_s4 = inlined_call_operand.hbm [shape: f32[1,1536], index: 4, kind: input, shape index: {}]   ;;  %s4062_s5 = inlined_call_operand.hbm [shape: f32[1536,256], index: 5, kind: input, shape index: {}]   ;;  %s4063_s6 = inlined_call_operand.hbm [shape: f32[1,256], index: 6, kind: input, shape index: {}]   ;;  %s4064_s7 = inlined_call_operand.vmem [shape: f32[256,6], index: 7, kind: input, shape index: {}]   ;;  %s4065_s8 = inlined_call_operand.hbm [shape: f32[1,6], index: 8, kind: input, shape index: {}]   ;;  %s4066_s9 = inlined_call_operand.vmem [shape: f32[256,6], index: 9, kind: input, shape index: {}]   ;;  %s4067_s10 = inlined_call_operand.hbm [shape: f32[1,6], index: 10, kind: input, shape index: {}]   ;;  %s4068_s11 = inlined_call_operand.vmem [shape: f32[1536,36], index: 11, kind: input, shape index: {}]   ;;  %s4069_s12 = inlined_call_operand.hbm [shape: f32[1,36], index: 12, kind: input, shape index: {}]   ;;  %s4070_s13 = inlined_call_operand.hbm [shape: f32[8,48], index: 13, kind: output, shape index: {}]  }
   0x1   :  { %19 = vsyncpa [#allocation6], 0 }
   0x2   :  { %20 = vsyncpa [#allocation9], 0 }
   0x3   :  { %21 = vsyncpa [#allocation12], 0 }
   0x4   :  { %22 = vsyncpa [#allocation15], 0  ;;  %s44_s27 = sshll.u32 %s4059_s2, 4  ;;  %s45_s27 = int_to_ptr.hbm [resolvable:$true] %s44_s27 }
   0x5   :  { %23 = vsyncpa [#allocation4], 0  ;;  %s2926_s28 = smov [#allocation5]   ;;  %s68_s15 = sshll.u32 %s4061_s4, 4  ;;  %s69_s15 = int_to_ptr.hbm [resolvable:$true] %s68_s15 }
   0x6   :  { %s46_s29 = sshll.u32 %s2926_s28, 4  ;;  %s2927_s16 = smov [#allocation8]   ;;  %s47_s29 = int_to_ptr.vmem [resolvable:$true] %s46_s29 }
   0x7   :  { %49 = dma.hbm_to_vmem [thread:$0]  %s45_s27, 32, %s47_s29, [#allocation6]  }
   0x8   :  { %s70_s17 = sshll.u32 %s2927_s16, 4  ;;  %s92_s20 = sshll.u32 %s4063_s6, 4  ;;  %s71_s17 = int_to_ptr.vmem [resolvable:$true] %s70_s17  ;;  %s93_s20 = int_to_ptr.hbm [resolvable:$true] %s92_s20 }
   0x9   :  { %73 = dma.hbm_to_vmem [thread:$0]  %s69_s15, 192, %s71_s17, [#allocation9]  }
   0xa   :  { %s118_s22 = sshll.u32 %s4067_s10, 4  ;;  %s2928_s23 = smov [#allocation11]   ;;  %s119_s22 = int_to_ptr.hbm [resolvable:$true] %s118_s22 }
   0xb   :  { %s94_s24 = sshll.u32 %s2928_s23, 4  ;;  %s2929_s4 = smov [#allocation14]   ;;  %s95_s24 = int_to_ptr.vmem [resolvable:$true] %s94_s24 }
   0xc   :  { %97 = dma.hbm_to_vmem [thread:$0]  %s93_s20, 32, %s95_s24, [#allocation12]  }
   0xd   :  { %s120_s25 = sshll.u32 %s2929_s4, 4  ;;  %s28_s28 = sshll.u32 %s4057_s0, 4  ;;  %s121_s25 = int_to_ptr.vmem [resolvable:$true] %s120_s25  ;;  %s29_s28 = int_to_ptr.hbm [resolvable:$true] %s28_s28 }
   0xe   :  { %123 = dma.hbm_to_vmem [thread:$0]  %s119_s22, 16, %s121_s25, [#allocation15]  }
   0xf   :  { %s2930_s6 = smov [#allocation2]   ;;  %s54_s10 = sshll.u32 %s4060_s3, 4  ;;  %s55_s10 = int_to_ptr.hbm [resolvable:$true] %s54_s10 }
  0x10   :  { %s30_s29 = sshll.u32 %s2930_s6, 4  ;;  %s2931_s15 = smov 128   ;;  %s31_s29 = int_to_ptr.vmem [resolvable:$true] %s30_s29 }
  0x11   :  { %s2932_s16 = smov 8   ;;  %s2933_s17 = smov [#allocation7]  }
  0x12   :  { %36 = dma.hbm_to_vmem [thread:$0]  %s29_s28, 256, %s31_s29, [#allocation3], %s2931_s15, %s2931_s15, %s2932_s16  }
  0x13   :  { %s56_s18 = sshll.u32 %s2933_s17, 4  ;;  %s2934_s19 = smov 1536   ;;  %s57_s18 = int_to_ptr.vmem [resolvable:$true] %s56_s18 }
  0x14   :  { %s2935_s20 = smov 96   ;;  %s78_s21 = sshll.u32 %s4062_s5, 4  ;;  %s79_s21 = int_to_ptr.hbm [resolvable:$true] %s78_s21 }
  0x15   :  { %62 = dma.hbm_to_vmem [thread:$0]  %s55_s10, 27648, %s57_s18, [#allocation6], %s2934_s19, %s2934_s19, %s2935_s20  }
  0x16   :  { %s2936_s22 = smov [#allocation10]   ;;  %s105_s4 = sshll.u32 %s4065_s8, 4  ;;  %s106_s4 = int_to_ptr.hbm [resolvable:$true] %s105_s4 }
  0x17   :  { %s80_s23 = sshll.u32 %s2936_s22, 4  ;;  %s2937_s25 = smov 256   ;;  %s81_s23 = int_to_ptr.vmem [resolvable:$true] %s80_s23 }
  0x18   :  { %s2938_s26 = smov 16   ;;  %s2939_s27 = smov [#allocation13]  }
  0x19   :  { %86 = dma.hbm_to_vmem [thread:$0]  %s79_s21, 49152, %s81_s23, [#allocation9], %s2937_s25, %s2937_s25, %s2938_s26  }
  0x1a   :  { %s107_s28 = sshll.u32 %s2939_s27, 4  ;;  %s131_s30 = sshll.u32 %s4069_s12, 4  ;;  %s108_s28 = int_to_ptr.vmem [resolvable:$true] %s107_s28  ;;  %s132_s30 = int_to_ptr.hbm [resolvable:$true] %s131_s30 }
  0x1b   :  { %110 = dma.hbm_to_vmem [thread:$0]  %s106_s4, 16, %s108_s28, [#allocation12]  }
  0x1c   :  { %s2940_s5 = smov [#allocation16]  }
  0x1d   :  { %s133_s14 = sshll.u32 %s2940_s5, 4  ;;  %s134_s14 = int_to_ptr.vmem [resolvable:$true] %s133_s14 }
  0x1e   :  { %136 = dma.hbm_to_vmem [thread:$0]  %s132_s30, 16, %s134_s14, [#allocation15]  }
  0x1f   :  { %2914 = dma.done.wait [#allocation3], 256  }
  0x20   :  { %2915 = vsyncadd [#allocation3], 4294967040 }
  0x21   :  { %2916 = dma.done.wait [#allocation6], 27680  }
  0x22   :  { %2917 = vsyncadd [#allocation6], 4294939616 }
  0x23   :  { %2918 = dma.done.wait [#allocation9], 49344  }
  0x24   :  { %2919 = vsyncadd [#allocation9], 4294917952 }
  0x25   :  { %2920 = dma.done.wait [#allocation12], 48  }
  0x26   :  { %2921 = vsyncadd [#allocation12], 4294967248 }
  0x27   :  { %2922 = dma.done.wait [#allocation15], 32  }
  0x28   :  { %2923 = vsyncadd [#allocation15], 4294967264  ;;  %vm216_vm0 = vcmask 1043456   ;;  %v201_v0 = vld [vmem:[%s4058_s1 + $0xd0] sm:$0xf]  ;;  %v199_v2 = vld [vmem:[%s4058_s1 + $0xc0] sm:$0xff] }
  0x29   :  { %v202_v1 = vld [vmem:[%s4058_s1 + $0xd8] sm:$0xf]  ;;  %2614 = vmatpush.msk.msra.mxu0 %vm216_vm0, %v201_v0  ;;  %v200_v3 = vld [vmem:[%s4058_s1 + $0xc8] sm:$0xff]  ;;  %v197_v4 = vld [vmem:[%s4058_s1 + $0xb0] sm:$0xff]  ;;  %vm209_vm1 = vcmask 883712   ;;  %vm519_vm2 = vcmask 130048  }
  0x2a   :  { %2617 = vmatpush.msk.msra.mxu1 %vm216_vm0, %v202_v1  ;;  %v198_v5 = vld [vmem:[%s4058_s1 + $0xb8] sm:$0xff]  ;;  %v195_v6 = vld [vmem:[%s4058_s1 + $0xa0] sm:$0xff]  ;;  %v196_v7 = vld [vmem:[%s4058_s1 + $0xa8] sm:$0xff]  ;;  %vm1964_vm3 = vcmask 48128   ;;  %s2949_s20 = smov [#allocation17]   ;;  %s2600_s22 = sshll.u32 %s4070_s13, 4  ;;  %s2601_s22 = int_to_ptr.hbm [resolvable:$true] %s2600_s22 }
  0x2b   :  { %226 = vmatpush.msra.mxu0 %v199_v2  ;;  %v193_v8 = vld [vmem:[%s4058_s1 + $0x90] sm:$0xff]  ;;  %v194_v9 = vld [vmem:[%s4058_s1 + $0x98] sm:$0xff]  ;;  %v191_v10 = vld [vmem:[%s4058_s1 + $0x80] sm:$0xff]  ;;  %s2598_s0 = sshll.u32 %s2949_s20, 4  ;;  %vm2589_vm14 = vcmask 97280   ;;  %vm2591_vm15 = vcmask 392192   ;;  %s2599_s0 = int_to_ptr.vmem [resolvable:$true] %s2598_s0 }
  0x2c   :  { %249 = vmatpush.msra.mxu1 %v200_v3  ;;  %v192_v11 = vld [vmem:[%s4058_s1 + $0x88] sm:$0xff]  ;;  %v189_v12 = vld [vmem:[%s4058_s1 + $0x70] sm:$0xff]  ;;  %v190_v13 = vld [vmem:[%s4058_s1 + $0x78] sm:$0xff] }
  0x2d   :  { %227 = vmatpush.msra.mxu0 %v197_v4  ;;  %v187_v14 = vld [vmem:[%s4058_s1 + $0x60] sm:$0xff]  ;;  %v188_v15 = vld [vmem:[%s4058_s1 + $0x68] sm:$0xff]  ;;  %v185_v16 = vld [vmem:[%s4058_s1 + $0x50] sm:$0xff] }
  0x2e   :  { %250 = vmatpush.msra.mxu1 %v198_v5  ;;  %v186_v17 = vld [vmem:[%s4058_s1 + $0x58] sm:$0xff]  ;;  %v183_v18 = vld [vmem:[%s4058_s1 + $0x40] sm:$0xff]  ;;  %v184_v19 = vld [vmem:[%s4058_s1 + $0x48] sm:$0xff] }
  0x2f   :  { %228 = vmatpush.msra.mxu0 %v195_v6  ;;  %v181_v20 = vld [vmem:[%s4058_s1 + $0x30] sm:$0xff]  ;;  %v182_v21 = vld [vmem:[%s4058_s1 + $0x38] sm:$0xff]  ;;  %v179_v22 = vld [vmem:[%s4058_s1 + $0x20] sm:$0xff] }
  0x30   :  { %251 = vmatpush.msra.mxu1 %v196_v7  ;;  %v180_v23 = vld [vmem:[%s4058_s1 + $0x28] sm:$0xff]  ;;  %v455_v24 = vld [vmem:[#allocation7 + $0x5a0] sm:$0xff]  ;;  %v175_v29 = vld [vmem:[%s4058_s1] sm:$0xff] }
  0x31   :  { %229 = vmatpush.msra.mxu0 %v193_v8  ;;  %v177_v25 = vld [vmem:[%s4058_s1 + $0x10] sm:$0xff]  ;;  %v178_v26 = vld [vmem:[%s4058_s1 + $0x18] sm:$0xff]  ;;  %523 = vmatpush.msra.mxu2 %v455_v24  ;;  %v176_v30 = vld [vmem:[%s4058_s1 + $0x8] sm:$0xff] }
  0x32   :  { %252 = vmatpush.msra.mxu1 %v194_v9  ;;  %v443_v27 = vld [vmem:[#allocation7 + $0x540] sm:$0xff]  ;;  %v173_v31 = vld [vmem:[#allocation2] sm:$0xff]  ;;  %v174_v48 = vld [vmem:[#allocation2 + $0x8] sm:$0xff] }
  0x33   :  { %230 = vmatpush.msra.mxu0 %v191_v10  ;;  %v479_v28 = vld [vmem:[#allocation7 + $0x660] sm:$0xff]  ;;  %524 = vmatpush.msra.mxu2 %v443_v27  ;;  %v457_v34 = vld [vmem:[#allocation7 + $0x5b0] sm:$0xff]  ;;  %v456_v36 = vld [vmem:[#allocation7 + $0x5a8] sm:$0xff] }
  0x34   :  { %253 = vmatpush.msra.mxu1 %v192_v11  ;;  %557 = vmatpush.msra.mxu3 %v479_v28  ;;  %v431_v32 = vld [vmem:[#allocation7 + $0x4e0] sm:$0xff]  ;;  %v445_v37 = vld [vmem:[#allocation7 + $0x550] sm:$0xff]  ;;  %v444_v40 = vld [vmem:[#allocation7 + $0x548] sm:$0xff] }
  0x35   :  { %231 = vmatpush.msra.mxu0 %v189_v12  ;;  %v467_v33 = vld [vmem:[#allocation7 + $0x600] sm:$0xff]  ;;  %525 = vmatpush.msra.mxu2 %v431_v32  ;;  %v433_v41 = vld [vmem:[#allocation7 + $0x4f0] sm:$0xff]  ;;  %v432_v44 = vld [vmem:[#allocation7 + $0x4e8] sm:$0xff] }
  0x36   :  { %254 = vmatpush.msra.mxu1 %v190_v13  ;;  %v459_v35 = vld [vmem:[#allocation7 + $0x5c0] sm:$0xff]  ;;  %558 = vmatpush.msra.mxu3 %v467_v33  ;;  %v421_v45 = vld [vmem:[#allocation7 + $0x490] sm:$0xff]  ;;  %v420_v51 = vld [vmem:[#allocation7 + $0x488] sm:$0xff] }
  0x37   :  { %232 = vmatpush.msra.mxu0 %v187_v14  ;;  %v447_v38 = vld [vmem:[#allocation7 + $0x560] sm:$0xff]  ;;  %v409_v49 = vld [vmem:[#allocation7 + $0x430] sm:$0xff]  ;;  %v408_v55 = vld [vmem:[#allocation7 + $0x428] sm:$0xff] }
  0x38   :  { %255 = vmatpush.msra.mxu1 %v188_v15  ;;  %v419_v39 = vld [vmem:[#allocation7 + $0x480] sm:$0xff]  ;;  %563 = vmatpush.msrb.mxu3 %v456_v36  ;;  %v397_v53 = vld [vmem:[#allocation7 + $0x3d0] sm:$0xff]  ;;  %v396_v59 = vld [vmem:[#allocation7 + $0x3c8] sm:$0xff] }
  0x39   :  { %233 = vmatpush.msra.mxu0 %v185_v16  ;;  %v435_v42 = vld [vmem:[#allocation7 + $0x500] sm:$0xff]  ;;  %526 = vmatpush.msra.mxu2 %v419_v39  ;;  %v385_v57 = vld [vmem:[#allocation7 + $0x370] sm:$0xff]  ;;  %v462_v15 = vld [vmem:[#allocation7 + $0x5d8] sm:$0xff] }
  0x3a   :  { %256 = vmatpush.msra.mxu1 %v186_v17  ;;  %v407_v43 = vld [vmem:[#allocation7 + $0x420] sm:$0xff]  ;;  %564 = vmatpush.msrb.mxu3 %v444_v40  ;;  %v373_v60 = vld [vmem:[#allocation7 + $0x310] sm:$0xff]  ;;  %v450_v17 = vld [vmem:[#allocation7 + $0x578] sm:$0xff] }
  0x3b   :  { %234 = vmatpush.msra.mxu0 %v183_v18  ;;  %v423_v46 = vld [vmem:[#allocation7 + $0x4a0] sm:$0xff]  ;;  %527 = vmatpush.msra.mxu2 %v407_v43  ;;  %v361_v62 = vld [vmem:[#allocation7 + $0x2b0] sm:$0xff]  ;;  %v384_v27 = vld [vmem:[#allocation7 + $0x368] sm:$0xff] }
  0x3c   :  { %257 = vmatpush.msra.mxu1 %v184_v19  ;;  %v395_v47 = vld [vmem:[#allocation7 + $0x3c0] sm:$0xff]  ;;  %565 = vmatpush.msrb.mxu3 %v432_v44  ;;  %v349_v0 = vld [vmem:[#allocation7 + $0x250] sm:$0xff]  ;;  %v438_v19 = vld [vmem:[#allocation7 + $0x518] sm:$0xff] }
  0x3d   :  { %235 = vmatpush.msra.mxu0 %v181_v20  ;;  %v411_v50 = vld [vmem:[#allocation7 + $0x440] sm:$0xff]  ;;  %528 = vmatpush.msra.mxu2 %v395_v47  ;;  %v337_v2 = vld [vmem:[#allocation7 + $0x1f0] sm:$0xff]  ;;  %v378_v33 = vld [vmem:[#allocation7 + $0x338] sm:$0xff] }
  0x3e   :  { %258 = vmatpush.msra.mxu1 %v182_v21  ;;  %v383_v52 = vld [vmem:[#allocation7 + $0x360] sm:$0xff]  ;;  %566 = vmatpush.msrb.mxu3 %v420_v51  ;;  %v325_v4 = vld [vmem:[#allocation7 + $0x190] sm:$0xff]  ;;  %v426_v21 = vld [vmem:[#allocation7 + $0x4b8] sm:$0xff] }
  0x3f   :  { %236 = vmatpush.msra.mxu0 %v179_v22  ;;  %v399_v54 = vld [vmem:[#allocation7 + $0x3e0] sm:$0xff]  ;;  %529 = vmatpush.msra.mxu2 %v383_v52  ;;  %v313_v6 = vld [vmem:[#allocation7 + $0x130] sm:$0xff]  ;;  %v348_v39 = vld [vmem:[#allocation7 + $0x248] sm:$0xff] }
  0x40   :  { %259 = vmatpush.msra.mxu1 %v180_v23  ;;  %v371_v56 = vld [vmem:[#allocation7 + $0x300] sm:$0xff]  ;;  %567 = vmatpush.msrb.mxu3 %v408_v55  ;;  %v301_v8 = vld [vmem:[#allocation7 + $0xd0] sm:$0xff]  ;;  %v414_v23 = vld [vmem:[#allocation7 + $0x458] sm:$0xff] }
  0x41   :  { %237 = vmatpush.msra.mxu0 %v177_v25  ;;  %v387_v58 = vld [vmem:[#allocation7 + $0x380] sm:$0xff]  ;;  %530 = vmatpush.msra.mxu2 %v371_v56  ;;  %v289_v10 = vld [vmem:[#allocation7 + $0x70] sm:$0xff]  ;;  %v402_v25 = vld [vmem:[#allocation7 + $0x3f8] sm:$0xff] }
  0x42   :  { %260 = vmatpush.msra.mxu1 %v178_v26  ;;  %v375_v61 = vld [vmem:[#allocation7 + $0x320] sm:$0xff]  ;;  %568 = vmatpush.msrb.mxu3 %v396_v59  ;;  %v277_v12 = vld [vmem:[#allocation7 + $0x10] sm:$0xff]  ;;  %v336_v43 = vld [vmem:[#allocation7 + $0x1e8] sm:$0xff] }
  0x43   :  { %238 = vmatpush.msra.mxu0 %v175_v29  ;;  %v363_v63 = vld [vmem:[#allocation7 + $0x2c0] sm:$0xff]  ;;  %v461_v14 = vld [vmem:[#allocation7 + $0x5d0] sm:$0xff]  ;;  %v390_v29 = vld [vmem:[#allocation7 + $0x398] sm:$0xff] }
  0x44   :  { %261 = vmatpush.msra.mxu1 %v176_v30  ;;  %2615 = vmatmul.msk.f32.vlgmr.msra.gmra.mxu0 %vm209_vm1, %v173_v31  ;;  %v351_v1 = vld [vmem:[#allocation7 + $0x260] sm:$0xff]  ;;  %v449_v16 = vld [vmem:[#allocation7 + $0x570] sm:$0xff]  ;;  %v324_v47 = vld [vmem:[#allocation7 + $0x188] sm:$0xff] }
  0x45   :  { %2618 = vmatmul.msk.f32.vlgmr.msra.gmra.mxu1 %vm209_vm1, %v173_v31  ;;  %603 = vmatpush.msrb.mxu0 %v457_v34  ;;  %v339_v3 = vld [vmem:[#allocation7 + $0x200] sm:$0xff]  ;;  %v437_v18 = vld [vmem:[#allocation7 + $0x510] sm:$0xff]  ;;  %v372_v31 = vld [vmem:[#allocation7 + $0x308] sm:$0xff] }
  0x46   :  { %683 = vmatpush.msrb.mxu1 %v459_v35  ;;  %v327_v5 = vld [vmem:[#allocation7 + $0x1a0] sm:$0xff]  ;;  %v425_v20 = vld [vmem:[#allocation7 + $0x4b0] sm:$0xff]  ;;  %569 = vmatpush.msrb.mxu3 %v384_v27  ;;  %v360_v35 = vld [vmem:[#allocation7 + $0x2a8] sm:$0xff] }
  0x47   :  { %604 = vmatpush.msrb.mxu0 %v445_v37  ;;  %v315_v7 = vld [vmem:[#allocation7 + $0x140] sm:$0xff]  ;;  %v413_v22 = vld [vmem:[#allocation7 + $0x450] sm:$0xff]  ;;  %v366_v37 = vld [vmem:[#allocation7 + $0x2d8] sm:$0xff] }
  0x48   :  { %684 = vmatpush.msrb.mxu1 %v447_v38  ;;  %v303_v9 = vld [vmem:[#allocation7 + $0xe0] sm:$0xff]  ;;  %v401_v24 = vld [vmem:[#allocation7 + $0x3f0] sm:$0xff]  ;;  %570 = vmatpush.msrb.mxu3 %v372_v31  ;;  %v312_v51 = vld [vmem:[#allocation7 + $0x128] sm:$0xff] }
  0x49   :  { %605 = vmatpush.msrb.mxu0 %v433_v41  ;;  %v291_v11 = vld [vmem:[#allocation7 + $0x80] sm:$0xff]  ;;  %v389_v28 = vld [vmem:[#allocation7 + $0x390] sm:$0xff]  ;;  %v354_v41 = vld [vmem:[#allocation7 + $0x278] sm:$0xff] }
  0x4a   :  { %685 = vmatpush.msrb.mxu1 %v435_v42  ;;  %v279_v13 = vld [vmem:[#allocation7 + $0x20] sm:$0xff]  ;;  %v377_v32 = vld [vmem:[#allocation7 + $0x330] sm:$0xff]  ;;  %571 = vmatpush.msrb.mxu3 %v360_v35  ;;  %v300_v55 = vld [vmem:[#allocation7 + $0xc8] sm:$0xff] }
  0x4b   :  { %606 = vmatpush.msrb.mxu0 %v421_v45  ;;  %v359_v26 = vld [vmem:[#allocation7 + $0x2a0] sm:$0xff]  ;;  %v365_v36 = vld [vmem:[#allocation7 + $0x2d0] sm:$0xff]  ;;  %v342_v45 = vld [vmem:[#allocation7 + $0x218] sm:$0xff] }
  0x4c   :  { %686 = vmatpush.msrb.mxu1 %v423_v46  ;;  %2616 = vmatmul.msk.f32.gmra.mxu0 %vm209_vm1, %v174_v48  ;;  %v347_v30 = vld [vmem:[#allocation7 + $0x240] sm:$0xff]  ;;  %v353_v40 = vld [vmem:[#allocation7 + $0x270] sm:$0xff]  ;;  %v458_v27 = vld [vmem:[#allocation7 + $0x5b8] sm:$0xff] }
  0x4d   :  { %2619 = vmatmul.msk.f32.gmra.mxu1 %vm209_vm1, %v174_v48  ;;  %607 = vmatpush.msrb.mxu0 %v409_v49  ;;  %v335_v34 = vld [vmem:[#allocation7 + $0x1e0] sm:$0xff]  ;;  %v341_v44 = vld [vmem:[#allocation7 + $0x210] sm:$0xff]  ;;  %v330_v49 = vld [vmem:[#allocation7 + $0x1b8] sm:$0xff] }
  0x4e   :  { %687 = vmatpush.msrb.mxu1 %v411_v50  ;;  %531 = vmatpush.msra.mxu2 %v359_v26  ;;  %v323_v38 = vld [vmem:[#allocation7 + $0x180] sm:$0xff]  ;;  %v329_v48 = vld [vmem:[#allocation7 + $0x1b0] sm:$0xff]  ;;  %v470_v26 = vld [vmem:[#allocation7 + $0x618] sm:$0xff] }
  0x4f   :  { %608 = vmatpush.msrb.mxu0 %v397_v53  ;;  %572 = vmatpush.msrb.mxu3 %v348_v39  ;;  %v311_v42 = vld [vmem:[#allocation7 + $0x120] sm:$0xff]  ;;  %v317_v52 = vld [vmem:[#allocation7 + $0x150] sm:$0xff]  ;;  %v318_v53 = vld [vmem:[#allocation7 + $0x158] sm:$0xff] }
  0x50   :  { %688 = vmatpush.msrb.mxu1 %v399_v54  ;;  %532 = vmatpush.msra.mxu2 %v347_v30  ;;  %v299_v46 = vld [vmem:[#allocation7 + $0xc0] sm:$0xff]  ;;  %v305_v56 = vld [vmem:[#allocation7 + $0xf0] sm:$0xff]  ;;  %v446_v30 = vld [vmem:[#allocation7 + $0x558] sm:$0xff] }
  0x51   :  { %609 = vmatpush.msrb.mxu0 %v385_v57  ;;  %573 = vmatpush.msrb.mxu3 %v336_v43  ;;  %v287_v50 = vld [vmem:[#allocation7 + $0x60] sm:$0xff]  ;;  %v306_v57 = vld [vmem:[#allocation7 + $0xf8] sm:$0xff]  ;;  %v293_v59 = vld [vmem:[#allocation7 + $0x90] sm:$0xff] }
  0x52   :  { %689 = vmatpush.msrb.mxu1 %v387_v58  ;;  %533 = vmatpush.msra.mxu2 %v335_v34  ;;  %v275_v54 = vld [vmem:[#allocation7] sm:$0xff]  ;;  %v288_v58 = vld [vmem:[#allocation7 + $0x68] sm:$0xff]  ;;  %v453_v31 = vld [vmem:[#allocation7 + $0x590] sm:$0xff] }
  0x53   :  { %610 = vmatpush.msrb.mxu0 %v373_v60  ;;  %574 = vmatpush.msrb.mxu3 %v324_v47  ;;  %v294_v60 = vld [vmem:[#allocation7 + $0x98] sm:$0xff]  ;;  %v441_v35 = vld [vmem:[#allocation7 + $0x530] sm:$0xff] }
  0x54   :  { %690 = vmatpush.msrb.mxu1 %v375_v61  ;;  %534 = vmatpush.msra.mxu2 %v323_v38  ;;  %v276_v61 = vld [vmem:[#allocation7 + $0x8] sm:$0xff]  ;;  %v434_v34 = vld [vmem:[#allocation7 + $0x4f8] sm:$0xff]  ;;  %v429_v39 = vld [vmem:[#allocation7 + $0x4d0] sm:$0xff] }
  0x55   :  { %611 = vmatpush.msrb.mxu0 %v361_v62  ;;  %575 = vmatpush.msrb.mxu3 %v312_v51  ;;  %v281_v62 = vld [vmem:[#allocation7 + $0x30] sm:$0xff]  ;;  %v422_v38 = vld [vmem:[#allocation7 + $0x498] sm:$0xff] }
  0x56   :  { %691 = vmatpush.msrb.mxu1 %v363_v63  ;;  %535 = vmatpush.msra.mxu2 %v311_v42  ;;  %v282_v63 = vld [vmem:[#allocation7 + $0x38] sm:$0xff]  ;;  %v460_v42 = vld [vmem:[#allocation7 + $0x5c8] sm:$0xff]  ;;  %v417_v43 = vld [vmem:[#allocation7 + $0x470] sm:$0xff] }
  0x57   :  { %612 = vmatpush.msrb.mxu0 %v349_v0  ;;  %576 = vmatpush.msrb.mxu3 %v300_v55  ;;  %v480_v0 = vld [vmem:[#allocation7 + $0x668] sm:$0xff]  ;;  %v405_v47 = vld [vmem:[#allocation7 + $0x410] sm:$0xff] }
  0x58   :  { %692 = vmatpush.msrb.mxu1 %v351_v1  ;;  %536 = vmatpush.msra.mxu2 %v299_v46  ;;  %v468_v1 = vld [vmem:[#allocation7 + $0x608] sm:$0xff]  ;;  %v393_v51 = vld [vmem:[#allocation7 + $0x3b0] sm:$0xff] }
  0x59   :  { %613 = vmatpush.msrb.mxu0 %v337_v2  ;;  %577 = vmatpush.msrb.mxu3 %v288_v58  ;;  %v203_v2 = vld [vmem:[#allocation5] sm:$0x3]  ;;  %v448_v46 = vld [vmem:[#allocation7 + $0x568] sm:$0xff]  ;;  %v381_v55 = vld [vmem:[#allocation7 + $0x350] sm:$0xff] }
  0x5a   :  { %693 = vmatpush.msrb.mxu1 %v339_v3  ;;  %537 = vmatpush.msra.mxu2 %v287_v50  ;;  %v436_v50 = vld [vmem:[#allocation7 + $0x508] sm:$0xff] }
  0x5b   :  { %614 = vmatpush.msrb.mxu0 %v325_v4  ;;  %578 = vmatpush.msrb.mxu3 %v276_v61  ;;  %v412_v58 = vld [vmem:[#allocation7 + $0x448] sm:$0xff]  ;;  %v350_v61 = vld [vmem:[#allocation7 + $0x258] sm:$0xff] }
  0x5c   :  { %694 = vmatpush.msrb.mxu1 %v327_v5  ;;  %538 = vmatpush.msra.mxu2 %v275_v54  ;;  %v205_v5 = vperm.slane %v203_v2, 0  ;;  %v424_v54 = vld [vmem:[#allocation7 + $0x4a8] sm:$0xff] }
  0x5d   :  { %615 = vmatpush.msrb.mxu0 %v313_v6  ;;  %v206_v6 = vperm.slane %v203_v2, 1  ;;  %v388_v2 = vld [vmem:[#allocation7 + $0x388] sm:$0xff] }
  0x5e   :  { %695 = vmatpush.msrb.mxu1 %v315_v7  ;;  %597 = vmatpush.msrb.mxu2 %v480_v0  ;;  %v358_v0 = vld [vmem:[#allocation7 + $0x298] sm:$0xff] }
  0x5f   :  { %616 = vmatpush.msrb.mxu0 %v301_v8 }
  0x60   :  { %696 = vmatpush.msrb.mxu1 %v303_v9  ;;  %598 = vmatpush.msrb.mxu2 %v468_v1  ;;  %v338_v1 = vld [vmem:[#allocation7 + $0x1f8] sm:$0xff] }
  0x61   :  { %617 = vmatpush.msrb.mxu0 %v289_v10 }
  0x62   :  { %697 = vmatpush.msrb.mxu1 %v291_v11 }
  0x63   :  { %618 = vmatpush.msrb.mxu0 %v277_v12 }
  0x64   :  { %698 = vmatpush.msrb.mxu1 %v279_v13 }
  0x65   :  { %763 = vmatpush.msra.mxu0 %v461_v14 }
  0x66   :  { %803 = vmatpush.msra.mxu1 %v462_v15 }
  0x67   :  { %764 = vmatpush.msra.mxu0 %v449_v16 }
  0x68   :  { %804 = vmatpush.msra.mxu1 %v450_v17 }
  0x69   :  { %765 = vmatpush.msra.mxu0 %v437_v18 }
  0x6a   :  { %805 = vmatpush.msra.mxu1 %v438_v19  ;;  %v481_v19 = vld [vmem:[#allocation7 + $0x670] sm:$0xff] }
  0x6b   :  { %766 = vmatpush.msra.mxu0 %v425_v20  ;;  %v488_v20 = vld [vmem:[#allocation7 + $0x6a8] sm:$0xff] }
  0x6c   :  { %806 = vmatpush.msra.mxu1 %v426_v21  ;;  %v489_v21 = vld [vmem:[#allocation7 + $0x6b0] sm:$0xff] }
  0x6d   :  { %767 = vmatpush.msra.mxu0 %v413_v22  ;;  %v482_v22 = vld [vmem:[#allocation7 + $0x678] sm:$0xff] }
  0x6e   :  { %807 = vmatpush.msra.mxu1 %v414_v23  ;;  %v469_v23 = vld [vmem:[#allocation7 + $0x610] sm:$0xff] }
  0x6f   :  { %768 = vmatpush.msra.mxu0 %v401_v24  ;;  %v476_v24 = vld [vmem:[#allocation7 + $0x648] sm:$0xff] }
  0x70   :  { %808 = vmatpush.msra.mxu1 %v402_v25  ;;  %v477_v25 = vld [vmem:[#allocation7 + $0x650] sm:$0xff] }
  0x71   :  { %769 = vmatpush.msra.mxu0 %v389_v28  ;;  %v465_v28 = vld [vmem:[#allocation7 + $0x5f0] sm:$0xff] }
  0x72   :  { %809 = vmatpush.msra.mxu1 %v390_v29  ;;  %v466_v29 = vld [vmem:[#allocation7 + $0x5f8] sm:$0xff] }
  0x73   :  { %770 = vmatpush.msra.mxu0 %v377_v32  ;;  %v483_v32 = vld [vmem:[#allocation7 + $0x680] sm:$0xff] }
  0x74   :  { %810 = vmatpush.msra.mxu1 %v378_v33  ;;  %v454_v33 = vld [vmem:[#allocation7 + $0x598] sm:$0xff] }
  0x75   :  { %771 = vmatpush.msra.mxu0 %v365_v36  ;;  %v471_v36 = vld [vmem:[#allocation7 + $0x620] sm:$0xff] }
  0x76   :  { %811 = vmatpush.msra.mxu1 %v366_v37  ;;  %v442_v37 = vld [vmem:[#allocation7 + $0x538] sm:$0xff] }
  0x77   :  { %772 = vmatpush.msra.mxu0 %v353_v40  ;;  %v430_v40 = vld [vmem:[#allocation7 + $0x4d8] sm:$0xff] }
  0x78   :  { %812 = vmatpush.msra.mxu1 %v354_v41  ;;  %v410_v41 = vld [vmem:[#allocation7 + $0x438] sm:$0xff] }
  0x79   :  { %773 = vmatpush.msra.mxu0 %v341_v44  ;;  %v398_v44 = vld [vmem:[#allocation7 + $0x3d8] sm:$0xff] }
  0x7a   :  { %813 = vmatpush.msra.mxu1 %v342_v45  ;;  %v418_v45 = vld [vmem:[#allocation7 + $0x478] sm:$0xff] }
  0x7b   :  { %774 = vmatpush.msra.mxu0 %v329_v48  ;;  %v386_v48 = vld [vmem:[#allocation7 + $0x378] sm:$0xff] }
  0x7c   :  { %814 = vmatpush.msra.mxu1 %v330_v49  ;;  %v406_v49 = vld [vmem:[#allocation7 + $0x418] sm:$0xff] }
  0x7d   :  { %775 = vmatpush.msra.mxu0 %v317_v52  ;;  %v374_v52 = vld [vmem:[#allocation7 + $0x318] sm:$0xff] }
  0x7e   :  { %815 = vmatpush.msra.mxu1 %v318_v53  ;;  %v394_v53 = vld [vmem:[#allocation7 + $0x3b8] sm:$0xff] }
  0x7f   :  { %776 = vmatpush.msra.mxu0 %v305_v56  ;;  %v362_v56 = vld [vmem:[#allocation7 + $0x2b8] sm:$0xff] }
  0x80   :  { %816 = vmatpush.msra.mxu1 %v306_v57  ;;  %v382_v57 = vld [vmem:[#allocation7 + $0x358] sm:$0xff] }
  0x81   :  { %777 = vmatpush.msra.mxu0 %v293_v59  ;;  %v369_v59 = vld [vmem:[#allocation7 + $0x2f0] sm:$0xff] }
  0x82   :  { %817 = vmatpush.msra.mxu1 %v294_v60  ;;  %v370_v60 = vld [vmem:[#allocation7 + $0x2f8] sm:$0xff] }
  0x83   :  { %778 = vmatpush.msra.mxu0 %v281_v62  ;;  %v400_v62 = vld [vmem:[#allocation7 + $0x3e8] sm:$0xff] }
  0x84   :  { %818 = vmatpush.msra.mxu1 %v282_v63  ;;  %v357_v63 = vld [vmem:[#allocation7 + $0x290] sm:$0xff] }
  0xc1   :  { %v240_v3 = vpop.f32.mrf.mxu0 }
  0xc2   :  { %v263_v4 = vpop.f32.mrf.mxu1  ;;  %v241_v7 = vadd.f32 %v240_v3, %v205_v5  ;;  %v345_v3 = vld [vmem:[#allocation7 + $0x230] sm:$0xff] }
  0xc3   :  { %v264_v8 = vadd.f32 %v263_v4, %v206_v6  ;;  %v346_v4 = vld [vmem:[#allocation7 + $0x238] sm:$0xff] }
  0xc4   :  { %v269_v13 = vmax.f32 %v241_v7, 0.0  ;;  %v333_v7 = vld [vmem:[#allocation7 + $0x1d0] sm:$0xff] }
  0xc5   :  { %v270_v14 = vmax.f32 %v264_v8, 0.0  ;;  %v334_v8 = vld [vmem:[#allocation7 + $0x1d8] sm:$0xff] }
  0xc9   :  { %v243_v9 = vpop.f32.mrf.mxu0 }
  0xca   :  { %v266_v10 = vpop.f32.mrf.mxu1  ;;  %v244_v11 = vadd.f32 %v243_v9, %v205_v5  ;;  %v326_v5 = vld [vmem:[#allocation7 + $0x198] sm:$0xff] }
  0xcb   :  { %v267_v12 = vadd.f32 %v266_v10, %v206_v6  ;;  %v376_v6 = vld [vmem:[#allocation7 + $0x328] sm:$0xff]  ;;  %v314_v9 = vld [vmem:[#allocation7 + $0x138] sm:$0xff] }
  0xcc   :  { %v271_v15 = vmax.f32 %v244_v11, 0.0  ;;  %v364_v10 = vld [vmem:[#allocation7 + $0x2c8] sm:$0xff]  ;;  %v321_v11 = vld [vmem:[#allocation7 + $0x170] sm:$0xff] }
  0xcd   :  { %v272_v16 = vmax.f32 %v267_v12, 0.0  ;;  %v322_v12 = vld [vmem:[#allocation7 + $0x178] sm:$0xff] }
  0xce   :  { %v3135_v17 = vmax.f32 %v269_v13, %v271_v15  ;;  %v302_v13 = vld [vmem:[#allocation7 + $0xd8] sm:$0xff]  ;;  %v309_v15 = vld [vmem:[#allocation7 + $0x110] sm:$0xff] }
  0xcf   :  { %v3137_v18 = vmax.f32 %v270_v14, %v272_v16  ;;  %v352_v14 = vld [vmem:[#allocation7 + $0x268] sm:$0xff]  ;;  %v310_v16 = vld [vmem:[#allocation7 + $0x118] sm:$0xff] }
  0xd0   :  { %539 = vmatmul.f32.vlgmr.msra.gmra.mxu2 %v3135_v17  ;;  %619 = vmatmul.f32.vlgmr.msrb.gmra.mxu0 %v3135_v17 }
  0xd1   :  { %2620 = vmatmul.msk.f32.vlgmr.msra.gmra.mxu3 %vm519_vm2, %v3137_v18  ;;  %699 = vmatmul.f32.vlgmr.msrb.gmra.mxu1 %v3135_v17 }
  0xd2   :  { %637 = vmatpush.msra.mxu3 %v481_v19  ;;  %917 = vmatpush.msrb.mxu0 %v488_v20  ;;  %v290_v19 = vld [vmem:[#allocation7 + $0x78] sm:$0xff]  ;;  %v340_v20 = vld [vmem:[#allocation7 + $0x208] sm:$0xff] }
  0xd3   :  { %957 = vmatpush.msrb.mxu1 %v489_v21  ;;  %677 = vmatpush.msra.mxu2 %v482_v22  ;;  %v297_v21 = vld [vmem:[#allocation7 + $0xb0] sm:$0xff]  ;;  %v298_v22 = vld [vmem:[#allocation7 + $0xb8] sm:$0xff] }
  0xd4   :  { %638 = vmatpush.msra.mxu3 %v469_v23  ;;  %918 = vmatpush.msrb.mxu0 %v476_v24  ;;  %v278_v23 = vld [vmem:[#allocation7 + $0x18] sm:$0xff]  ;;  %v328_v24 = vld [vmem:[#allocation7 + $0x1a8] sm:$0xff] }
  0xd5   :  { %958 = vmatpush.msrb.mxu1 %v477_v25  ;;  %678 = vmatpush.msra.mxu2 %v470_v26  ;;  %v285_v25 = vld [vmem:[#allocation7 + $0x50] sm:$0xff]  ;;  %v286_v26 = vld [vmem:[#allocation7 + $0x58] sm:$0xff] }
  0xd8   :  { %2621 = vmatmul.msk.f32.vlgmr.msrb.gmra.mxu2 %vm519_vm2, %v3137_v18  ;;  %779 = vmatmul.f32.vlgmr.msra.gmra.mxu0 %v3135_v17 }
  0xd9   :  { %579 = vmatmul.f32.vlgmr.msrb.gmra.mxu3 %v3135_v17  ;;  %819 = vmatmul.f32.vlgmr.msra.gmra.mxu1 %v3135_v17 }
  0xda   :  { %643 = vmatpush.msrb.mxu3 %v458_v27  ;;  %923 = vmatpush.msra.mxu0 %v465_v28  ;;  %v316_v27 = vld [vmem:[#allocation7 + $0x148] sm:$0xff]  ;;  %v485_v28 = vld [vmem:[#allocation7 + $0x690] sm:$0xff] }
  0xdb   :  { %963 = vmatpush.msra.mxu1 %v466_v29  ;;  %717 = vmatpush.msrb.mxu2 %v483_v32  ;;  %v304_v29 = vld [vmem:[#allocation7 + $0xe8] sm:$0xff] }
  0xdc   :  { %644 = vmatpush.msrb.mxu3 %v446_v30  ;;  %924 = vmatpush.msra.mxu0 %v453_v31  ;;  %v473_v30 = vld [vmem:[#allocation7 + $0x630] sm:$0xff]  ;;  %v486_v31 = vld [vmem:[#allocation7 + $0x698] sm:$0xff]  ;;  %v292_v32 = vld [vmem:[#allocation7 + $0x88] sm:$0xff] }
  0xdd   :  { %964 = vmatpush.msra.mxu1 %v454_v33  ;;  %718 = vmatpush.msrb.mxu2 %v471_v36  ;;  %v474_v33 = vld [vmem:[#allocation7 + $0x638] sm:$0xff]  ;;  %v484_v36 = vld [vmem:[#allocation7 + $0x688] sm:$0xff] }
  0xde   :  { %645 = vmatpush.msrb.mxu3 %v434_v34  ;;  %925 = vmatpush.msra.mxu0 %v441_v35  ;;  %v280_v34 = vld [vmem:[#allocation7 + $0x28] sm:$0xff]  ;;  %v463_v35 = vld [vmem:[#allocation7 + $0x5e0] sm:$0xff] }
  0xdf   :  { %965 = vmatpush.msra.mxu1 %v442_v37  ;;  %v451_v37 = vld [vmem:[#allocation7 + $0x580] sm:$0xff] }
  0xe0   :  { %646 = vmatpush.msrb.mxu3 %v422_v38  ;;  %926 = vmatpush.msra.mxu0 %v429_v39  ;;  %v472_v38 = vld [vmem:[#allocation7 + $0x628] sm:$0xff]  ;;  %v439_v39 = vld [vmem:[#allocation7 + $0x520] sm:$0xff] }
  0xe1   :  { %2622 = vmatmul.msk.f32.vlgmr.msra.gmra.mxu3 %vm519_vm2, %v3137_v18  ;;  %966 = vmatpush.msra.mxu1 %v430_v40  ;;  %v487_v40 = vld [vmem:[#allocation7 + $0x6a0] sm:$0xff] }
  0xe2   :  { %647 = vmatpush.msrb.mxu3 %v410_v41  ;;  %2623 = vmatmul.msk.f32.vlgmr.msra.gmra.mxu2 %vm519_vm2, %v3137_v18  ;;  %v427_v41 = vld [vmem:[#allocation7 + $0x4c0] sm:$0xff] }
  0xe3   :  { %2629 = vmatmul.msk.f32.vlgmr.msrb.gmra.mxu0 %vm519_vm2, %v3137_v18  ;;  %723 = vmatpush.msra.mxu2 %v460_v42  ;;  %v475_v42 = vld [vmem:[#allocation7 + $0x640] sm:$0xff] }
  0xe4   :  { %927 = vmatpush.msra.mxu0 %v417_v43  ;;  %2630 = vmatmul.msk.f32.vlgmr.msrb.gmra.mxu1 %vm519_vm2, %v3137_v18  ;;  %v415_v43 = vld [vmem:[#allocation7 + $0x460] sm:$0xff] }
  0xe5   :  { %648 = vmatpush.msrb.mxu3 %v398_v44  ;;  %967 = vmatpush.msra.mxu1 %v418_v45  ;;  %v464_v44 = vld [vmem:[#allocation7 + $0x5e8] sm:$0xff]  ;;  %v403_v45 = vld [vmem:[#allocation7 + $0x400] sm:$0xff] }
  0xe6   :  { %724 = vmatpush.msra.mxu2 %v448_v46  ;;  %928 = vmatpush.msra.mxu0 %v405_v47  ;;  %v452_v46 = vld [vmem:[#allocation7 + $0x588] sm:$0xff]  ;;  %v1109_v47 = vld [vmem:[#allocation10 + $0x2f0] sm:$0xff] }
  0xe7   :  { %649 = vmatpush.msrb.mxu3 %v386_v48  ;;  %968 = vmatpush.msra.mxu1 %v406_v49  ;;  %v1107_v48 = vld [vmem:[#allocation10 + $0x2e0] sm:$0xff]  ;;  %v391_v49 = vld [vmem:[#allocation7 + $0x3a0] sm:$0xff] }
  0xe8   :  { %725 = vmatpush.msra.mxu2 %v436_v50  ;;  %929 = vmatpush.msra.mxu0 %v393_v51  ;;  %v440_v50 = vld [vmem:[#allocation7 + $0x528] sm:$0xff]  ;;  %v1105_v51 = vld [vmem:[#allocation10 + $0x2d0] sm:$0xff] }
  0xe9   :  { %650 = vmatpush.msrb.mxu3 %v374_v52  ;;  %969 = vmatpush.msra.mxu1 %v394_v53  ;;  %v379_v52 = vld [vmem:[#allocation7 + $0x340] sm:$0xff]  ;;  %v428_v53 = vld [vmem:[#allocation7 + $0x4c8] sm:$0xff] }
  0xea   :  { %726 = vmatpush.msra.mxu2 %v424_v54  ;;  %930 = vmatpush.msra.mxu0 %v381_v55  ;;  %v1103_v54 = vld [vmem:[#allocation10 + $0x2c0] sm:$0xff]  ;;  %v367_v55 = vld [vmem:[#allocation7 + $0x2e0] sm:$0xff] }
  0xeb   :  { %651 = vmatpush.msrb.mxu3 %v362_v56  ;;  %970 = vmatpush.msra.mxu1 %v382_v57  ;;  %v416_v56 = vld [vmem:[#allocation7 + $0x468] sm:$0xff]  ;;  %v1101_v57 = vld [vmem:[#allocation10 + $0x2b0] sm:$0xff] }
  0xec   :  { %2624 = vmatmul.msk.f32.vlgmr.msrb.gmra.mxu2 %vm519_vm2, %v3137_v18  ;;  %931 = vmatpush.msra.mxu0 %v369_v59  ;;  %v404_v59 = vld [vmem:[#allocation7 + $0x408] sm:$0xff] }
  0xed   :  { %727 = vmatpush.msra.mxu2 %v412_v58  ;;  %971 = vmatpush.msra.mxu1 %v370_v60  ;;  %v355_v58 = vld [vmem:[#allocation7 + $0x280] sm:$0xff]  ;;  %v1099_v60 = vld [vmem:[#allocation10 + $0x2a0] sm:$0xff] }
  0xee   :  { %652 = vmatpush.msrb.mxu3 %v350_v61  ;;  %932 = vmatpush.msra.mxu0 %v357_v63  ;;  %v343_v61 = vld [vmem:[#allocation7 + $0x220] sm:$0xff] }
  0xef   :  { %728 = vmatpush.msra.mxu2 %v400_v62  ;;  %972 = vmatpush.msra.mxu1 %v358_v0  ;;  %v392_v62 = vld [vmem:[#allocation7 + $0x3a8] sm:$0xff]  ;;  %v1097_v63 = vld [vmem:[#allocation10 + $0x290] sm:$0xff] }
  0xf0   :  { %653 = vmatpush.msrb.mxu3 %v338_v1  ;;  %933 = vmatpush.msra.mxu0 %v345_v3  ;;  %v331_v0 = vld [vmem:[#allocation7 + $0x1c0] sm:$0xff]  ;;  %v380_v1 = vld [vmem:[#allocation7 + $0x348] sm:$0xff] }
  0xf1   :  { %729 = vmatpush.msra.mxu2 %v388_v2  ;;  %973 = vmatpush.msra.mxu1 %v346_v4  ;;  %v1095_v2 = vld [vmem:[#allocation10 + $0x280] sm:$0xff]  ;;  %v319_v3 = vld [vmem:[#allocation7 + $0x160] sm:$0xff] }
  0xf2   :  { %654 = vmatpush.msrb.mxu3 %v326_v5  ;;  %934 = vmatpush.msra.mxu0 %v333_v7  ;;  %v368_v4 = vld [vmem:[#allocation7 + $0x2e8] sm:$0xff]  ;;  %v1093_v5 = vld [vmem:[#allocation10 + $0x270] sm:$0xff] }
  0xf3   :  { %730 = vmatpush.msra.mxu2 %v376_v6  ;;  %974 = vmatpush.msra.mxu1 %v334_v8  ;;  %v307_v6 = vld [vmem:[#allocation7 + $0x100] sm:$0xff]  ;;  %v356_v7 = vld [vmem:[#allocation7 + $0x288] sm:$0xff] }
  0xf4   :  { %655 = vmatpush.msrb.mxu3 %v314_v9  ;;  %935 = vmatpush.msra.mxu0 %v321_v11  ;;  %v1091_v8 = vld [vmem:[#allocation10 + $0x260] sm:$0xff]  ;;  %v295_v9 = vld [vmem:[#allocation7 + $0xa0] sm:$0xff] }
  0xf5   :  { %731 = vmatpush.msra.mxu2 %v364_v10  ;;  %975 = vmatpush.msra.mxu1 %v322_v12  ;;  %v344_v10 = vld [vmem:[#allocation7 + $0x228] sm:$0xff]  ;;  %v1089_v11 = vld [vmem:[#allocation10 + $0x250] sm:$0xff] }
  0xf6   :  { %656 = vmatpush.msrb.mxu3 %v302_v13  ;;  %936 = vmatpush.msra.mxu0 %v309_v15  ;;  %v1141_v12 = vld [vmem:[#allocation10 + $0x3f0] sm:$0xff]  ;;  %v1139_v15 = vld [vmem:[#allocation10 + $0x3e0] sm:$0xff] }
  0xf7   :  { %732 = vmatpush.msra.mxu2 %v352_v14  ;;  %976 = vmatpush.msra.mxu1 %v310_v16  ;;  %v283_v13 = vld [vmem:[#allocation7 + $0x40] sm:$0xff]  ;;  %v332_v14 = vld [vmem:[#allocation7 + $0x1c8] sm:$0xff]  ;;  %v490_v16 = vld [vmem:[#allocation7 + $0x6b8] sm:$0xff] }
  0xf8   :  { %657 = vmatpush.msrb.mxu3 %v290_v19  ;;  %937 = vmatpush.msra.mxu0 %v297_v21  ;;  %v1087_v19 = vld [vmem:[#allocation10 + $0x240] sm:$0xff]  ;;  %v1137_v21 = vld [vmem:[#allocation10 + $0x3d0] sm:$0xff] }
  0xf9   :  { %733 = vmatpush.msra.mxu2 %v340_v20  ;;  %977 = vmatpush.msra.mxu1 %v298_v22  ;;  %v320_v20 = vld [vmem:[#allocation7 + $0x168] sm:$0xff]  ;;  %v478_v22 = vld [vmem:[#allocation7 + $0x658] sm:$0xff] }
  0xfa   :  { %658 = vmatpush.msrb.mxu3 %v278_v23  ;;  %938 = vmatpush.msra.mxu0 %v285_v25  ;;  %v1085_v23 = vld [vmem:[#allocation10 + $0x230] sm:$0xff] }
  0xfb   :  { %734 = vmatpush.msra.mxu2 %v328_v24  ;;  %978 = vmatpush.msra.mxu1 %v286_v26  ;;  %v308_v24 = vld [vmem:[#allocation7 + $0x108] sm:$0xff]  ;;  %v1045_v25 = vld [vmem:[#allocation10 + $0xf0] sm:$0xff] }
  0xfc   :  { %659 = vmatmul.f32.vlgmr.msrb.gmra.mxu3 %v3135_v17  ;;  %939 = vmatmul.f32.vlgmr.msra.gmra.mxu0 %v3135_v17  ;;  %v1083_v26 = vld [vmem:[#allocation10 + $0x220] sm:$0xff] }
  0xfd   :  { %979 = vmatmul.f32.vlgmr.msra.gmra.mxu1 %v3135_v17  ;;  %735 = vmatpush.msra.mxu2 %v316_v27  ;;  %v1135_v27 = vld [vmem:[#allocation10 + $0x3c0] sm:$0xff] }
  0xfe   :  { %797 = vmatpush.msra.mxu3 %v485_v28  ;;  %1445 = vmatpush.msrb.mxu0 %v1109_v47  ;;  %v296_v28 = vld [vmem:[#allocation7 + $0xa8] sm:$0xff]  ;;  %v1069_v47 = vld [vmem:[#allocation10 + $0x1b0] sm:$0xff] }
  0xff   :  { %736 = vmatpush.msra.mxu2 %v304_v29  ;;  %1465 = vmatpush.msrb.mxu1 %v1141_v12  ;;  %v1043_v29 = vld [vmem:[#allocation10 + $0xe0] sm:$0xff]  ;;  %v1053_v12 = vld [vmem:[#allocation10 + $0x130] sm:$0xff] }
 0x100   :  { %798 = vmatpush.msra.mxu3 %v473_v30  ;;  %1446 = vmatpush.msrb.mxu0 %v1107_v48  ;;  %v1081_v30 = vld [vmem:[#allocation10 + $0x210] sm:$0xff]  ;;  %v1127_v48 = vld [vmem:[#allocation10 + $0x380] sm:$0xff] }
 0x101   :  { %737 = vmatpush.msra.mxu2 %v292_v32  ;;  %1466 = vmatpush.msrb.mxu1 %v1139_v15  ;;  %v284_v32 = vld [vmem:[#allocation7 + $0x48] sm:$0xff] }
 0x102   :  { %837 = vmatpush.msrb.mxu3 %v486_v31  ;;  %1447 = vmatpush.msrb.mxu0 %v1105_v51  ;;  %v1133_v31 = vld [vmem:[#allocation10 + $0x3b0] sm:$0xff]  ;;  %v1067_v51 = vld [vmem:[#allocation10 + $0x1a0] sm:$0xff] }
 0x103   :  { %738 = vmatpush.msra.mxu2 %v280_v34  ;;  %1467 = vmatpush.msrb.mxu1 %v1137_v21  ;;  %v1077_v34 = vld [vmem:[#allocation10 + $0x1f0] sm:$0xff]  ;;  %v1015_v15 = vld [vmem:[#allocation10] sm:$0xff] }
 0x104   :  { %838 = vmatpush.msrb.mxu3 %v474_v33  ;;  %739 = vmatmul.f32.vlgmr.msra.gmra.mxu2 %v3135_v17  ;;  %v1041_v33 = vld [vmem:[#allocation10 + $0xd0] sm:$0xff]  ;;  %v1111_v21 = vld [vmem:[#allocation10 + $0x300] sm:$0xff] }
 0x105   :  { %2626 = vmatmul.msk.f32.vlgmr.msra.gmra.mxu3 %vm519_vm2, %v3137_v18  ;;  %757 = vmatpush.msrb.mxu2 %v484_v36  ;;  %v1039_v36 = vld [vmem:[#allocation10 + $0xc0] sm:$0xff] }
 0x106   :  { %843 = vmatpush.msra.mxu3 %v463_v35  ;;  %1448 = vmatpush.msrb.mxu0 %v1103_v54  ;;  %v1079_v35 = vld [vmem:[#allocation10 + $0x200] sm:$0xff] }
 0x107   :  { %758 = vmatpush.msrb.mxu2 %v472_v38  ;;  %1468 = vmatpush.msrb.mxu1 %v1135_v27  ;;  %v1075_v38 = vld [vmem:[#allocation10 + $0x1e0] sm:$0xff]  ;;  %v1169_v27 = vld [vmem:[#allocation10 + $0x4d0] sm:$0xff] }
 0x108   :  { %844 = vmatpush.msra.mxu3 %v451_v37  ;;  %1449 = vmatpush.msrb.mxu0 %v1101_v57  ;;  %v1237_v37 = vld [vmem:[#allocation10 + $0x6f0] sm:$0xff]  ;;  %v1027_v54 = vld [vmem:[#allocation10 + $0x60] sm:$0xff] }
 0x109   :  { %877 = vmatpush.msra.mxu2 %v487_v40  ;;  %1469 = vmatpush.msrb.mxu1 %v1133_v31  ;;  %v1235_v40 = vld [vmem:[#allocation10 + $0x6e0] sm:$0xff]  ;;  %v1025_v57 = vld [vmem:[#allocation10 + $0x50] sm:$0xff] }
 0x10a   :  { %845 = vmatpush.msra.mxu3 %v439_v39  ;;  %1450 = vmatpush.msrb.mxu0 %v1099_v60  ;;  %v1037_v39 = vld [vmem:[#allocation10 + $0xb0] sm:$0xff]  ;;  %v1167_v31 = vld [vmem:[#allocation10 + $0x4c0] sm:$0xff] }
 0x10b   :  { %878 = vmatpush.msra.mxu2 %v475_v42  ;;  %v1035_v42 = vld [vmem:[#allocation10 + $0xa0] sm:$0xff]  ;;  %v1061_v60 = vld [vmem:[#allocation10 + $0x170] sm:$0xff] }
 0x10c   :  { %846 = vmatpush.msra.mxu3 %v427_v41  ;;  %2625 = vmatmul.msk.f32.vlgmr.msrb.gmra.mxu2 %vm519_vm2, %v3137_v18  ;;  %v1073_v41 = vld [vmem:[#allocation10 + $0x1d0] sm:$0xff] }
 0x10d   :  { %2627 = vmatmul.msk.f32.vlgmr.msrb.gmra.mxu3 %vm519_vm2, %v3137_v18  ;;  %883 = vmatpush.msrb.mxu2 %v464_v44  ;;  %v1233_v44 = vld [vmem:[#allocation10 + $0x6d0] sm:$0xff] }
 0x10e   :  { %847 = vmatpush.msra.mxu3 %v415_v43  ;;  %1451 = vmatpush.msrb.mxu0 %v1097_v63  ;;  %v1131_v43 = vld [vmem:[#allocation10 + $0x3a0] sm:$0xff] }
 0x10f   :  { %884 = vmatpush.msrb.mxu2 %v452_v46  ;;  %v1033_v46 = vld [vmem:[#allocation10 + $0x90] sm:$0xff]  ;;  %1470 = vmatpush.msrb.mxu1 %v1131_v43  ;;  %v1023_v63 = vld [vmem:[#allocation10 + $0x40] sm:$0xff] }
 0x110   :  { %848 = vmatpush.msra.mxu3 %v403_v45  ;;  %1452 = vmatpush.msrb.mxu0 %v1095_v2  ;;  %v1071_v45 = vld [vmem:[#allocation10 + $0x1c0] sm:$0xff] }
 0x111   :  { %885 = vmatpush.msrb.mxu2 %v440_v50  ;;  %v1229_v50 = vld [vmem:[#allocation10 + $0x6b0] sm:$0xff]  ;;  %v1119_v2 = vld [vmem:[#allocation10 + $0x340] sm:$0xff] }
 0x112   :  { %849 = vmatpush.msra.mxu3 %v391_v49  ;;  %1453 = vmatpush.msrb.mxu0 %v1093_v5  ;;  %v1031_v49 = vld [vmem:[#allocation10 + $0x80] sm:$0xff]  ;;  %v1057_v5 = vld [vmem:[#allocation10 + $0x150] sm:$0xff] }
 0x113   :  { %886 = vmatpush.msrb.mxu2 %v428_v53  ;;  %v1065_v53 = vld [vmem:[#allocation10 + $0x190] sm:$0xff] }
 0x114   :  { %850 = vmatpush.msra.mxu3 %v379_v52  ;;  %2628 = vmatmul.msk.f32.vlgmr.msra.gmra.mxu2 %vm519_vm2, %v3137_v18  ;;  %v1029_v52 = vld [vmem:[#allocation10 + $0x70] sm:$0xff] }
 0x115   :  { %887 = vmatpush.msrb.mxu2 %v416_v56  ;;  %1454 = vmatpush.msrb.mxu0 %v1091_v8  ;;  %v1125_v56 = vld [vmem:[#allocation10 + $0x370] sm:$0xff] }
 0x116   :  { %851 = vmatpush.msra.mxu3 %v367_v55  ;;  %v1063_v55 = vld [vmem:[#allocation10 + $0x180] sm:$0xff]  ;;  %v1117_v8 = vld [vmem:[#allocation10 + $0x330] sm:$0xff] }
 0x117   :  { %888 = vmatpush.msrb.mxu2 %v404_v59  ;;  %1455 = vmatpush.msrb.mxu0 %v1089_v11  ;;  %v1123_v59 = vld [vmem:[#allocation10 + $0x360] sm:$0xff] }
 0x118   :  { %852 = vmatpush.msra.mxu3 %v355_v58  ;;  %v1227_v58 = vld [vmem:[#allocation10 + $0x6a0] sm:$0xff] }
 0x119   :  { %889 = vmatpush.msrb.mxu2 %v392_v62  ;;  %1456 = vmatpush.msrb.mxu0 %v1087_v19  ;;  %v1121_v62 = vld [vmem:[#allocation10 + $0x350] sm:$0xff]  ;;  %v1115_v11 = vld [vmem:[#allocation10 + $0x320] sm:$0xff] }
 0x11a   :  { %853 = vmatpush.msra.mxu3 %v343_v61  ;;  %v1225_v61 = vld [vmem:[#allocation10 + $0x690] sm:$0xff] }
 0x11b   :  { %890 = vmatpush.msrb.mxu2 %v380_v1  ;;  %1457 = vmatpush.msrb.mxu0 %v1085_v23  ;;  %v1059_v1 = vld [vmem:[#allocation10 + $0x160] sm:$0xff]  ;;  %v1173_v19 = vld [vmem:[#allocation10 + $0x4f0] sm:$0xff] }
 0x11c   :  { %854 = vmatpush.msra.mxu3 %v331_v0  ;;  %v1223_v0 = vld [vmem:[#allocation10 + $0x680] sm:$0xff] }
 0x11d   :  { %891 = vmatpush.msrb.mxu2 %v368_v4  ;;  %1458 = vmatpush.msrb.mxu0 %v1083_v26  ;;  %v1221_v4 = vld [vmem:[#allocation10 + $0x670] sm:$0xff]  ;;  %v1171_v23 = vld [vmem:[#allocation10 + $0x4e0] sm:$0xff] }
 0x11e   :  { %855 = vmatpush.msra.mxu3 %v319_v3  ;;  %v1021_v3 = vld [vmem:[#allocation10 + $0x30] sm:$0xff]  ;;  %v1211_v26 = vld [vmem:[#allocation10 + $0x620] sm:$0xff] }
 0x11f   :  { %892 = vmatpush.msrb.mxu2 %v356_v7  ;;  %1459 = vmatpush.msrb.mxu0 %v1081_v30  ;;  %v1055_v7 = vld [vmem:[#allocation10 + $0x140] sm:$0xff] }
 0x120   :  { %856 = vmatpush.msra.mxu3 %v307_v6  ;;  %v1019_v6 = vld [vmem:[#allocation10 + $0x20] sm:$0xff] }
 0x121   :  { %893 = vmatpush.msrb.mxu2 %v344_v10  ;;  %1460 = vmatpush.msrb.mxu0 %v1079_v35  ;;  %v1219_v10 = vld [vmem:[#allocation10 + $0x660] sm:$0xff]  ;;  %v1165_v35 = vld [vmem:[#allocation10 + $0x4b0] sm:$0xff] }
 0x122   :  { %857 = vmatpush.msra.mxu3 %v295_v9  ;;  %v1017_v9 = vld [vmem:[#allocation10 + $0x10] sm:$0xff]  ;;  %v1267_v30 = vld [vmem:[#allocation10 + $0x7e0] sm:$0xff] }
 0x123   :  { %894 = vmatpush.msrb.mxu2 %v332_v14  ;;  %1525 = vmatpush.msra.mxu0 %v1237_v37  ;;  %v1113_v14 = vld [vmem:[#allocation10 + $0x310] sm:$0xff] }
 0x124   :  { %858 = vmatpush.msra.mxu3 %v283_v13  ;;  %v1217_v13 = vld [vmem:[#allocation10 + $0x650] sm:$0xff] }
 0x125   :  { %859 = vmatmul.f32.vlgmr.msra.gmra.mxu3 %v3135_v17  ;;  %895 = vmatpush.msrb.mxu2 %v320_v20  ;;  %v1051_v20 = vld [vmem:[#allocation10 + $0x120] sm:$0xff]  ;;  %v1201_v37 = vld [vmem:[#allocation10 + $0x5d0] sm:$0xff] }
 0x126   :  { %997 = vmatpush.msrb.mxu3 %v490_v16  ;;  %1526 = vmatpush.msra.mxu0 %v1235_v40  ;;  %v1215_v16 = vld [vmem:[#allocation10 + $0x640] sm:$0xff]  ;;  %v3175_v40 = vld [vmem:[#allocation8] sm:$0xff] }
 0x127   :  { %896 = vmatpush.msrb.mxu2 %v308_v24  ;;  %v1049_v24 = vld [vmem:[#allocation10 + $0x110] sm:$0xff]  ;;  %v495_v43 = vperm.slane %v3175_v40, 0 }
 0x128   :  { %998 = vmatpush.msrb.mxu3 %v478_v22  ;;  %1527 = vmatpush.msra.mxu0 %v1233_v44  ;;  %v1213_v22 = vld [vmem:[#allocation10 + $0x630] sm:$0xff] }
 0x129   :  { %897 = vmatpush.msrb.mxu2 %v296_v28  ;;  %v1047_v28 = vld [vmem:[#allocation10 + $0x100] sm:$0xff]  ;;  %v1161_v44 = vld [vmem:[#allocation10 + $0x490] sm:$0xff] }
 0x12a   :  { %1405 = vmatpush.msra.mxu3 %v1045_v25  ;;  %v1269_v25 = vld [vmem:[#allocation10 + $0x7f0] sm:$0xff] }
 0x12b   :  { %898 = vmatpush.msrb.mxu2 %v284_v32  ;;  %v1209_v32 = vld [vmem:[#allocation10 + $0x610] sm:$0xff] }
 0x12c   :  { %1406 = vmatpush.msra.mxu3 %v1043_v29  ;;  %899 = vmatmul.f32.vlgmr.msrb.gmra.mxu2 %v3135_v17  ;;  %v1231_v17 = vld [vmem:[#allocation10 + $0x6c0] sm:$0xff]  ;;  %v1205_v29 = vld [vmem:[#allocation10 + $0x5f0] sm:$0xff] }
 0x12d   :  { %2631 = vmatmul.msk.f32.vlgmr.msrb.gmra.mxu3 %vm519_vm2, %v3137_v18  ;;  %1425 = vmatpush.msra.mxu2 %v1077_v34  ;;  %v1129_v18 = vld [vmem:[#allocation10 + $0x390] sm:$0xff] }
 0x12e   :  { %1407 = vmatpush.msra.mxu3 %v1041_v33  ;;  %1471 = vmatpush.msrb.mxu1 %v1129_v18  ;;  %v1203_v33 = vld [vmem:[#allocation10 + $0x5e0] sm:$0xff]  ;;  %v1265_v34 = vld [vmem:[#allocation10 + $0x7d0] sm:$0xff] }
 0x12f   :  { %1426 = vmatpush.msra.mxu2 %v1075_v38  ;;  %1528 = vmatpush.msra.mxu0 %v1231_v17  ;;  %v1263_v38 = vld [vmem:[#allocation10 + $0x7c0] sm:$0xff] }
 0x130   :  { %1408 = vmatpush.msra.mxu3 %v1039_v36  ;;  %1472 = vmatpush.msrb.mxu1 %v1127_v48  ;;  %v1207_v36 = vld [vmem:[#allocation10 + $0x600] sm:$0xff] }
 0x131   :  { %1427 = vmatpush.msra.mxu2 %v1073_v41  ;;  %1529 = vmatpush.msra.mxu0 %v1229_v50  ;;  %v1199_v41 = vld [vmem:[#allocation10 + $0x5c0] sm:$0xff] }
 0x132   :  { %1409 = vmatpush.msra.mxu3 %v1037_v39  ;;  %1473 = vmatpush.msrb.mxu1 %v1125_v56  ;;  %v1163_v39 = vld [vmem:[#allocation10 + $0x4a0] sm:$0xff] }
 0x133   :  { %1428 = vmatpush.msra.mxu2 %v1071_v45  ;;  %1530 = vmatpush.msra.mxu0 %v1227_v58  ;;  %v1197_v45 = vld [vmem:[#allocation10 + $0x5b0] sm:$0xff]  ;;  %v1259_v18 = vld [vmem:[#allocation10 + $0x7a0] sm:$0xff]  ;;  %v496_v58 = vperm.slane %v3175_v40, 1 }
 0x134   :  { %1410 = vmatpush.msra.mxu3 %v1035_v42  ;;  %1474 = vmatpush.msrb.mxu1 %v1123_v59  ;;  %v1261_v42 = vld [vmem:[#allocation10 + $0x7b0] sm:$0xff]  ;;  %v1195_v48 = vld [vmem:[#allocation10 + $0x5a0] sm:$0xff] }
 0x135   :  { %1429 = vmatpush.msra.mxu2 %v1069_v47  ;;  %1531 = vmatpush.msra.mxu0 %v1225_v61  ;;  %v1191_v56 = vld [vmem:[#allocation10 + $0x580] sm:$0xff]  ;;  %v1153_v59 = vld [vmem:[#allocation10 + $0x450] sm:$0xff] }
 0x136   :  { %1411 = vmatpush.msra.mxu3 %v1033_v46  ;;  %1475 = vmatpush.msrb.mxu1 %v1121_v62  ;;  %v1159_v46 = vld [vmem:[#allocation10 + $0x480] sm:$0xff]  ;;  %v1189_v61 = vld [vmem:[#allocation10 + $0x570] sm:$0xff] }
 0x137   :  { %1430 = vmatpush.msra.mxu2 %v1067_v51  ;;  %1532 = vmatpush.msra.mxu0 %v1223_v0  ;;  %v1157_v51 = vld [vmem:[#allocation10 + $0x470] sm:$0xff]  ;;  %v1151_v62 = vld [vmem:[#allocation10 + $0x440] sm:$0xff] }
 0x138   :  { %1412 = vmatpush.msra.mxu3 %v1031_v49  ;;  %1476 = vmatpush.msrb.mxu1 %v1119_v2  ;;  %v1257_v49 = vld [vmem:[#allocation10 + $0x790] sm:$0xff]  ;;  %v1187_v2 = vld [vmem:[#allocation10 + $0x560] sm:$0xff] }
 0x139   :  { %1431 = vmatpush.msra.mxu2 %v1065_v53  ;;  %1533 = vmatpush.msra.mxu0 %v1221_v4  ;;  %v1255_v53 = vld [vmem:[#allocation10 + $0x780] sm:$0xff]  ;;  %v1149_v4 = vld [vmem:[#allocation10 + $0x430] sm:$0xff] }
 0x13a   :  { %1413 = vmatpush.msra.mxu3 %v1029_v52  ;;  %1477 = vmatpush.msrb.mxu1 %v1117_v8  ;;  %v1193_v52 = vld [vmem:[#allocation10 + $0x590] sm:$0xff] }
 0x13b   :  { %1432 = vmatpush.msra.mxu2 %v1063_v55  ;;  %1534 = vmatpush.msra.mxu0 %v1219_v10  ;;  %v1155_v55 = vld [vmem:[#allocation10 + $0x460] sm:$0xff] }
 0x13c   :  { %1414 = vmatpush.msra.mxu3 %v1027_v54  ;;  %1478 = vmatpush.msrb.mxu1 %v1115_v11  ;;  %v1247_v10 = vld [vmem:[#allocation10 + $0x740] sm:$0xff] }
 0x13d   :  { %1433 = vmatpush.msra.mxu2 %v1061_v60  ;;  %1535 = vmatpush.msra.mxu0 %v1217_v13  ;;  %v1253_v60 = vld [vmem:[#allocation10 + $0x770] sm:$0xff] }
 0x13e   :  { %1415 = vmatpush.msra.mxu3 %v1025_v57  ;;  %1479 = vmatpush.msrb.mxu1 %v1113_v14  ;;  %v1145_v13 = vld [vmem:[#allocation10 + $0x410] sm:$0xff]  ;;  %v1183_v14 = vld [vmem:[#allocation10 + $0x540] sm:$0xff] }
 0x13f   :  { %1434 = vmatpush.msra.mxu2 %v1059_v1  ;;  %1536 = vmatpush.msra.mxu0 %v1215_v16 }
 0x140   :  { %1416 = vmatpush.msra.mxu3 %v1023_v63  ;;  %1480 = vmatpush.msrb.mxu1 %v1111_v21  ;;  %v1251_v63 = vld [vmem:[#allocation10 + $0x760] sm:$0xff] }
 0x141   :  { %1435 = vmatpush.msra.mxu2 %v1057_v5  ;;  %1537 = vmatpush.msra.mxu0 %v1213_v22  ;;  %v1249_v5 = vld [vmem:[#allocation10 + $0x750] sm:$0xff] }
 0x142   :  { %1417 = vmatpush.msra.mxu3 %v1021_v3  ;;  %1545 = vmatpush.msra.mxu1 %v1269_v25  ;;  %v1301_v22 = vld [vmem:[#allocation10 + $0x8f0] sm:$0xff]  ;;  %v1179_v25 = vld [vmem:[#allocation10 + $0x520] sm:$0xff] }
 0x143   :  { %1436 = vmatpush.msra.mxu2 %v1055_v7  ;;  %1538 = vmatpush.msra.mxu0 %v1211_v26  ;;  %v497_v7 = vperm.slane %v3175_v40, 2 }
 0x144   :  { %1418 = vmatpush.msra.mxu3 %v1019_v6  ;;  %1546 = vmatpush.msra.mxu1 %v1267_v30  ;;  %v1185_v6 = vld [vmem:[#allocation10 + $0x550] sm:$0xff] }
 0x145   :  { %1437 = vmatpush.msra.mxu2 %v1053_v12  ;;  %1539 = vmatpush.msra.mxu0 %v1209_v32  ;;  %v1177_v30 = vld [vmem:[#allocation10 + $0x510] sm:$0xff] }
 0x146   :  { %1419 = vmatpush.msra.mxu3 %v1017_v9  ;;  %1547 = vmatpush.msra.mxu1 %v1265_v34  ;;  %v1147_v9 = vld [vmem:[#allocation10 + $0x420] sm:$0xff]  ;;  %v1241_v32 = vld [vmem:[#allocation10 + $0x710] sm:$0xff] }
 0x147   :  { %1438 = vmatpush.msra.mxu2 %v1051_v20  ;;  %1540 = vmatpush.msra.mxu0 %v1207_v36  ;;  %v1181_v20 = vld [vmem:[#allocation10 + $0x530] sm:$0xff]  ;;  %v1175_v34 = vld [vmem:[#allocation10 + $0x500] sm:$0xff] }
 0x148   :  { %1420 = vmatpush.msra.mxu3 %v1015_v15  ;;  %1548 = vmatpush.msra.mxu1 %v1263_v38  ;;  %v1245_v15 = vld [vmem:[#allocation10 + $0x730] sm:$0xff]  ;;  %v1295_v36 = vld [vmem:[#allocation10 + $0x8c0] sm:$0xff] }
 0x149   :  { %1439 = vmatpush.msra.mxu2 %v1049_v24 }
 0x14a   :  { %1485 = vmatpush.msrb.mxu3 %v1173_v19  ;;  %1549 = vmatpush.msra.mxu1 %v1261_v42  ;;  %v1143_v19 = vld [vmem:[#allocation10 + $0x400] sm:$0xff]  ;;  %v1293_v42 = vld [vmem:[#allocation10 + $0x8b0] sm:$0xff] }
 0x14b   :  { %1440 = vmatpush.msra.mxu2 %v1047_v28 }
 0x14c   :  { %1486 = vmatpush.msrb.mxu3 %v1171_v23  ;;  %1550 = vmatpush.msra.mxu1 %v1259_v18  ;;  %v1243_v23 = vld [vmem:[#allocation10 + $0x720] sm:$0xff] }
 0x14d   :  { %1505 = vmatpush.msrb.mxu2 %v1205_v29  ;;  %v620_v11 = vpop.f32.mrf.mxu0  ;;  %v1365_v29 = vld [vmem:[#allocation10 + $0xaf0] sm:$0xff]  ;;  %v1291_v18 = vld [vmem:[#allocation10 + $0x8a0] sm:$0xff] }
 0x14e   :  { %1487 = vmatpush.msrb.mxu3 %v1169_v27  ;;  %1551 = vmatpush.msra.mxu1 %v1257_v49  ;;  %v621_v16 = vadd.f32 %v620_v11, %v497_v7  ;;  %v1299_v27 = vld [vmem:[#allocation10 + $0x8e0] sm:$0xff]  ;;  %v700_v38 = vpop.f32.mrf.mxu1  ;;  %v1289_v49 = vld [vmem:[#allocation10 + $0x890] sm:$0xff] }
 0x14f   :  { %1506 = vmatpush.msrb.mxu2 %v1203_v33  ;;  %v1363_v33 = vld [vmem:[#allocation10 + $0xae0] sm:$0xff]  ;;  %v1277_v7 = vld [vmem:[#allocation10 + $0x830] sm:$0xff] }
 0x150   :  { %1488 = vmatpush.msrb.mxu3 %v1167_v31  ;;  %1552 = vmatpush.msra.mxu1 %v1255_v53  ;;  %v1297_v31 = vld [vmem:[#allocation10 + $0x8d0] sm:$0xff]  ;;  %v1287_v53 = vld [vmem:[#allocation10 + $0x880] sm:$0xff] }
 0x151   :  { %1507 = vmatpush.msrb.mxu2 %v1201_v37  ;;  %v1333_v37 = vld [vmem:[#allocation10 + $0x9f0] sm:$0xff] }
 0x152   :  { %1489 = vmatpush.msrb.mxu3 %v1165_v35  ;;  %1553 = vmatpush.msra.mxu1 %v1253_v60  ;;  %v499_v35 = vperm.slane %v3175_v40, 4  ;;  %v1351_v60 = vld [vmem:[#allocation10 + $0xa80] sm:$0xff]  ;;  %v1313_v11 = vld [vmem:[#allocation10 + $0x950] sm:$0xff] }
 0x153   :  { %1508 = vmatpush.msrb.mxu2 %v1199_v41  ;;  %v540_v17 = vpop.f32.mrf.mxu2  ;;  %v1239_v41 = vld [vmem:[#allocation10 + $0x700] sm:$0xff] }
 0x154   :  { %1490 = vmatpush.msrb.mxu3 %v1163_v39  ;;  %v560_v47 = vpop.f32.mrf.mxu3  ;;  %v541_v50 = vadd.f32 %v540_v17, %v495_v43  ;;  %1554 = vmatpush.msra.mxu1 %v1251_v63  ;;  %v1361_v39 = vld [vmem:[#allocation10 + $0xad0] sm:$0xff]  ;;  %v1331_v43 = vld [vmem:[#allocation10 + $0x9e0] sm:$0xff] }
 0x155   :  { %1509 = vmatpush.msrb.mxu2 %v1197_v45  ;;  %v701_v45 = vadd.f32 %v700_v38, %v499_v35  ;;  %v1349_v63 = vld [vmem:[#allocation10 + $0xa70] sm:$0xff]  ;;  %v1307_v35 = vld [vmem:[#allocation10 + $0x920] sm:$0xff]  ;;  %v1044_v38 = vld [vmem:[#allocation10 + $0xe8] sm:$0xff] }
 0x156   :  { %1491 = vmatpush.msrb.mxu3 %v1161_v44  ;;  %v561_v54 = vadd.f32 %v560_v47, %v541_v50  ;;  %1555 = vmatpush.msra.mxu1 %v1249_v5  ;;  %v1359_v44 = vld [vmem:[#allocation10 + $0xac0] sm:$0xff]  ;;  %v1357_v47 = vld [vmem:[#allocation10 + $0xab0] sm:$0xff] }
 0x157   :  { %1510 = vmatpush.msrb.mxu2 %v1195_v48  ;;  %v1327_v50 = vld [vmem:[#allocation10 + $0x9c0] sm:$0xff]  ;;  %v1345_v5 = vld [vmem:[#allocation10 + $0xa50] sm:$0xff] }
 0x158   :  { %1492 = vmatpush.msrb.mxu3 %v1159_v46  ;;  %v3178_v57 = vmax.f32 %v561_v54, 0.0  ;;  %1556 = vmatpush.msra.mxu1 %v1247_v10  ;;  %v1329_v46 = vld [vmem:[#allocation10 + $0x9d0] sm:$0xff]  ;;  %v1275_v10 = vld [vmem:[#allocation10 + $0x820] sm:$0xff] }
 0x159   :  { %1511 = vmatpush.msrb.mxu2 %v1193_v52  ;;  %v1325_v54 = vld [vmem:[#allocation10 + $0x9b0] sm:$0xff] }
 0x15a   :  { %1493 = vmatpush.msrb.mxu3 %v1157_v51  ;;  %1557 = vmatpush.msra.mxu1 %v1245_v15  ;;  %v1355_v51 = vld [vmem:[#allocation10 + $0xaa0] sm:$0xff]  ;;  %v1341_v15 = vld [vmem:[#allocation10 + $0xa30] sm:$0xff] }
 0x15b   :  { %1421 = vmatmul.f32.vlgmr.msra.gmra.mxu3 %v3178_v57  ;;  %1512 = vmatpush.msrb.mxu2 %v1191_v56  ;;  %v600_v1 = vpop.f32.mrf.mxu2  ;;  %v1285_v56 = vld [vmem:[#allocation10 + $0x870] sm:$0xff] }
 0x15c   :  { %1494 = vmatpush.msrb.mxu3 %v1155_v55  ;;  %v580_v0 = vpop.f32.mrf.mxu3  ;;  %1558 = vmatpush.msra.mxu1 %v1243_v23  ;;  %v1353_v55 = vld [vmem:[#allocation10 + $0xa90] sm:$0xff] }
 0x15d   :  { %v581_v3 = vadd.f32 %v580_v0, %v496_v58  ;;  %1513 = vmatpush.msrb.mxu2 %v1189_v61  ;;  %v1323_v58 = vld [vmem:[#allocation10 + $0x9a0] sm:$0xff]  ;;  %v1281_v0 = vld [vmem:[#allocation10 + $0x850] sm:$0xff] }
 0x15e   :  { %1495 = vmatpush.msrb.mxu3 %v1153_v59  ;;  %1559 = vmatpush.msra.mxu1 %v1241_v32  ;;  %v780_v59 = vpop.f32.mrf.mxu0  ;;  %v1283_v61 = vld [vmem:[#allocation10 + $0x860] sm:$0xff]  ;;  %v1397_v32 = vld [vmem:[#allocation10 + $0xbf0] sm:$0xff] }
 0x15f   :  { %v601_v8 = vadd.f32 %v600_v1, %v581_v3  ;;  %1514 = vmatpush.msrb.mxu2 %v1187_v2  ;;  %v1319_v1 = vld [vmem:[#allocation10 + $0x980] sm:$0xff] }
 0x160   :  { %1496 = vmatpush.msrb.mxu3 %v1151_v62  ;;  %1560 = vmatpush.msra.mxu1 %v1239_v41  ;;  %v1321_v62 = vld [vmem:[#allocation10 + $0x990] sm:$0xff]  ;;  %v1347_v2 = vld [vmem:[#allocation10 + $0xa60] sm:$0xff] }
 0x161   :  { %v3183_v12 = vmax.f32 %v601_v8, 0.0  ;;  %1515 = vmatpush.msrb.mxu2 %v1185_v6  ;;  %v1279_v3 = vld [vmem:[#allocation10 + $0x840] sm:$0xff]  ;;  %v498_v6 = vperm.slane %v3175_v40, 3 }
 0x162   :  { %1497 = vmatpush.msrb.mxu3 %v1149_v4  ;;  %v1317_v4 = vld [vmem:[#allocation10 + $0x970] sm:$0xff]  ;;  %v1315_v8 = vld [vmem:[#allocation10 + $0x960] sm:$0xff] }
 0x163   :  { %1441 = vmatmul.f32.vlgmr.msra.gmra.mxu2 %v3183_v12 }
 0x164   :  { %1498 = vmatpush.msrb.mxu3 %v1147_v9  ;;  %v640_v21 = vpop.f32.mrf.mxu3  ;;  %1516 = vmatpush.msrb.mxu2 %v1183_v14  ;;  %v1343_v9 = vld [vmem:[#allocation10 + $0xa40] sm:$0xff] }
 0x165   :  { %v641_v24 = vadd.f32 %v640_v21, %v621_v16  ;;  %v3186_v26 = vpop.f32.mrf.mxu2  ;;  %v1339_v21 = vld [vmem:[#allocation10 + $0xa20] sm:$0xff] }
 0x166   :  { %1499 = vmatpush.msrb.mxu3 %v1145_v13  ;;  %1517 = vmatpush.msrb.mxu2 %v1181_v20  ;;  %v3196_v13 = vpop.f32.mrf.mxu0  ;;  %v1311_v20 = vld [vmem:[#allocation10 + $0x940] sm:$0xff] }
 0x167   :  { %v3188_v28 = vmax.f32 %v641_v24, 0.0  ;;  %v1271_v24 = vld [vmem:[#allocation10 + $0x800] sm:$0xff] }
 0x168   :  { %1500 = vmatpush.msrb.mxu3 %v1143_v19  ;;  %1518 = vmatpush.msrb.mxu2 %v1179_v25  ;;  %v1273_v19 = vld [vmem:[#allocation10 + $0x810] sm:$0xff] }
 0x169   :  { %1461 = vmatmul.f32.vlgmr.msrb.gmra.mxu0 %v3188_v28  ;;  %v1309_v25 = vld [vmem:[#allocation10 + $0x930] sm:$0xff] }
 0x16a   :  { %1565 = vmatpush.msra.mxu3 %v1301_v22  ;;  %1605 = vmatpush.msrb.mxu0 %v1365_v29  ;;  %v501_v22 = vperm.slane %v3175_v40, 6  ;;  %v3200_v29 = vld [vmem:[#allocation8 + $0x8] sm:$0xf] }
 0x16b   :  { %1519 = vmatpush.msrb.mxu2 %v1177_v30  ;;  %v1337_v30 = vld [vmem:[#allocation10 + $0xa10] sm:$0xff] }
 0x16c   :  { %1566 = vmatpush.msra.mxu3 %v1299_v27  ;;  %1606 = vmatpush.msrb.mxu0 %v1363_v33  ;;  %v820_v27 = vpop.f32.mrf.mxu1  ;;  %v1046_v33 = vld [vmem:[#allocation10 + $0xf8] sm:$0xff] }
 0x16d   :  { %1520 = vmatpush.msrb.mxu2 %v1175_v34  ;;  %v1335_v34 = vld [vmem:[#allocation10 + $0xa00] sm:$0xff] }
 0x16e   :  { %1567 = vmatpush.msra.mxu3 %v1297_v31  ;;  %1607 = vmatpush.msrb.mxu0 %v1361_v39 }
 0x16f   :  { %1585 = vmatpush.msra.mxu2 %v1333_v37  ;;  %v720_v17 = vpop.f32.mrf.mxu2  ;;  %v1395_v37 = vld [vmem:[#allocation10 + $0xbe0] sm:$0xff] }
 0x170   :  { %1568 = vmatpush.msra.mxu3 %v1295_v36  ;;  %v721_v48 = vadd.f32 %v720_v17, %v701_v45  ;;  %1608 = vmatpush.msrb.mxu0 %v1359_v44  ;;  %v781_v36 = vadd.f32 %v780_v59, %v501_v22  ;;  %v1393_v45 = vld [vmem:[#allocation10 + $0xbd0] sm:$0xff]  ;;  %v502_v17 = vperm.slane %v3175_v40, 7  ;;  %v1098_v22 = vld [vmem:[#allocation10 + $0x298] sm:$0xff] }
 0x171   :  { %1586 = vmatpush.msra.mxu2 %v1331_v43 }
 0x172   :  { %1569 = vmatpush.msra.mxu3 %v1293_v42  ;;  %v3192_v52 = vmax.f32 %v721_v48, 0.0  ;;  %1609 = vmatpush.msrb.mxu0 %v1357_v47  ;;  %v1305_v42 = vld [vmem:[#allocation10 + $0x910] sm:$0xff]  ;;  %v821_v59 = vadd.f32 %v820_v27, %v502_v17  ;;  %v1096_v27 = vld [vmem:[#allocation10 + $0x288] sm:$0xff]  ;;  %v1367_v17 = vld [vmem:[#allocation10 + $0xb00] sm:$0xff] }
 0x173   :  { %1587 = vmatpush.msra.mxu2 %v1329_v46  ;;  %v1303_v46 = vld [vmem:[#allocation10 + $0x900] sm:$0xff] }
 0x174   :  { %1570 = vmatpush.msra.mxu3 %v1291_v18  ;;  %1610 = vmatpush.msrb.mxu0 %v1355_v51  ;;  %v1042_v18 = vld [vmem:[#allocation10 + $0xd8] sm:$0xff]  ;;  %v500_v51 = vperm.slane %v3175_v40, 5 }
 0x175   :  { %1588 = vmatpush.msra.mxu2 %v1327_v50  ;;  %1501 = vmatmul.f32.vlgmr.msrb.gmra.mxu3 %v3192_v52  ;;  %v1110_v50 = vld [vmem:[#allocation10 + $0x2f8] sm:$0xff] }
 0x176   :  { %1571 = vmatpush.msra.mxu3 %v1289_v49  ;;  %1611 = vmatpush.msrb.mxu0 %v1353_v55  ;;  %v1391_v49 = vld [vmem:[#allocation10 + $0xbc0] sm:$0xff]  ;;  %v1108_v55 = vld [vmem:[#allocation10 + $0x2e8] sm:$0xff] }
 0x177   :  { %1589 = vmatpush.msra.mxu2 %v1325_v54  ;;  %v1389_v54 = vld [vmem:[#allocation10 + $0xbb0] sm:$0xff] }
 0x178   :  { %1572 = vmatpush.msra.mxu3 %v1287_v53  ;;  %1612 = vmatpush.msrb.mxu0 %v1351_v60  ;;  %v1040_v53 = vld [vmem:[#allocation10 + $0xc8] sm:$0xff] }
 0x179   :  { %1590 = vmatpush.msra.mxu2 %v1323_v58  ;;  %v940_v39 = vpop.f32.mrf.mxu0  ;;  %v1038_v58 = vld [vmem:[#allocation10 + $0xb8] sm:$0xff] }
 0x17a   :  { %1573 = vmatpush.msra.mxu3 %v1285_v56  ;;  %1613 = vmatpush.msrb.mxu0 %v1349_v63  ;;  %v960_v56 = vpop.f32.mrf.mxu1 }
 0x17b   :  { %1591 = vmatpush.msra.mxu2 %v1321_v62  ;;  %v1106_v62 = vld [vmem:[#allocation10 + $0x2d8] sm:$0xff] }
 0x17c   :  { %1574 = vmatpush.msra.mxu3 %v1283_v61  ;;  %1614 = vmatpush.msrb.mxu0 %v1347_v2  ;;  %v1387_v61 = vld [vmem:[#allocation10 + $0xba0] sm:$0xff] }
 0x17d   :  { %1592 = vmatpush.msra.mxu2 %v1319_v1 }
 0x17e   :  { %1575 = vmatpush.msra.mxu3 %v1281_v0  ;;  %1615 = vmatpush.msrb.mxu0 %v1345_v5  ;;  %v1036_v0 = vld [vmem:[#allocation10 + $0xa8] sm:$0xff] }
 0x17f   :  { %1593 = vmatpush.msra.mxu2 %v1317_v4  ;;  %v660_v14 = vpop.f32.mrf.mxu3  ;;  %v1104_v4 = vld [vmem:[#allocation10 + $0x2c8] sm:$0xff] }
 0x180   :  { %1576 = vmatpush.msra.mxu3 %v1279_v3  ;;  %v661_v16 = vadd.f32 %v660_v14, %v498_v6  ;;  %1616 = vmatpush.msrb.mxu0 %v1343_v9  ;;  %v1385_v3 = vld [vmem:[#allocation10 + $0xb90] sm:$0xff] }
 0x181   :  { %1594 = vmatpush.msra.mxu2 %v1315_v8  ;;  %v1383_v8 = vld [vmem:[#allocation10 + $0xb80] sm:$0xff]  ;;  %v1381_v14 = vld [vmem:[#allocation10 + $0xb70] sm:$0xff] }
 0x182   :  { %1577 = vmatpush.msra.mxu3 %v1277_v7  ;;  %v681_v23 = vadd.f32 %v3186_v26, %v661_v16  ;;  %1617 = vmatpush.msrb.mxu0 %v1341_v15  ;;  %v505_v26 = vperm.slane %v3200_v29, 2  ;;  %v1034_v15 = vld [vmem:[#allocation10 + $0x98] sm:$0xff]  ;;  %v1100_v16 = vld [vmem:[#allocation10 + $0x2a8] sm:$0xff] }
 0x183   :  { %1595 = vmatpush.msra.mxu2 %v1313_v11  ;;  %v1078_v11 = vld [vmem:[#allocation10 + $0x1f8] sm:$0xff] }
 0x184   :  { %1578 = vmatpush.msra.mxu3 %v1275_v10  ;;  %v3202_v31 = vmax.f32 %v681_v23, 0.0  ;;  %1618 = vmatpush.msrb.mxu0 %v1339_v21  ;;  %v941_v47 = vadd.f32 %v940_v39, %v505_v26  ;;  %v1102_v10 = vld [vmem:[#allocation10 + $0x2b8] sm:$0xff]  ;;  %v1032_v21 = vld [vmem:[#allocation10 + $0x88] sm:$0xff]  ;;  %v1371_v39 = vld [vmem:[#allocation10 + $0xb20] sm:$0xff] }
 0x185   :  { %1596 = vmatpush.msra.mxu2 %v1311_v20  ;;  %v1379_v20 = vld [vmem:[#allocation10 + $0xb60] sm:$0xff]  ;;  %v1074_v23 = vld [vmem:[#allocation10 + $0x1d8] sm:$0xff] }
 0x186   :  { %1579 = vmatpush.msra.mxu3 %v1273_v19  ;;  %1481 = vmatmul.f32.vlgmr.msrb.gmra.mxu1 %v3202_v31  ;;  %v961_v60 = vadd.f32 %v960_v56, %v941_v47  ;;  %v1076_v19 = vld [vmem:[#allocation10 + $0x1e8] sm:$0xff]  ;;  %v1026_v26 = vld [vmem:[#allocation10 + $0x58] sm:$0xff] }
 0x187   :  { %1597 = vmatpush.msra.mxu2 %v1309_v25  ;;  %1619 = vmatpush.msrb.mxu0 %v1337_v30  ;;  %v740_v43 = vpop.f32.mrf.mxu2  ;;  %v1030_v25 = vld [vmem:[#allocation10 + $0x78] sm:$0xff]  ;;  %v1072_v30 = vld [vmem:[#allocation10 + $0x1c8] sm:$0xff] }
 0x188   :  { %1580 = vmatpush.msra.mxu3 %v1271_v24  ;;  %1625 = vmatpush.msrb.mxu1 %v1397_v32  ;;  %v800_v41 = vpop.f32.mrf.mxu3  ;;  %v741_v63 = vadd.f32 %v740_v43, %v500_v51  ;;  %v3211_v6 = vmax.f32 %v961_v60, 0.0  ;;  %v1377_v24 = vld [vmem:[#allocation10 + $0xb50] sm:$0xff]  ;;  %v1375_v32 = vld [vmem:[#allocation10 + $0xb40] sm:$0xff]  ;;  %v1066_v43 = vld [vmem:[#allocation10 + $0x198] sm:$0xff]  ;;  %v503_v51 = vperm.slane %v3200_v29, 0 }
 0x189   :  { %v801_v44 = vadd.f32 %v800_v41, %v781_v36  ;;  %1620 = vmatpush.msrb.mxu0 %v1335_v34  ;;  %1598 = vmatpush.msra.mxu2 %v1307_v35  ;;  %v1094_v34 = vld [vmem:[#allocation10 + $0x278] sm:$0xff]  ;;  %v1373_v36 = vld [vmem:[#allocation10 + $0xb30] sm:$0xff]  ;;  %v1024_v41 = vld [vmem:[#allocation10 + $0x48] sm:$0xff] }
 0x18a   :  { %1645 = vmatpush.msrb.mxu3 %v1046_v33  ;;  %1626 = vmatpush.msrb.mxu1 %v1395_v37  ;;  %v1028_v33 = vld [vmem:[#allocation10 + $0x68] sm:$0xff]  ;;  %v1070_v35 = vld [vmem:[#allocation10 + $0x1b8] sm:$0xff] }
 0x18b   :  { %v3207_v48 = vmax.f32 %v801_v44, 0.0  ;;  %1599 = vmatpush.msra.mxu2 %v1305_v42  ;;  %v1092_v37 = vld [vmem:[#allocation10 + $0x268] sm:$0xff]  ;;  %v1090_v42 = vld [vmem:[#allocation10 + $0x258] sm:$0xff]  ;;  %v1369_v44 = vld [vmem:[#allocation10 + $0xb10] sm:$0xff] }
 0x18c   :  { %1646 = vmatpush.msrb.mxu3 %v1044_v38  ;;  %1627 = vmatpush.msrb.mxu1 %v1393_v45  ;;  %v1068_v38 = vld [vmem:[#allocation10 + $0x1a8] sm:$0xff]  ;;  %v1022_v45 = vld [vmem:[#allocation10 + $0x38] sm:$0xff] }
 0x18d   :  { %1541 = vmatmul.f32.vlgmr.msra.gmra.mxu0 %v3207_v48  ;;  %1600 = vmatpush.msra.mxu2 %v1303_v46  ;;  %v1064_v46 = vld [vmem:[#allocation10 + $0x188] sm:$0xff] }
 0x18e   :  { %1647 = vmatpush.msrb.mxu3 %v1042_v18  ;;  %1628 = vmatpush.msrb.mxu1 %v1391_v49  ;;  %v1088_v18 = vld [vmem:[#allocation10 + $0x248] sm:$0xff]  ;;  %v1086_v49 = vld [vmem:[#allocation10 + $0x238] sm:$0xff] }
 0x18f   :  { %1685 = vmatpush.msra.mxu0 %v1110_v50  ;;  %v760_v1 = vpop.f32.mrf.mxu2  ;;  %v1020_v47 = vld [vmem:[#allocation10 + $0x28] sm:$0xff]  ;;  %v1142_v50 = vld [vmem:[#allocation10 + $0x3f8] sm:$0xff] }
 0x190   :  { %1648 = vmatpush.msrb.mxu3 %v1040_v53  ;;  %1629 = vmatpush.msrb.mxu1 %v1389_v54  ;;  %v840_v40 = vpop.f32.mrf.mxu3  ;;  %v761_v5 = vadd.f32 %v760_v1, %v741_v63  ;;  %v1062_v53 = vld [vmem:[#allocation10 + $0x178] sm:$0xff]  ;;  %v1140_v56 = vld [vmem:[#allocation10 + $0x3e8] sm:$0xff] }
 0x191   :  { %1686 = vmatpush.msra.mxu0 %v1108_v55  ;;  %v841_v2 = vadd.f32 %v840_v40, %v821_v59  ;;  %v1018_v54 = vld [vmem:[#allocation10 + $0x18] sm:$0xff]  ;;  %v1084_v55 = vld [vmem:[#allocation10 + $0x228] sm:$0xff] }
 0x192   :  { %1649 = vmatpush.msrb.mxu3 %v1038_v58  ;;  %1630 = vmatpush.msrb.mxu1 %v1387_v61  ;;  %v3215_v9 = vmax.f32 %v761_v5, 0.0  ;;  %v1060_v58 = vld [vmem:[#allocation10 + $0x168] sm:$0xff]  ;;  %v1082_v61 = vld [vmem:[#allocation10 + $0x218] sm:$0xff] }
 0x193   :  { %1687 = vmatpush.msra.mxu0 %v1106_v62  ;;  %v3213_v7 = vmax.f32 %v841_v2, 0.0  ;;  %v1016_v59 = vld [vmem:[#allocation10 + $0x8] sm:$0xff]  ;;  %v1138_v62 = vld [vmem:[#allocation10 + $0x3d8] sm:$0xff] }
 0x194   :  { %1650 = vmatpush.msrb.mxu3 %v1036_v0  ;;  %1631 = vmatpush.msrb.mxu1 %v1385_v3  ;;  %v1058_v0 = vld [vmem:[#allocation10 + $0x158] sm:$0xff]  ;;  %v1080_v1 = vld [vmem:[#allocation10 + $0x208] sm:$0xff]  ;;  %v506_v3 = vperm.slane %v3200_v29, 3 }
 0x195   :  { %1688 = vmatpush.msra.mxu0 %v1104_v4  ;;  %1561 = vmatmul.f32.vlgmr.msra.gmra.mxu1 %v3213_v7  ;;  %v1136_v2 = vld [vmem:[#allocation10 + $0x3c8] sm:$0xff] }
 0x196   :  { %1621 = vmatmul.f32.vlgmr.msrb.gmra.mxu0 %v3211_v6  ;;  %1521 = vmatmul.f32.vlgmr.msrb.gmra.mxu2 %v3215_v9  ;;  %v1056_v5 = vld [vmem:[#allocation10 + $0x148] sm:$0xff] }
 0x197   :  { %1632 = vmatpush.msrb.mxu1 %v1383_v8  ;;  %1689 = vmatpush.msra.mxu0 %v1102_v10  ;;  %v880_v63 = vpop.f32.mrf.mxu2  ;;  %v980_v8 = vpop.f32.mrf.mxu1  ;;  %v1238_v10 = vld [vmem:[#allocation10 + $0x6f8] sm:$0xff] }
 0x198   :  { %1665 = vmatpush.msrb.mxu2 %v1078_v11  ;;  %1651 = vmatpush.msrb.mxu3 %v1034_v15  ;;  %v1174_v15 = vld [vmem:[#allocation10 + $0x4f8] sm:$0xff] }
 0x199   :  { %1633 = vmatpush.msrb.mxu1 %v1381_v14  ;;  %1690 = vmatpush.msra.mxu0 %v1100_v16  ;;  %v1134_v14 = vld [vmem:[#allocation10 + $0x3b8] sm:$0xff]  ;;  %v1236_v16 = vld [vmem:[#allocation10 + $0x6e8] sm:$0xff] }
 0x19a   :  { %1666 = vmatpush.msrb.mxu2 %v1076_v19  ;;  %1652 = vmatpush.msrb.mxu3 %v1032_v21  ;;  %v504_v19 = vperm.slane %v3200_v29, 1  ;;  %v981_v21 = vadd.f32 %v980_v8, %v506_v3  ;;  %v1232_v29 = vld [vmem:[#allocation10 + $0x6c8] sm:$0xff]  ;;  %v1114_v3 = vld [vmem:[#allocation10 + $0x318] sm:$0xff] }
 0x19b   :  { %1634 = vmatpush.msrb.mxu1 %v1379_v20  ;;  %1691 = vmatpush.msra.mxu0 %v1098_v22  ;;  %v1054_v20 = vld [vmem:[#allocation10 + $0x138] sm:$0xff]  ;;  %v1132_v22 = vld [vmem:[#allocation10 + $0x3a8] sm:$0xff] }
 0x19c   :  { %1667 = vmatpush.msrb.mxu2 %v1074_v23  ;;  %1653 = vmatpush.msrb.mxu3 %v1030_v25  ;;  %v1172_v23 = vld [vmem:[#allocation10 + $0x4e8] sm:$0xff]  ;;  %v1234_v25 = vld [vmem:[#allocation10 + $0x6d8] sm:$0xff] }
 0x19d   :  { %1635 = vmatpush.msrb.mxu1 %v1377_v24  ;;  %1692 = vmatpush.msra.mxu0 %v1096_v27  ;;  %v1052_v27 = vld [vmem:[#allocation10 + $0x128] sm:$0xff] }
 0x19e   :  { %1668 = vmatpush.msrb.mxu2 %v1072_v30  ;;  %1654 = vmatpush.msrb.mxu3 %v1028_v33  ;;  %v1130_v33 = vld [vmem:[#allocation10 + $0x398] sm:$0xff]  ;;  %v1216_v8 = vld [vmem:[#allocation10 + $0x648] sm:$0xff] }
 0x19f   :  { %1636 = vmatpush.msrb.mxu1 %v1375_v32  ;;  %1693 = vmatpush.msra.mxu0 %v1094_v34  ;;  %v1170_v34 = vld [vmem:[#allocation10 + $0x4d8] sm:$0xff] }
 0x1a0   :  { %1669 = vmatpush.msrb.mxu2 %v1070_v35  ;;  %1655 = vmatpush.msrb.mxu3 %v1026_v26 }
 0x1a1   :  { %1637 = vmatpush.msrb.mxu1 %v1373_v36  ;;  %1694 = vmatpush.msra.mxu0 %v1092_v37  ;;  %v1050_v36 = vld [vmem:[#allocation10 + $0x118] sm:$0xff]  ;;  %v1168_v37 = vld [vmem:[#allocation10 + $0x4c8] sm:$0xff] }
 0x1a2   :  { %1670 = vmatpush.msrb.mxu2 %v1068_v38  ;;  %1656 = vmatpush.msrb.mxu3 %v1024_v41  ;;  %v1230_v41 = vld [vmem:[#allocation10 + $0x6b8] sm:$0xff] }
 0x1a3   :  { %1638 = vmatpush.msrb.mxu1 %v1371_v39  ;;  %1695 = vmatpush.msra.mxu0 %v1090_v42  ;;  %v1128_v39 = vld [vmem:[#allocation10 + $0x388] sm:$0xff] }
 0x1a4   :  { %1671 = vmatpush.msrb.mxu2 %v1066_v43  ;;  %1657 = vmatpush.msrb.mxu3 %v1022_v45  ;;  %v1048_v42 = vld [vmem:[#allocation10 + $0x108] sm:$0xff]  ;;  %v1166_v45 = vld [vmem:[#allocation10 + $0x4b8] sm:$0xff] }
 0x1a5   :  { %1639 = vmatpush.msrb.mxu1 %v1369_v44  ;;  %1696 = vmatpush.msra.mxu0 %v1088_v18  ;;  %v1126_v44 = vld [vmem:[#allocation10 + $0x378] sm:$0xff] }
 0x1a6   :  { %1672 = vmatpush.msrb.mxu2 %v1064_v46  ;;  %1658 = vmatpush.msrb.mxu3 %v1020_v47  ;;  %v1206_v18 = vld [vmem:[#allocation10 + $0x5f8] sm:$0xff]  ;;  %v1124_v46 = vld [vmem:[#allocation10 + $0x368] sm:$0xff] }
 0x1a7   :  { %1640 = vmatpush.msrb.mxu1 %v1367_v17  ;;  %1697 = vmatpush.msra.mxu0 %v1086_v49  ;;  %v1164_v17 = vld [vmem:[#allocation10 + $0x4a8] sm:$0xff]  ;;  %v1226_v49 = vld [vmem:[#allocation10 + $0x698] sm:$0xff] }
 0x1a8   :  { %v860_v60 = vpop.f32.mrf.mxu3  ;;  %1673 = vmatpush.msrb.mxu2 %v1062_v53  ;;  %1659 = vmatpush.msrb.mxu3 %v1018_v54  ;;  %v1204_v47 = vld [vmem:[#allocation10 + $0x5e8] sm:$0xff]  ;;  %v1202_v53 = vld [vmem:[#allocation10 + $0x5d8] sm:$0xff] }
 0x1a9   :  { %1705 = vmatpush.msra.mxu1 %v1142_v50  ;;  %v861_v40 = vadd.f32 %v860_v60, %v503_v51  ;;  %1698 = vmatpush.msra.mxu0 %v1084_v55  ;;  %v1122_v50 = vld [vmem:[#allocation10 + $0x358] sm:$0xff]  ;;  %v1224_v54 = vld [vmem:[#allocation10 + $0x688] sm:$0xff] }
 0x1aa   :  { %1674 = vmatpush.msrb.mxu2 %v1060_v58  ;;  %1660 = vmatpush.msrb.mxu3 %v1016_v59  ;;  %v1162_v51 = vld [vmem:[#allocation10 + $0x498] sm:$0xff]  ;;  %v1120_v55 = vld [vmem:[#allocation10 + $0x348] sm:$0xff] }
 0x1ab   :  { %1706 = vmatpush.msra.mxu1 %v1140_v56  ;;  %v881_v4 = vadd.f32 %v880_v63, %v861_v40  ;;  %1699 = vmatpush.msra.mxu0 %v1082_v61  ;;  %v1160_v56 = vld [vmem:[#allocation10 + $0x488] sm:$0xff]  ;;  %v1222_v59 = vld [vmem:[#allocation10 + $0x678] sm:$0xff] }
 0x1ac   :  { %1675 = vmatpush.msrb.mxu2 %v1058_v0  ;;  %v1200_v58 = vld [vmem:[#allocation10 + $0x5c8] sm:$0xff]  ;;  %v1118_v60 = vld [vmem:[#allocation10 + $0x338] sm:$0xff] }
 0x1ad   :  { %1707 = vmatpush.msra.mxu1 %v1138_v62  ;;  %v3222_v11 = vmax.f32 %v881_v4, 0.0  ;;  %1700 = vmatpush.msra.mxu0 %v1080_v1  ;;  %v1158_v61 = vld [vmem:[#allocation10 + $0x478] sm:$0xff]  ;;  %v1220_v63 = vld [vmem:[#allocation10 + $0x668] sm:$0xff] }
 0x1ae   :  { %1701 = vmatmul.f32.vlgmr.msra.gmra.mxu0 %v3188_v28  ;;  %1676 = vmatpush.msrb.mxu2 %v1056_v5  ;;  %v1198_v62 = vld [vmem:[#allocation10 + $0x5b8] sm:$0xff]  ;;  %v1116_v40 = vld [vmem:[#allocation10 + $0x328] sm:$0xff] }
 0x1af   :  { %1708 = vmatpush.msra.mxu1 %v1136_v2  ;;  %1765 = vmatpush.msrb.mxu0 %v1238_v10  ;;  %v900_v30 = vpop.f32.mrf.mxu2  ;;  %v1156_v0 = vld [vmem:[#allocation10 + $0x468] sm:$0xff]  ;;  %v1218_v2 = vld [vmem:[#allocation10 + $0x658] sm:$0xff] }
 0x1b0   :  { %1581 = vmatmul.f32.vlgmr.msra.gmra.mxu3 %v3222_v11  ;;  %v1000_v24 = vpop.f32.mrf.mxu3  ;;  %1677 = vmatpush.msrb.mxu2 %v1054_v20  ;;  %v901_v35 = vadd.f32 %v900_v30, %v504_v19  ;;  %v1196_v1 = vld [vmem:[#allocation10 + $0x5a8] sm:$0xff]  ;;  %v1154_v4 = vld [vmem:[#allocation10 + $0x458] sm:$0xff] }
 0x1b1   :  { %1709 = vmatpush.msra.mxu1 %v1134_v14  ;;  %1725 = vmatpush.msra.mxu3 %v1174_v15  ;;  %v1001_v32 = vadd.f32 %v1000_v24, %v981_v21  ;;  %v1194_v5 = vld [vmem:[#allocation10 + $0x598] sm:$0xff]  ;;  %v1112_v10 = vld [vmem:[#allocation10 + $0x308] sm:$0xff] }
 0x1b2   :  { %1766 = vmatpush.msrb.mxu0 %v1236_v16  ;;  %1678 = vmatpush.msrb.mxu2 %v1052_v27  ;;  %v921_v38 = vadd.f32 %v3196_v13, %v901_v35  ;;  %v1228_v13 = vld [vmem:[#allocation10 + $0x6a8] sm:$0xff]  ;;  %v1214_v16 = vld [vmem:[#allocation10 + $0x638] sm:$0xff] }
 0x1b3   :  { %1710 = vmatpush.msra.mxu1 %v1132_v22  ;;  %1726 = vmatpush.msra.mxu3 %v1172_v23  ;;  %v3227_v26 = vmax.f32 %v1001_v32, 0.0  ;;  %v1152_v14 = vld [vmem:[#allocation10 + $0x448] sm:$0xff]  ;;  %v1150_v19 = vld [vmem:[#allocation10 + $0x438] sm:$0xff] }
 0x1b4   :  { %1767 = vmatpush.msrb.mxu0 %v1234_v25  ;;  %1679 = vmatpush.msrb.mxu2 %v1050_v36  ;;  %v3230_v43 = vmax.f32 %v921_v38, 0.0  ;;  %v1192_v15 = vld [vmem:[#allocation10 + $0x588] sm:$0xff]  ;;  %v1270_v20 = vld [vmem:[#allocation10 + $0x7f8] sm:$0xff] }
 0x1b5   :  { %1711 = vmatpush.msra.mxu1 %v1130_v33  ;;  %1727 = vmatpush.msra.mxu3 %v1170_v34  ;;  %v1190_v21 = vld [vmem:[#allocation10 + $0x578] sm:$0xff]  ;;  %v1212_v22 = vld [vmem:[#allocation10 + $0x628] sm:$0xff] }
 0x1b6   :  { %1768 = vmatpush.msrb.mxu0 %v1232_v29  ;;  %1641 = vmatmul.f32.vlgmr.msrb.gmra.mxu1 %v3227_v26  ;;  %v1148_v23 = vld [vmem:[#allocation10 + $0x428] sm:$0xff]  ;;  %v1210_v27 = vld [vmem:[#allocation10 + $0x618] sm:$0xff] }
 0x1b7   :  { %1728 = vmatpush.msra.mxu3 %v1168_v37  ;;  %1712 = vmatpush.msra.mxu1 %v1128_v39  ;;  %v1268_v24 = vld [vmem:[#allocation10 + $0x7e8] sm:$0xff]  ;;  %v1146_v30 = vld [vmem:[#allocation10 + $0x418] sm:$0xff] }
 0x1b8   :  { %1769 = vmatpush.msrb.mxu0 %v1230_v41  ;;  %1680 = vmatpush.msrb.mxu2 %v1048_v42  ;;  %v1188_v25 = vld [vmem:[#allocation10 + $0x568] sm:$0xff]  ;;  %v1266_v32 = vld [vmem:[#allocation10 + $0x7d8] sm:$0xff] }
 0x1b9   :  { %1661 = vmatmul.f32.vlgmr.msrb.gmra.mxu3 %v3178_v57  ;;  %1601 = vmatmul.f32.vlgmr.msra.gmra.mxu2 %v3230_v43  ;;  %v1186_v33 = vld [vmem:[#allocation10 + $0x558] sm:$0xff]  ;;  %v1208_v34 = vld [vmem:[#allocation10 + $0x608] sm:$0xff] }
 0x1ba   :  { %1713 = vmatpush.msra.mxu1 %v1126_v44  ;;  %1729 = vmatpush.msra.mxu3 %v1166_v45  ;;  %v1144_v35 = vld [vmem:[#allocation10 + $0x408] sm:$0xff]  ;;  %v1366_v36 = vld [vmem:[#allocation10 + $0xaf8] sm:$0xff] }
 0x1bb   :  { %1745 = vmatpush.msra.mxu2 %v1206_v18  ;;  %1770 = vmatpush.msrb.mxu0 %v1228_v13  ;;  %v1264_v29 = vld [vmem:[#allocation10 + $0x7c8] sm:$0xff]  ;;  %v1262_v38 = vld [vmem:[#allocation10 + $0x7b8] sm:$0xff] }
 0x1bc   :  { %1714 = vmatpush.msra.mxu1 %v1124_v46  ;;  %1730 = vmatpush.msra.mxu3 %v1164_v17  ;;  %v1184_v37 = vld [vmem:[#allocation10 + $0x548] sm:$0xff]  ;;  %v1302_v39 = vld [vmem:[#allocation10 + $0x8f8] sm:$0xff] }
 0x1bd   :  { %1746 = vmatpush.msra.mxu2 %v1204_v47  ;;  %1771 = vmatpush.msrb.mxu0 %v1226_v49  ;;  %v1364_v41 = vld [vmem:[#allocation10 + $0xae8] sm:$0xff]  ;;  %v1182_v42 = vld [vmem:[#allocation10 + $0x538] sm:$0xff] }
 0x1be   :  { %1715 = vmatpush.msra.mxu1 %v1122_v50  ;;  %1731 = vmatpush.msra.mxu3 %v1162_v51  ;;  %v1260_v44 = vld [vmem:[#allocation10 + $0x7a8] sm:$0xff]  ;;  %v1362_v18 = vld [vmem:[#allocation10 + $0xad8] sm:$0xff] }
 0x1bf   :  { %1747 = vmatpush.msra.mxu2 %v1202_v53  ;;  %1772 = vmatpush.msrb.mxu0 %v1224_v54  ;;  %v1300_v45 = vld [vmem:[#allocation10 + $0x8e8] sm:$0xff]  ;;  %v1258_v46 = vld [vmem:[#allocation10 + $0x798] sm:$0xff] }
 0x1c0   :  { %1716 = vmatpush.msra.mxu1 %v1120_v55  ;;  %1732 = vmatpush.msra.mxu3 %v1160_v56  ;;  %v1180_v13 = vld [vmem:[#allocation10 + $0x528] sm:$0xff]  ;;  %v1298_v17 = vld [vmem:[#allocation10 + $0x8d8] sm:$0xff] }
 0x1c1   :  { %1748 = vmatpush.msra.mxu2 %v1200_v58  ;;  %1773 = vmatpush.msrb.mxu0 %v1222_v59  ;;  %v1360_v47 = vld [vmem:[#allocation10 + $0xac8] sm:$0xff]  ;;  %v1178_v49 = vld [vmem:[#allocation10 + $0x518] sm:$0xff] }
 0x1c2   :  { %1681 = vmatmul.f32.vlgmr.msrb.gmra.mxu2 %v3183_v12  ;;  %1717 = vmatpush.msra.mxu1 %v1118_v60  ;;  %v1256_v50 = vld [vmem:[#allocation10 + $0x788] sm:$0xff]  ;;  %v1358_v53 = vld [vmem:[#allocation10 + $0xab8] sm:$0xff] }
 0x1c3   :  { %1733 = vmatpush.msra.mxu3 %v1158_v61  ;;  %1749 = vmatpush.msra.mxu2 %v1198_v62  ;;  %v1296_v51 = vld [vmem:[#allocation10 + $0x8c8] sm:$0xff]  ;;  %v1254_v55 = vld [vmem:[#allocation10 + $0x778] sm:$0xff] }
 0x1c4   :  { %1774 = vmatpush.msrb.mxu0 %v1220_v63  ;;  %1718 = vmatpush.msra.mxu1 %v1116_v40  ;;  %v1176_v54 = vld [vmem:[#allocation10 + $0x508] sm:$0xff]  ;;  %v1294_v56 = vld [vmem:[#allocation10 + $0x8b8] sm:$0xff] }
 0x1c5   :  { %1734 = vmatpush.msra.mxu3 %v1156_v0  ;;  %1750 = vmatpush.msra.mxu2 %v1196_v1  ;;  %v1334_v58 = vld [vmem:[#allocation10 + $0x9f8] sm:$0xff]  ;;  %v1356_v59 = vld [vmem:[#allocation10 + $0xaa8] sm:$0xff] }
 0x1c6   :  { %1775 = vmatpush.msrb.mxu0 %v1218_v2  ;;  %1719 = vmatpush.msra.mxu1 %v1114_v3  ;;  %v1252_v60 = vld [vmem:[#allocation10 + $0x768] sm:$0xff]  ;;  %v1354_v63 = vld [vmem:[#allocation10 + $0xa98] sm:$0xff] }
 0x1c7   :  { %1735 = vmatpush.msra.mxu3 %v1154_v4  ;;  %1751 = vmatpush.msra.mxu2 %v1194_v5  ;;  %v1292_v61 = vld [vmem:[#allocation10 + $0x8a8] sm:$0xff]  ;;  %v1250_v40 = vld [vmem:[#allocation10 + $0x758] sm:$0xff] }
 0x1c8   :  { %1776 = vmatpush.msrb.mxu0 %v1216_v8  ;;  %1720 = vmatpush.msra.mxu1 %v1112_v10  ;;  %v1332_v62 = vld [vmem:[#allocation10 + $0x9e8] sm:$0xff]  ;;  %v1290_v0 = vld [vmem:[#allocation10 + $0x898] sm:$0xff] }
 0x1c9   :  { %1736 = vmatpush.msra.mxu3 %v1152_v14  ;;  %1752 = vmatpush.msra.mxu2 %v1192_v15  ;;  %v1330_v1 = vld [vmem:[#allocation10 + $0x9d8] sm:$0xff]  ;;  %v1352_v2 = vld [vmem:[#allocation10 + $0xa88] sm:$0xff] }
 0x1ca   :  { %1777 = vmatpush.msrb.mxu0 %v1214_v16  ;;  %1721 = vmatmul.f32.vlgmr.msra.gmra.mxu1 %v3202_v31  ;;  %v1248_v3 = vld [vmem:[#allocation10 + $0x748] sm:$0xff]  ;;  %v1350_v8 = vld [vmem:[#allocation10 + $0xa78] sm:$0xff] }
 0x1cb   :  { %1737 = vmatpush.msra.mxu3 %v1150_v19  ;;  %1785 = vmatpush.msrb.mxu1 %v1270_v20  ;;  %v1288_v4 = vld [vmem:[#allocation10 + $0x888] sm:$0xff]  ;;  %v1246_v10 = vld [vmem:[#allocation10 + $0x738] sm:$0xff] }
 0x1cc   :  { %1753 = vmatpush.msra.mxu2 %v1190_v21  ;;  %1778 = vmatpush.msrb.mxu0 %v1212_v22  ;;  %v1328_v5 = vld [vmem:[#allocation10 + $0x9c8] sm:$0xff]  ;;  %v1286_v14 = vld [vmem:[#allocation10 + $0x878] sm:$0xff] }
 0x1cd   :  { %1738 = vmatpush.msra.mxu3 %v1148_v23  ;;  %1786 = vmatpush.msrb.mxu1 %v1268_v24  ;;  %v1326_v15 = vld [vmem:[#allocation10 + $0x9b8] sm:$0xff]  ;;  %v1348_v16 = vld [vmem:[#allocation10 + $0xa68] sm:$0xff] }
 0x1ce   :  { %1754 = vmatpush.msra.mxu2 %v1188_v25  ;;  %1779 = vmatpush.msrb.mxu0 %v1210_v27  ;;  %v1244_v19 = vld [vmem:[#allocation10 + $0x728] sm:$0xff]  ;;  %v1346_v22 = vld [vmem:[#allocation10 + $0xa58] sm:$0xff] }
 0x1cf   :  { %1739 = vmatpush.msra.mxu3 %v1146_v30  ;;  %1787 = vmatpush.msrb.mxu1 %v1266_v32  ;;  %v1284_v20 = vld [vmem:[#allocation10 + $0x868] sm:$0xff]  ;;  %v1242_v23 = vld [vmem:[#allocation10 + $0x718] sm:$0xff] }
 0x1d0   :  { %1755 = vmatpush.msra.mxu2 %v1186_v33  ;;  %1780 = vmatpush.msrb.mxu0 %v1208_v34  ;;  %v1324_v21 = vld [vmem:[#allocation10 + $0x9a8] sm:$0xff]  ;;  %v1282_v24 = vld [vmem:[#allocation10 + $0x858] sm:$0xff] }
 0x1d1   :  { %1740 = vmatpush.msra.mxu3 %v1144_v35  ;;  %1781 = vmatmul.f32.vlgmr.msrb.gmra.mxu0 %v3207_v48  ;;  %v1322_v25 = vld [vmem:[#allocation10 + $0x998] sm:$0xff]  ;;  %v1344_v27 = vld [vmem:[#allocation10 + $0xa48] sm:$0xff] }
 0x1d2   :  { %1788 = vmatpush.msrb.mxu1 %v1264_v29  ;;  %1845 = vmatpush.msra.mxu0 %v1366_v36  ;;  %v1240_v30 = vld [vmem:[#allocation10 + $0x708] sm:$0xff]  ;;  %v1342_v34 = vld [vmem:[#allocation10 + $0xa38] sm:$0xff] }
 0x1d3   :  { %1756 = vmatpush.msra.mxu2 %v1184_v37  ;;  %1741 = vmatmul.f32.vlgmr.msra.gmra.mxu3 %v3192_v52  ;;  %v1280_v32 = vld [vmem:[#allocation10 + $0x848] sm:$0xff]  ;;  %v1278_v35 = vld [vmem:[#allocation10 + $0x838] sm:$0xff] }
 0x1d4   :  { %1789 = vmatpush.msrb.mxu1 %v1262_v38  ;;  %1805 = vmatpush.msrb.mxu3 %v1302_v39  ;;  %v1320_v33 = vld [vmem:[#allocation10 + $0x988] sm:$0xff]  ;;  %v1398_v29 = vld [vmem:[#allocation10 + $0xbf8] sm:$0xff] }
 0x1d5   :  { %1846 = vmatpush.msra.mxu0 %v1364_v41  ;;  %1757 = vmatpush.msra.mxu2 %v1182_v42  ;;  %v1318_v36 = vld [vmem:[#allocation10 + $0x978] sm:$0xff]  ;;  %v1340_v37 = vld [vmem:[#allocation10 + $0xa28] sm:$0xff] }
 0x1d6   :  { %1790 = vmatpush.msrb.mxu1 %v1260_v44  ;;  %1806 = vmatpush.msrb.mxu3 %v1300_v45  ;;  %v1276_v38 = vld [vmem:[#allocation10 + $0x828] sm:$0xff]  ;;  %v1338_v42 = vld [vmem:[#allocation10 + $0xa18] sm:$0xff] }
 0x1d7   :  { %1847 = vmatpush.msra.mxu0 %v1362_v18  ;;  %1758 = vmatpush.msra.mxu2 %v1180_v13  ;;  %v1396_v39 = vld [vmem:[#allocation10 + $0xbe8] sm:$0xff]  ;;  %v1274_v44 = vld [vmem:[#allocation10 + $0x818] sm:$0xff] }
 0x1d8   :  { %1791 = vmatpush.msrb.mxu1 %v1258_v46  ;;  %1807 = vmatpush.msrb.mxu3 %v1298_v17  ;;  %v1316_v41 = vld [vmem:[#allocation10 + $0x968] sm:$0xff]  ;;  %v1394_v45 = vld [vmem:[#allocation10 + $0xbd8] sm:$0xff] }
 0x1d9   :  { %1848 = vmatpush.msra.mxu0 %v1360_v47  ;;  %1759 = vmatpush.msra.mxu2 %v1178_v49  ;;  %v1314_v18 = vld [vmem:[#allocation10 + $0x958] sm:$0xff]  ;;  %v1336_v13 = vld [vmem:[#allocation10 + $0xa08] sm:$0xff] }
 0x1da   :  { %1792 = vmatpush.msrb.mxu1 %v1256_v50  ;;  %1808 = vmatpush.msrb.mxu3 %v1296_v51  ;;  %v1272_v46 = vld [vmem:[#allocation10 + $0x808] sm:$0xff]  ;;  %v1390_v49 = vld [vmem:[#allocation10 + $0xbb8] sm:$0xff] }
 0x1db   :  { %1849 = vmatpush.msra.mxu0 %v1358_v53  ;;  %1760 = vmatpush.msra.mxu2 %v1176_v54  ;;  %v1392_v17 = vld [vmem:[#allocation10 + $0xbc8] sm:$0xff]  ;;  %v1902_v50 = vld [vmem:[%s4064_s7 + $0x78] sm:$0xff]  ;;  %v1901_v54 = vld [vmem:[%s4064_s7 + $0x70] sm:$0xff] }
 0x1dc   :  { %1793 = vmatpush.msrb.mxu1 %v1254_v55  ;;  %1761 = vmatmul.f32.vlgmr.msra.gmra.mxu2 %v3215_v9  ;;  %v1312_v47 = vld [vmem:[#allocation10 + $0x948] sm:$0xff]  ;;  %v1310_v51 = vld [vmem:[#allocation10 + $0x938] sm:$0xff] }
 0x1dd   :  { %1809 = vmatpush.msrb.mxu3 %v1294_v56  ;;  %1825 = vmatpush.msrb.mxu2 %v1334_v58  ;;  %v1388_v53 = vld [vmem:[#allocation10 + $0xba8] sm:$0xff]  ;;  %v1386_v56 = vld [vmem:[#allocation10 + $0xb98] sm:$0xff] }
 0x1de   :  { %1850 = vmatpush.msra.mxu0 %v1356_v59  ;;  %1794 = vmatpush.msrb.mxu1 %v1252_v60  ;;  %v1308_v55 = vld [vmem:[#allocation10 + $0x928] sm:$0xff]  ;;  %v1306_v59 = vld [vmem:[#allocation10 + $0x918] sm:$0xff] }
 0x1df   :  { %1810 = vmatpush.msrb.mxu3 %v1292_v61  ;;  %1826 = vmatpush.msrb.mxu2 %v1332_v62  ;;  %v1900_v58 = vld [vmem:[%s4064_s7 + $0x68] sm:$0xff]  ;;  %v1899_v61 = vld [vmem:[%s4064_s7 + $0x60] sm:$0xff] }
 0x1e0   :  { %1851 = vmatpush.msra.mxu0 %v1354_v63  ;;  %1795 = vmatpush.msrb.mxu1 %v1250_v40  ;;  %v1384_v60 = vld [vmem:[#allocation10 + $0xb88] sm:$0xff]  ;;  %v1382_v63 = vld [vmem:[#allocation10 + $0xb78] sm:$0xff] }
 0x1e1   :  { %1811 = vmatpush.msrb.mxu3 %v1290_v0  ;;  %1827 = vmatpush.msrb.mxu2 %v1330_v1  ;;  %v1304_v62 = vld [vmem:[#allocation10 + $0x908] sm:$0xff]  ;;  %v1898_v40 = vld [vmem:[%s4064_s7 + $0x58] sm:$0xff]  ;;  %v1897_v1 = vld [vmem:[%s4064_s7 + $0x50] sm:$0xff] }
 0x1e2   :  { %1852 = vmatpush.msra.mxu0 %v1352_v2  ;;  %1796 = vmatpush.msrb.mxu1 %v1248_v3  ;;  %v1380_v0 = vld [vmem:[#allocation10 + $0xb68] sm:$0xff]  ;;  %v1378_v2 = vld [vmem:[#allocation10 + $0xb58] sm:$0xff] }
 0x1e3   :  { %1812 = vmatpush.msrb.mxu3 %v1288_v4  ;;  %1828 = vmatpush.msrb.mxu2 %v1328_v5  ;;  %v1896_v3 = vld [vmem:[%s4064_s7 + $0x48] sm:$0xff]  ;;  %v1895_v5 = vld [vmem:[%s4064_s7 + $0x40] sm:$0xff] }
 0x1e4   :  { %1853 = vmatpush.msra.mxu0 %v1350_v8  ;;  %1797 = vmatpush.msrb.mxu1 %v1246_v10  ;;  %v1376_v4 = vld [vmem:[#allocation10 + $0xb48] sm:$0xff]  ;;  %v1374_v8 = vld [vmem:[#allocation10 + $0xb38] sm:$0xff] }
 0x1e5   :  { %1813 = vmatpush.msrb.mxu3 %v1286_v14  ;;  %1829 = vmatpush.msrb.mxu2 %v1326_v15  ;;  %v1894_v10 = vld [vmem:[%s4064_s7 + $0x38] sm:$0xff]  ;;  %v1372_v14 = vld [vmem:[#allocation10 + $0xb28] sm:$0xff]  ;;  %v1893_v15 = vld [vmem:[%s4064_s7 + $0x30] sm:$0xff] }
 0x1e6   :  { %1854 = vmatpush.msra.mxu0 %v1348_v16  ;;  %1798 = vmatpush.msrb.mxu1 %v1244_v19  ;;  %v1370_v16 = vld [vmem:[#allocation10 + $0xb18] sm:$0xff]  ;;  %v1892_v19 = vld [vmem:[%s4064_s7 + $0x28] sm:$0xff] }
 0x1e7   :  { %1814 = vmatpush.msrb.mxu3 %v1284_v20  ;;  %1830 = vmatpush.msrb.mxu2 %v1324_v21  ;;  %v1368_v20 = vld [vmem:[#allocation10 + $0xb08] sm:$0xff] }
 0x1e8   :  { %1855 = vmatpush.msra.mxu0 %v1346_v22  ;;  %1799 = vmatpush.msrb.mxu1 %v1242_v23  ;;  %v1891_v21 = vld [vmem:[%s4064_s7 + $0x20] sm:$0xff]  ;;  %v1890_v22 = vld [vmem:[%s4064_s7 + $0x18] sm:$0xff]  ;;  %v1889_v23 = vld [vmem:[%s4064_s7 + $0x10] sm:$0xff] }
 0x1e9   :  { %1815 = vmatpush.msrb.mxu3 %v1282_v24  ;;  %1831 = vmatpush.msrb.mxu2 %v1322_v25  ;;  %v1888_v24 = vld [vmem:[%s4064_s7 + $0x8] sm:$0xff]  ;;  %v1887_v25 = vld [vmem:[%s4064_s7] sm:$0xff] }
 0x1ea   :  { %1856 = vmatpush.msra.mxu0 %v1344_v27  ;;  %1800 = vmatpush.msrb.mxu1 %v1240_v30  ;;  %v2160_v27 = vld [vmem:[%s4068_s11 + $0x78] sm:$0xff]  ;;  %v2159_v30 = vld [vmem:[%s4068_s11 + $0x70] sm:$0xff] }
 0x1eb   :  { %1816 = vmatpush.msrb.mxu3 %v1280_v32  ;;  %1832 = vmatpush.msrb.mxu2 %v1320_v33  ;;  %v2158_v32 = vld [vmem:[%s4068_s11 + $0x68] sm:$0xff]  ;;  %v2157_v33 = vld [vmem:[%s4068_s11 + $0x60] sm:$0xff] }
 0x1ec   :  { %1857 = vmatpush.msra.mxu0 %v1342_v34  ;;  %1801 = vmatmul.f32.vlgmr.msrb.gmra.mxu1 %v3213_v7  ;;  %v2156_v34 = vld [vmem:[%s4068_s11 + $0x58] sm:$0xff] }
 0x1ed   :  { %1817 = vmatpush.msrb.mxu3 %v1278_v35  ;;  %1865 = vmatpush.msra.mxu1 %v1398_v29  ;;  %v3308_v35 = vld [vmem:[#allocation11] sm:$0x3]  ;;  %v2155_v29 = vld [vmem:[%s4068_s11 + $0x50] sm:$0xff] }
 0x1ee   :  { %1833 = vmatpush.msrb.mxu2 %v1318_v36  ;;  %1858 = vmatpush.msra.mxu0 %v1340_v37  ;;  %v2154_v36 = vld [vmem:[%s4068_s11 + $0x48] sm:$0xff]  ;;  %v1401_v37 = vperm.slane %v3308_v35, 0 }
 0x1ef   :  { %1818 = vmatpush.msrb.mxu3 %v1276_v38  ;;  %1866 = vmatpush.msra.mxu1 %v1396_v39  ;;  %v1422_v38 = vpop.f32.mrf.mxu3  ;;  %v2153_v39 = vld [vmem:[%s4068_s11 + $0x40] sm:$0xff] }
 0x1f0   :  { %1834 = vmatpush.msrb.mxu2 %v1316_v41  ;;  %1859 = vmatpush.msra.mxu0 %v1338_v42  ;;  %v1442_v41 = vpop.f32.mrf.mxu2  ;;  %v2152_v42 = vld [vmem:[%s4068_s11 + $0x38] sm:$0xff] }
 0x1f1   :  { %1819 = vmatpush.msrb.mxu3 %v1274_v44  ;;  %1867 = vmatpush.msra.mxu1 %v1394_v45  ;;  %v1423_v44 = vadd.f32 %v1422_v38, %v1401_v37  ;;  %v2151_v45 = vld [vmem:[%s4068_s11 + $0x30] sm:$0xff]  ;;  %v2221_v37 = vld [vmem:[%s4068_s11 + $0x260] sm:$0xff] }
 0x1f2   :  { %1835 = vmatpush.msrb.mxu2 %v1314_v18  ;;  %1860 = vmatpush.msra.mxu0 %v1336_v13  ;;  %v2150_v13 = vld [vmem:[%s4068_s11 + $0x28] sm:$0xff]  ;;  %v1905_v38 = vld [vmem:[%s4064_s7 + $0x90] sm:$0xff] }
 0x1f3   :  { %1820 = vmatpush.msrb.mxu3 %v1272_v46  ;;  %1861 = vmatmul.f32.vlgmr.msra.gmra.mxu0 %v3211_v6  ;;  %v1443_v18 = vadd.f32 %v1442_v41, %v1423_v44  ;;  %v1462_v46 = vpop.f32.mrf.mxu0  ;;  %v2220_v41 = vld [vmem:[%s4068_s11 + $0x258] sm:$0xff] }
 0x1f4   :  { %1868 = vmatpush.msra.mxu1 %v1392_v17  ;;  %1836 = vmatpush.msrb.mxu2 %v1312_v47  ;;  %v2149_v47 = vld [vmem:[%s4068_s11 + $0x20] sm:$0xff]  ;;  %v2176_v44 = vld [vmem:[%s4068_s11 + $0xf8] sm:$0xff] }
 0x1f5   :  { %1821 = vmatmul.f32.vlgmr.msrb.gmra.mxu3 %v3222_v11 }
 0x1f6   :  { %1869 = vmatpush.msra.mxu1 %v1390_v49  ;;  %1923 = vmatpush.msra.mxu3 %v1902_v50  ;;  %v1463_v49 = vadd.f32 %v1462_v46, %v1443_v18  ;;  %v2148_v50 = vld [vmem:[%s4068_s11 + $0x18] sm:$0xff]  ;;  %v2218_v18 = vld [vmem:[%s4068_s11 + $0x248] sm:$0xff] }
 0x1f7   :  { %1837 = vmatpush.msrb.mxu2 %v1310_v51  ;;  %v1918_v51 = vld [vmem:[%s4064_s7 + $0xf8] sm:$0xff]  ;;  %v2174_v46 = vld [vmem:[%s4068_s11 + $0xe8] sm:$0xff] }
 0x1f8   :  { %1870 = vmatpush.msra.mxu1 %v1388_v53  ;;  %1924 = vmatpush.msra.mxu3 %v1901_v54  ;;  %v2147_v54 = vld [vmem:[%s4068_s11 + $0x10] sm:$0xff] }
 0x1f9   :  { %1838 = vmatpush.msrb.mxu2 %v1308_v55  ;;  %v1502_v55 = vpop.f32.mrf.mxu3 }
 0x1fa   :  { %1871 = vmatpush.msra.mxu1 %v1386_v56  ;;  %1925 = vmatpush.msra.mxu3 %v1900_v58  ;;  %v2146_v58 = vld [vmem:[%s4068_s11 + $0x8] sm:$0xff] }
 0x1fb   :  { %1839 = vmatpush.msrb.mxu2 %v1306_v59  ;;  %v1917_v59 = vld [vmem:[%s4064_s7 + $0xf0] sm:$0xff] }
 0x1fc   :  { %1872 = vmatpush.msra.mxu1 %v1384_v60  ;;  %1926 = vmatpush.msra.mxu3 %v1899_v61  ;;  %v1916_v61 = vld [vmem:[%s4064_s7 + $0xe8] sm:$0xff] }
 0x1fd   :  { %1840 = vmatpush.msrb.mxu2 %v1304_v62  ;;  %v2145_v62 = vld [vmem:[%s4068_s11] sm:$0xff] }
 0x1fe   :  { %1841 = vmatmul.f32.vlgmr.msrb.gmra.mxu2 %v3230_v43  ;;  %1873 = vmatpush.msra.mxu1 %v1382_v63  ;;  %v1915_v63 = vld [vmem:[%s4064_s7 + $0xe0] sm:$0xff] }
 0x1ff   :  { %1927 = vmatpush.msra.mxu3 %v1898_v40  ;;  %1943 = vmatpush.msra.mxu2 %v1918_v51  ;;  %v2215_v51 = vld [vmem:[%s4068_s11 + $0x230] sm:$0xff] }
 0x200   :  { %1874 = vmatpush.msra.mxu1 %v1380_v0  ;;  %v1914_v0 = vld [vmem:[%s4064_s7 + $0xd8] sm:$0xff] }
 0x201   :  { %1928 = vmatpush.msra.mxu3 %v1897_v1  ;;  %1944 = vmatpush.msra.mxu2 %v1917_v59  ;;  %v2212_v59 = vld [vmem:[%s4068_s11 + $0x218] sm:$0xff] }
 0x202   :  { %1875 = vmatpush.msra.mxu1 %v1378_v2 }
 0x203   :  { %1929 = vmatpush.msra.mxu3 %v1896_v3  ;;  %v1482_v17 = vpop.f32.mrf.mxu1  ;;  %1945 = vmatpush.msra.mxu2 %v1916_v61  ;;  %v1913_v3 = vld [vmem:[%s4064_s7 + $0xd0] sm:$0xff] }
 0x204   :  { %1876 = vmatpush.msra.mxu1 %v1376_v4  ;;  %v1483_v53 = vadd.f32 %v1482_v17, %v1463_v49  ;;  %v2217_v17 = vld [vmem:[%s4068_s11 + $0x240] sm:$0xff]  ;;  %v2216_v49 = vld [vmem:[%s4068_s11 + $0x238] sm:$0xff]  ;;  %v2211_v61 = vld [vmem:[%s4068_s11 + $0x210] sm:$0xff] }
 0x205   :  { %1930 = vmatpush.msra.mxu3 %v1895_v5  ;;  %1946 = vmatpush.msra.mxu2 %v1915_v63  ;;  %v2167_v63 = vld [vmem:[%s4068_s11 + $0xb0] sm:$0xff] }
 0x206   :  { %1877 = vmatpush.msra.mxu1 %v1374_v8  ;;  %v1503_v60 = vadd.f32 %v1502_v55, %v1483_v53  ;;  %v1912_v8 = vld [vmem:[%s4064_s7 + $0xc8] sm:$0xff] }
 0x207   :  { %1931 = vmatpush.msra.mxu3 %v1894_v10  ;;  %1947 = vmatpush.msra.mxu2 %v1914_v0  ;;  %v2214_v53 = vld [vmem:[%s4068_s11 + $0x228] sm:$0xff] }
 0x208   :  { %1878 = vmatpush.msra.mxu1 %v1372_v14  ;;  %v1911_v14 = vld [vmem:[%s4064_s7 + $0xc0] sm:$0xff]  ;;  %v2170_v55 = vld [vmem:[%s4068_s11 + $0xc8] sm:$0xff] }
 0x209   :  { %1932 = vmatpush.msra.mxu3 %v1893_v15  ;;  %1948 = vmatpush.msra.mxu2 %v1913_v3  ;;  %v2166_v0 = vld [vmem:[%s4068_s11 + $0xa8] sm:$0xff]  ;;  %v2164_v3 = vld [vmem:[%s4068_s11 + $0x98] sm:$0xff] }
 0x20a   :  { %1879 = vmatpush.msra.mxu1 %v1370_v16  ;;  %v1542_v1 = vpop.f32.mrf.mxu0  ;;  %v1910_v16 = vld [vmem:[%s4064_s7 + $0xb8] sm:$0xff] }
 0x20b   :  { %1933 = vmatpush.msra.mxu3 %v1892_v19  ;;  %1949 = vmatpush.msra.mxu2 %v1912_v8  ;;  %v1402_v8 = vperm.slane %v3308_v35, 1  ;;  %v2284_v35 = vld [vmem:[%s4068_s11 + $0x458] sm:$0xff] }
 0x20c   :  { %1880 = vmatpush.msra.mxu1 %v1368_v20 }
 0x20d   :  { %1881 = vmatmul.f32.vlgmr.msra.gmra.mxu1 %v3227_v26  ;;  %1934 = vmatpush.msra.mxu3 %v1891_v21 }
 0x20e   :  { %1950 = vmatpush.msra.mxu2 %v1911_v14 }
 0x20f   :  { %1935 = vmatpush.msra.mxu3 %v1890_v22 }
 0x210   :  { %1951 = vmatpush.msra.mxu2 %v1910_v16  ;;  %v2162_v16 = vld [vmem:[%s4068_s11 + $0x88] sm:$0xff] }
 0x211   :  { %1936 = vmatpush.msra.mxu3 %v1889_v23 }
 0x212   :  { %v1562_v4 = vpop.f32.mrf.mxu1 }
 0x213   :  { %1937 = vmatpush.msra.mxu3 %v1888_v24  ;;  %v1622_v21 = vpop.f32.mrf.mxu0  ;;  %v1909_v24 = vld [vmem:[%s4064_s7 + $0xb0] sm:$0xff] }
 0x214   :  { %1952 = vmatpush.msra.mxu2 %v1909_v24  ;;  %v2282_v24 = vld [vmem:[%s4068_s11 + $0x448] sm:$0xff] }
 0x215   :  { %1938 = vmatpush.msra.mxu3 %v1887_v25 }
 0x217   :  { %2341 = vmatpush.msrb.mxu3 %v2160_v27  ;;  %v1908_v27 = vld [vmem:[%s4064_s7 + $0xa8] sm:$0xff] }
 0x218   :  { %1953 = vmatpush.msra.mxu2 %v1908_v27  ;;  %v2281_v27 = vld [vmem:[%s4068_s11 + $0x440] sm:$0xff] }
 0x219   :  { %2342 = vmatpush.msrb.mxu3 %v2159_v30  ;;  %v1522_v56 = vpop.f32.mrf.mxu2  ;;  %v1907_v30 = vld [vmem:[%s4064_s7 + $0xa0] sm:$0xff] }
 0x21a   :  { %v1523_v40 = vadd.f32 %v1522_v56, %v1503_v60  ;;  %1954 = vmatpush.msra.mxu2 %v1907_v30  ;;  %v2213_v56 = vld [vmem:[%s4068_s11 + $0x220] sm:$0xff]  ;;  %v2168_v60 = vld [vmem:[%s4068_s11 + $0xb8] sm:$0xff] }
 0x21b   :  { %2343 = vmatpush.msrb.mxu3 %v2158_v32 }
 0x21c   :  { %v1543_v2 = vadd.f32 %v1542_v1, %v1523_v40  ;;  %v2209_v40 = vld [vmem:[%s4068_s11 + $0x200] sm:$0xff] }
 0x21d   :  { %2344 = vmatpush.msrb.mxu3 %v2157_v33  ;;  %v2224_v33 = vld [vmem:[%s4068_s11 + $0x278] sm:$0xff]  ;;  %v2165_v1 = vld [vmem:[%s4068_s11 + $0xa0] sm:$0xff] }
 0x21e   :  { %v1563_v10 = vadd.f32 %v1562_v4, %v1543_v2  ;;  %v2288_v2 = vld [vmem:[%s4068_s11 + $0x478] sm:$0xff]  ;;  %v2287_v4 = vld [vmem:[%s4068_s11 + $0x470] sm:$0xff] }
 0x21f   :  { %2345 = vmatpush.msrb.mxu3 %v2156_v34  ;;  %v1906_v34 = vld [vmem:[%s4064_s7 + $0x98] sm:$0xff] }
 0x220   :  { %1955 = vmatpush.msra.mxu2 %v1906_v34 }
 0x221   :  { %2346 = vmatpush.msrb.mxu3 %v2155_v29  ;;  %v2223_v29 = vld [vmem:[%s4068_s11 + $0x270] sm:$0xff] }
 0x222   :  { %1956 = vmatpush.msra.mxu2 %v1905_v38  ;;  %v2278_v38 = vld [vmem:[%s4068_s11 + $0x428] sm:$0xff] }
 0x223   :  { %2347 = vmatpush.msrb.mxu3 %v2154_v36  ;;  %v2222_v36 = vld [vmem:[%s4068_s11 + $0x268] sm:$0xff] }
 0x225   :  { %2348 = vmatpush.msrb.mxu3 %v2153_v39  ;;  %v1904_v39 = vld [vmem:[%s4064_s7 + $0x88] sm:$0xff] }
 0x226   :  { %1957 = vmatpush.msra.mxu2 %v1904_v39 }
 0x227   :  { %2349 = vmatpush.msrb.mxu3 %v2152_v42  ;;  %v1903_v42 = vld [vmem:[%s4064_s7 + $0x80] sm:$0xff]  ;;  %s2947_s7 = smov 6  }
 0x228   :  { %1958 = vmatpush.msra.mxu2 %v1903_v42 }
 0x229   :  { %2350 = vmatpush.msrb.mxu3 %v2151_v45  ;;  %v2219_v45 = vld [vmem:[%s4068_s11 + $0x250] sm:$0xff] }
 0x22a   :  { %2361 = vmatpush.msrb.mxu2 %v2176_v44  ;;  %v2276_v44 = vld [vmem:[%s4068_s11 + $0x418] sm:$0xff] }
 0x22b   :  { %2351 = vmatpush.msrb.mxu3 %v2150_v13  ;;  %v2175_v13 = vld [vmem:[%s4068_s11 + $0xf0] sm:$0xff] }
 0x22c   :  { %2362 = vmatpush.msrb.mxu2 %v2175_v13  ;;  %v2275_v13 = vld [vmem:[%s4068_s11 + $0x410] sm:$0xff] }
 0x22d   :  { %2352 = vmatpush.msrb.mxu3 %v2149_v47  ;;  %v2173_v47 = vld [vmem:[%s4068_s11 + $0xe0] sm:$0xff] }
 0x22e   :  { %2363 = vmatpush.msrb.mxu2 %v2174_v46 }
 0x22f   :  { %2353 = vmatpush.msrb.mxu3 %v2148_v50  ;;  %v2172_v50 = vld [vmem:[%s4068_s11 + $0xd8] sm:$0xff] }
 0x230   :  { %2364 = vmatpush.msrb.mxu2 %v2173_v47  ;;  %v2274_v47 = vld [vmem:[%s4068_s11 + $0x408] sm:$0xff] }
 0x231   :  { %2354 = vmatpush.msrb.mxu3 %v2147_v54  ;;  %v2171_v54 = vld [vmem:[%s4068_s11 + $0xd0] sm:$0xff] }
 0x232   :  { %2365 = vmatpush.msrb.mxu2 %v2172_v50 }
 0x233   :  { %2355 = vmatpush.msrb.mxu3 %v2146_v58  ;;  %v1582_v5 = vpop.f32.mrf.mxu3  ;;  %v1642_v23 = vpop.f32.mrf.mxu1  ;;  %v2169_v58 = vld [vmem:[%s4068_s11 + $0xc0] sm:$0xff] }
 0x234   :  { %v1583_v15 = vadd.f32 %v1582_v5, %v1563_v10  ;;  %2366 = vmatpush.msrb.mxu2 %v2171_v54  ;;  %v2286_v5 = vld [vmem:[%s4068_s11 + $0x468] sm:$0xff]  ;;  %v2163_v10 = vld [vmem:[%s4068_s11 + $0x90] sm:$0xff] }
 0x235   :  { %2356 = vmatpush.msrb.mxu3 %v2145_v62  ;;  %v2210_v62 = vld [vmem:[%s4068_s11 + $0x208] sm:$0xff] }
 0x236   :  { %2367 = vmatpush.msrb.mxu2 %v2170_v55 }
 0x238   :  { %2368 = vmatpush.msrb.mxu2 %v2169_v58 }
 0x23a   :  { %2369 = vmatpush.msrb.mxu2 %v2168_v60 }
 0x23c   :  { %v1602_v19 = vpop.f32.mrf.mxu2  ;;  %2370 = vmatpush.msrb.mxu2 %v2167_v63  ;;  %v1662_v14 = vpop.f32.mrf.mxu3  ;;  %v2238_v63 = vld [vmem:[%s4068_s11 + $0x2e8] sm:$0xff] }
 0x23d   :  { %v1603_v20 = vadd.f32 %v1602_v19, %v1583_v15  ;;  %v2285_v15 = vld [vmem:[%s4068_s11 + $0x460] sm:$0xff] }
 0x23e   :  { %2371 = vmatpush.msrb.mxu2 %v2166_v0  ;;  %v2236_v0 = vld [vmem:[%s4068_s11 + $0x2d8] sm:$0xff] }
 0x23f   :  { %v1623_v22 = vadd.f32 %v1622_v21, %v1603_v20  ;;  %v1663_v20 = vadd.f32 %v1662_v14, %v1402_v8  ;;  %v2161_v21 = vld [vmem:[%s4068_s11 + $0x80] sm:$0xff]  ;;  %v2230_v8 = vld [vmem:[%s4068_s11 + $0x2a8] sm:$0xff]  ;;  %v2228_v14 = vld [vmem:[%s4068_s11 + $0x298] sm:$0xff] }
 0x240   :  { %2372 = vmatpush.msrb.mxu2 %v2165_v1  ;;  %v2235_v1 = vld [vmem:[%s4068_s11 + $0x2d0] sm:$0xff] }
 0x241   :  { %v1643_v25 = vadd.f32 %v1642_v23, %v1623_v22  ;;  %v2283_v22 = vld [vmem:[%s4068_s11 + $0x450] sm:$0xff] }
 0x242   :  { %2373 = vmatpush.msrb.mxu2 %v2164_v3  ;;  %v2233_v3 = vld [vmem:[%s4068_s11 + $0x2c0] sm:$0xff] }
 0x243   :  { %v1885_v32 = vmax.f32 %v1643_v25, 0.0  ;;  %v1702_v25 = vpop.f32.mrf.mxu0 }
 0x244   :  { %2374 = vmatpush.msrb.mxu2 %v2163_v10  ;;  %v2229_v10 = vld [vmem:[%s4068_s11 + $0x2a0] sm:$0xff] }
 0x245   :  { %1939 = vmatmul.f32.vlgmr.msra.gmra.mxu3 %v1885_v32  ;;  %v1682_v19 = vpop.f32.mrf.mxu2  ;;  %v2280_v32 = vld [vmem:[%s4068_s11 + $0x438] sm:$0xff] }
 0x246   :  { %2421 = vmatpush.msra.mxu3 %v2224_v33  ;;  %2375 = vmatpush.msrb.mxu2 %v2162_v16  ;;  %v1683_v23 = vadd.f32 %v1682_v19, %v1663_v20  ;;  %v2226_v16 = vld [vmem:[%s4068_s11 + $0x288] sm:$0xff]  ;;  %v2225_v19 = vld [vmem:[%s4068_s11 + $0x280] sm:$0xff]  ;;  %v2303_v20 = vld [vmem:[%s4068_s11 + $0x4f0] sm:$0xff] }
 0x247   :  { %v1722_v33 = vpop.f32.mrf.mxu1 }
 0x248   :  { %2422 = vmatpush.msra.mxu3 %v2223_v29  ;;  %2376 = vmatpush.msrb.mxu2 %v2161_v21  ;;  %v1703_v30 = vadd.f32 %v1702_v25, %v1683_v23  ;;  %v2279_v29 = vld [vmem:[%s4068_s11 + $0x430] sm:$0xff]  ;;  %v2302_v21 = vld [vmem:[%s4068_s11 + $0x4e8] sm:$0xff]  ;;  %v2300_v23 = vld [vmem:[%s4068_s11 + $0x4d8] sm:$0xff] }
 0x249   :  { %v2298_v25 = vld [vmem:[%s4068_s11 + $0x4c8] sm:$0xff] }
 0x24a   :  { %2423 = vmatpush.msra.mxu3 %v2222_v36  ;;  %v1723_v36 = vadd.f32 %v1722_v33, %v1703_v30  ;;  %v2296_v30 = vld [vmem:[%s4068_s11 + $0x4b8] sm:$0xff]  ;;  %v2294_v33 = vld [vmem:[%s4068_s11 + $0x4a8] sm:$0xff] }
 0x24c   :  { %2424 = vmatpush.msra.mxu3 %v2221_v37 }
 0x24d   :  { %2357 = vmatmul.f32.vlgmr.msrb.gmra.mxu3 %v3178_v57 }
 0x24e   :  { %2425 = vmatpush.msra.mxu3 %v2220_v41  ;;  %v2277_v41 = vld [vmem:[%s4068_s11 + $0x420] sm:$0xff] }
 0x250   :  { %2426 = vmatpush.msra.mxu3 %v2219_v45  ;;  %v1782_v45 = vpop.f32.mrf.mxu0 }
 0x252   :  { %2427 = vmatpush.msra.mxu3 %v2218_v18 }
 0x254   :  { %2428 = vmatpush.msra.mxu3 %v2217_v17 }
 0x256   :  { %2429 = vmatpush.msra.mxu3 %v2216_v49  ;;  %v1742_v34 = vpop.f32.mrf.mxu3 }
 0x257   :  { %v1743_v39 = vadd.f32 %v1742_v34, %v1723_v36  ;;  %v2293_v34 = vld [vmem:[%s4068_s11 + $0x4a0] sm:$0xff]  ;;  %v2291_v36 = vld [vmem:[%s4068_s11 + $0x490] sm:$0xff] }
 0x258   :  { %2430 = vmatpush.msra.mxu3 %v2215_v51  ;;  %v2273_v51 = vld [vmem:[%s4068_s11 + $0x400] sm:$0xff] }
 0x25a   :  { %2431 = vmatpush.msra.mxu3 %v2214_v53 }
 0x25c   :  { %2432 = vmatpush.msra.mxu3 %v2213_v56 }
 0x25e   :  { %2433 = vmatpush.msra.mxu3 %v2212_v59 }
 0x25f   :  { %v1762_v37 = vpop.f32.mrf.mxu2 }
 0x260   :  { %2434 = vmatpush.msra.mxu3 %v2211_v61  ;;  %v1763_v42 = vadd.f32 %v1762_v37, %v1743_v39  ;;  %v2240_v61 = vld [vmem:[%s4068_s11 + $0x2f8] sm:$0xff]  ;;  %v2290_v37 = vld [vmem:[%s4068_s11 + $0x488] sm:$0xff]  ;;  %v2663_v39 = vld [vmem:[#allocation13] ss:$0 sm:$0xff] }
 0x262   :  { %2435 = vmatpush.msra.mxu3 %v2210_v62  ;;  %v1783_v46 = vadd.f32 %v1782_v45, %v1763_v42  ;;  %v2239_v62 = vld [vmem:[%s4068_s11 + $0x2f0] sm:$0xff] }
 0x264   :  { %2436 = vmatpush.msra.mxu3 %v2209_v40  ;;  %v2237_v40 = vld [vmem:[%s4068_s11 + $0x2e0] sm:$0xff] }
 0x265   :  { %2437 = vmatmul.f32.vlgmr.msra.gmra.mxu3 %v3192_v52 }
 0x266   :  { %2501 = vmatpush.msrb.mxu3 %v2288_v2  ;;  %v2234_v2 = vld [vmem:[%s4068_s11 + $0x2c8] sm:$0xff] }
 0x268   :  { %2502 = vmatpush.msrb.mxu3 %v2287_v4  ;;  %v2232_v4 = vld [vmem:[%s4068_s11 + $0x2b8] sm:$0xff] }
 0x269   :  { %v1802_v18 = vpop.f32.mrf.mxu1 }
 0x26a   :  { %2503 = vmatpush.msrb.mxu3 %v2286_v5  ;;  %v1803_v49 = vadd.f32 %v1802_v18, %v1783_v46  ;;  %v2231_v5 = vld [vmem:[%s4068_s11 + $0x2b0] sm:$0xff] }
 0x26c   :  { %2504 = vmatpush.msrb.mxu3 %v2285_v15  ;;  %v2227_v15 = vld [vmem:[%s4068_s11 + $0x290] sm:$0xff] }
 0x26e   :  { %2505 = vmatpush.msrb.mxu3 %v2284_v35  ;;  %v2304_v35 = vld [vmem:[%s4068_s11 + $0x4f8] sm:$0xff] }
 0x270   :  { %2506 = vmatpush.msrb.mxu3 %v2283_v22  ;;  %v1862_v55 = vpop.f32.mrf.mxu0  ;;  %v2301_v22 = vld [vmem:[%s4068_s11 + $0x4e0] sm:$0xff] }
 0x272   :  { %2507 = vmatpush.msrb.mxu3 %v2282_v24  ;;  %v2299_v24 = vld [vmem:[%s4068_s11 + $0x4d0] sm:$0xff] }
 0x274   :  { %2508 = vmatpush.msrb.mxu3 %v2281_v27  ;;  %v2297_v27 = vld [vmem:[%s4068_s11 + $0x4c0] sm:$0xff] }
 0x276   :  { %2509 = vmatpush.msrb.mxu3 %v2280_v32  ;;  %v2295_v32 = vld [vmem:[%s4068_s11 + $0x4b0] sm:$0xff] }
 0x278   :  { %2510 = vmatpush.msrb.mxu3 %v2279_v29  ;;  %v1822_v17 = vpop.f32.mrf.mxu3  ;;  %v2292_v29 = vld [vmem:[%s4068_s11 + $0x498] sm:$0xff] }
 0x279   :  { %v1823_v53 = vadd.f32 %v1822_v17, %v1803_v49 }
 0x27a   :  { %2511 = vmatpush.msrb.mxu3 %v2278_v38  ;;  %v2289_v38 = vld [vmem:[%s4068_s11 + $0x480] sm:$0xff] }
 0x27c   :  { %2512 = vmatpush.msrb.mxu3 %v2277_v41 }
 0x27e   :  { %2513 = vmatpush.msrb.mxu3 %v2276_v44 }
 0x280   :  { %2514 = vmatpush.msrb.mxu3 %v2275_v13 }
 0x281   :  { %v1842_v50 = vpop.f32.mrf.mxu2 }
 0x282   :  { %2515 = vmatpush.msrb.mxu3 %v2274_v47  ;;  %v1843_v54 = vadd.f32 %v1842_v50, %v1823_v53 }
 0x284   :  { %2516 = vmatpush.msrb.mxu3 %v2273_v51  ;;  %v1863_v56 = vadd.f32 %v1862_v55, %v1843_v54 }
 0x285   :  { %2517 = vmatmul.f32.vlgmr.msrb.gmra.mxu3 %v3222_v11 }
 0x28a   :  { %v1882_v58 = vpop.f32.mrf.mxu1 }
 0x28b   :  { %v1883_v59 = vadd.f32 %v1882_v58, %v1863_v56 }
 0x28d   :  { %v1886_v60 = vmax.f32 %v1883_v59, 0.0 }
 0x28f   :  { %1959 = vmatmul.f32.vlgmr.msra.gmra.mxu2 %v1886_v60 }
 0x290   :  { %2441 = vmatpush.msra.mxu2 %v2240_v61 }
 0x292   :  { %2442 = vmatpush.msra.mxu2 %v2239_v62 }
 0x294   :  { %2443 = vmatpush.msra.mxu2 %v2238_v63 }
 0x296   :  { %2444 = vmatpush.msra.mxu2 %v2237_v40 }
 0x297   :  { %2377 = vmatmul.f32.vlgmr.msrb.gmra.mxu2 %v3183_v12 }
 0x298   :  { %2445 = vmatpush.msra.mxu2 %v2236_v0 }
 0x29a   :  { %2446 = vmatpush.msra.mxu2 %v2235_v1 }
 0x29c   :  { %2447 = vmatpush.msra.mxu2 %v2234_v2 }
 0x29e   :  { %2448 = vmatpush.msra.mxu2 %v2233_v3 }
 0x2a0   :  { %2449 = vmatpush.msra.mxu2 %v2232_v4 }
 0x2a2   :  { %2450 = vmatpush.msra.mxu2 %v2231_v5 }
 0x2a4   :  { %2451 = vmatpush.msra.mxu2 %v2230_v8 }
 0x2a6   :  { %2452 = vmatpush.msra.mxu2 %v2229_v10 }
 0x2a8   :  { %2453 = vmatpush.msra.mxu2 %v2228_v14 }
 0x2aa   :  { %2454 = vmatpush.msra.mxu2 %v2227_v15 }
 0x2ac   :  { %2455 = vmatpush.msra.mxu2 %v2226_v16 }
 0x2ae   :  { %2456 = vmatpush.msra.mxu2 %v2225_v19 }
 0x2af   :  { %2457 = vmatmul.f32.vlgmr.msra.gmra.mxu2 %v3215_v9 }
 0x2b0   :  { %2521 = vmatpush.msrb.mxu2 %v2304_v35 }
 0x2b2   :  { %2522 = vmatpush.msrb.mxu2 %v2303_v20 }
 0x2b4   :  { %2523 = vmatpush.msrb.mxu2 %v2302_v21  ;;  %v2941_v21 = vmov 3  }
 0x2b5   :  { %2659 = vset.pattern.permute.xlu0 %v2941_v21  ;;  %v2191_v21 = vld [vmem:[%s4068_s11 + $0x170] sm:$0xff] }
 0x2b6   :  { %2524 = vmatpush.msrb.mxu2 %v2301_v22  ;;  %v2942_v22 = vmov 1  }
 0x2b7   :  { %2657 = vset.pattern.permute.xlu2 %v2942_v22  ;;  %v2207_v22 = vld [vmem:[%s4068_s11 + $0x1f0] sm:$0xff] }
 0x2b8   :  { %2525 = vmatpush.msrb.mxu2 %v2300_v23  ;;  %v2943_v23 = vmov 0  }
 0x2b9   :  { %2656 = vset.pattern.permute.xlu1 %v2943_v23  ;;  %v2190_v23 = vld [vmem:[%s4068_s11 + $0x168] sm:$0xff] }
 0x2ba   :  { %2526 = vmatpush.msrb.mxu2 %v2299_v24 }
 0x2bc   :  { %2527 = vmatpush.msrb.mxu2 %v2298_v25 }
 0x2be   :  { %2528 = vmatpush.msrb.mxu2 %v2297_v27 }
 0x2c0   :  { %2529 = vmatpush.msrb.mxu2 %v2296_v30 }
 0x2c2   :  { %2530 = vmatpush.msrb.mxu2 %v2295_v32 }
 0x2c4   :  { %2531 = vmatpush.msrb.mxu2 %v2294_v33 }
 0x2c6   :  { %2532 = vmatpush.msrb.mxu2 %v2293_v34 }
 0x2c8   :  { %2533 = vmatpush.msrb.mxu2 %v2292_v29  ;;  %v1940_v41 = vpop.f32.mrf.mxu3 }
 0x2c9   :  { %v1941_v42 = vadd.f32 %v2663_v39, %v1940_v41  ;;  %v2084_v41 = vld [vmem:[%s4066_s9 + $0x78] sm:$0xff] }
 0x2ca   :  { %2534 = vmatpush.msrb.mxu2 %v2291_v36  ;;  %2105 = vmatpush.msrb.mxu0 %v2084_v41  ;;  %v2200_v41 = vld [vmem:[%s4068_s11 + $0x1b8] sm:$0xff] }
 0x2cc   :  { %2535 = vmatpush.msrb.mxu2 %v2290_v37 }
 0x2ce   :  { %2536 = vmatpush.msrb.mxu2 %v2289_v38 }
 0x2cf   :  { %2537 = vmatmul.f32.vlgmr.msrb.gmra.mxu2 %v3230_v43 }
 0x312   :  { %v1960_v44 = vpop.f32.mrf.mxu2 }
 0x313   :  { %v1961_v45 = vadd.f32 %v1960_v44, %v1941_v42  ;;  %v2100_v42 = vld [vmem:[%s4066_s9 + $0xf8] sm:$0xff]  ;;  %v2083_v44 = vld [vmem:[%s4066_s9 + $0x70] sm:$0xff] }
 0x314   :  { %2125 = vmatpush.msrb.mxu1 %v2100_v42  ;;  %2106 = vmatpush.msrb.mxu0 %v2083_v44  ;;  %v2183_v42 = vld [vmem:[%s4068_s11 + $0x130] sm:$0xff] }
 0x315   :  { %v1963_v18 = vmul.f32 %v1961_v45, %v1961_v45  ;;  %v2199_v44 = vld [vmem:[%s4068_s11 + $0x1b0] sm:$0xff] }
 0x317   :  { %v1965_v13 = vsel %vm1964_vm3, %v1963_v18, 0.0  ;;  %v2082_v18 = vld [vmem:[%s4066_s9 + $0x68] sm:$0xff] }
 0x318   :  { %1966 = vadd.xlane.f32.xlu0 %v1965_v13  ;;  %v2098_v13 = vld [vmem:[%s4066_s9 + $0xe8] sm:$0xff]  ;;  %2107 = vmatpush.msrb.mxu0 %v2082_v18 }
 0x319   :  { %v2198_v18 = vld [vmem:[%s4068_s11 + $0x1a8] sm:$0xff] }
 0x38b   :  { %v1967_v46 = vpop.xlane.xlu0 %1966 }
 0x38c   :  { %2666 = vrsqrt.f32 %v1967_v46  ;;  %vm1975_vm4 = vcmp.eq.f32.partialorder %v1967_v46, inf  ;;  %v1978_v55 = vand.u32 2147483648, %v1967_v46  ;;  %vm1977_vm5 = vcmp.eq.f32.partialorder %v1967_v46, 0.0 }
 0x392   :  { %v2667_v17 = vpop.eup %2666 }
 0x393   :  { %v1969_v47 = vmul.f32 %v2667_v17, %v1967_v46 }
 0x395   :  { %v1970_v49 = vmul.f32 %v2667_v17, %v1969_v47  ;;  %v2097_v47 = vld [vmem:[%s4066_s9 + $0xe0] sm:$0xff] }
 0x397   :  { %v1971_v50 = vmul.f32 0.5, %v1970_v49  ;;  %v2080_v49 = vld [vmem:[%s4066_s9 + $0x58] sm:$0xff] }
 0x399   :  { %v1972_v51 = vsub.f32 1.5, %v1971_v50  ;;  %v2096_v50 = vld [vmem:[%s4066_s9 + $0xd8] sm:$0xff] }
 0x39b   :  { %v1973_v53 = vmul.f32 %v2667_v17, %v1972_v51  ;;  %v2944_v17 = vmov 2   ;;  %v2945_v51 = vmov 5  }
 0x39d   :  { %v1974_v54 = vmul.f32 %v1973_v53, %v1967_v46  ;;  %v2079_v53 = vld [vmem:[%s4066_s9 + $0x50] sm:$0xff] }
 0x39f   :  { %v1976_v56 = vsel %vm1975_vm4, %v1967_v46, %v1974_v54  ;;  %v2081_v46 = vld [vmem:[%s4066_s9 + $0x60] sm:$0xff]  ;;  %v2095_v54 = vld [vmem:[%s4066_s9 + $0xd0] sm:$0xff] }
 0x3a0   :  { %v1979_v58 = vsel %vm1977_vm5, %v1978_v55, %v1976_v56  ;;  %2108 = vmatpush.msrb.mxu0 %v2081_v46  ;;  %v2078_v55 = vld [vmem:[%s4066_s9 + $0x48] sm:$0xff]  ;;  %v2197_v46 = vld [vmem:[%s4068_s11 + $0x1a0] sm:$0xff] }
 0x3a1   :  { %v1980_v59 = vmax.f32 %v1979_v58, 1e-12  ;;  %v2094_v56 = vld [vmem:[%s4066_s9 + $0xc8] sm:$0xff]  ;;  %v2077_v58 = vld [vmem:[%s4066_s9 + $0x40] sm:$0xff] }
 0x3a2   :  { %2109 = vmatpush.msrb.mxu0 %v2080_v49 }
 0x3a3   :  { %2668 = vrcp.f32 %v1980_v59  ;;  %v1992_v63 = vand.u32 2147483648, %v1980_v59  ;;  %v1990_v0 = vand.u32 2147483647, %v1980_v59  ;;  %vm1986_vm7 = vweird.f32 %v1980_v59 }
 0x3a4   :  { %2110 = vmatpush.msrb.mxu0 %v2079_v53  ;;  %v2178_v53 = vld [vmem:[%s4068_s11 + $0x108] sm:$0xff] }
 0x3a5   :  { %v1993_v2 = vor.u32 1.1754944e-38, %v1992_v63  ;;  %vm1991_vm9 = vcmp.eq.f32.partialorder %v1990_v0, 8.507059e+37  ;;  %v2075_v63 = vld [vmem:[%s4066_s9 + $0x30] sm:$0xff]  ;;  %v2074_v0 = vld [vmem:[%s4066_s9 + $0x28] sm:$0xff] }
 0x3a6   :  { %2111 = vmatpush.msrb.mxu0 %v2078_v55  ;;  %v2177_v55 = vld [vmem:[%s4068_s11 + $0x100] sm:$0xff] }
 0x3a8   :  { %2112 = vmatpush.msrb.mxu0 %v2077_v58 }
 0x3a9   :  { %v2669_v60 = vpop.eup %2668 }
 0x3aa   :  { %v1982_v61 = vmul.f32 %v2669_v60, %v1980_v59  ;;  %vm1987_vm6 = vweird.f32 %v2669_v60  ;;  %v2093_v59 = vld [vmem:[%s4066_s9 + $0xc0] sm:$0xff] }
 0x3ab   :  { %vm1988_vm8 = vmor %vm1986_vm7, %vm1987_vm6 }
 0x3ac   :  { %v1983_v62 = vsub.f32 1.0, %v1982_v61  ;;  %v2076_v61 = vld [vmem:[%s4066_s9 + $0x38] sm:$0xff] }
 0x3ad   :  { %2113 = vmatpush.msrb.mxu0 %v2076_v61 }
 0x3ae   :  { %v1984_v40 = vmul.f32 %v2669_v60, %v1983_v62  ;;  %v2092_v62 = vld [vmem:[%s4066_s9 + $0xb8] sm:$0xff] }
 0x3af   :  { %2114 = vmatpush.msrb.mxu0 %v2075_v63 }
 0x3b0   :  { %v1985_v1 = vadd.f32 %v2669_v60, %v1984_v40  ;;  %v2091_v40 = vld [vmem:[%s4066_s9 + $0xb0] sm:$0xff] }
 0x3b1   :  { %2115 = vmatpush.msrb.mxu0 %v2074_v0 }
 0x3b2   :  { %v1989_v3 = vsel %vm1988_vm8, %v2669_v60, %v1985_v1  ;;  %v2946_v60 = vmov 4   ;;  %v2090_v1 = vld [vmem:[%s4066_s9 + $0xa8] sm:$0xff] }
 0x3b3   :  { %v1994_v4 = vsel %vm1991_vm9, %v1993_v2, %v1989_v3  ;;  %v2073_v2 = vld [vmem:[%s4066_s9 + $0x20] sm:$0xff] }
 0x3b4   :  { %v1995_v5 = vmul.f32 %v1994_v4, %v1961_v45  ;;  %v2099_v45 = vld [vmem:[%s4066_s9 + $0xf0] sm:$0xff]  ;;  %v2089_v3 = vld [vmem:[%s4066_s9 + $0xa0] sm:$0xff]  ;;  %v2072_v4 = vld [vmem:[%s4066_s9 + $0x18] sm:$0xff]  ;;  %2116 = vmatpush.msrb.mxu0 %v2073_v2 }
 0x3b5   :  { %2126 = vmatpush.msrb.mxu1 %v2099_v45  ;;  %v2182_v45 = vld [vmem:[%s4068_s11 + $0x128] sm:$0xff] }
 0x3b6   :  { %v1996_v8 = vadd.f32 1.0, %v1995_v5  ;;  %v2088_v5 = vld [vmem:[%s4066_s9 + $0x98] sm:$0xff]  ;;  %2117 = vmatpush.msrb.mxu0 %v2072_v4 }
 0x3b7   :  { %2127 = vmatpush.msrb.mxu1 %v2098_v13  ;;  %v2181_v13 = vld [vmem:[%s4068_s11 + $0x120] sm:$0xff] }
 0x3b8   :  { %v1997_v10 = vmul.f32 2.0, %v1996_v8  ;;  %v2071_v8 = vld [vmem:[%s4066_s9 + $0x10] sm:$0xff] }
 0x3b9   :  { %2128 = vmatpush.msrb.mxu1 %v2097_v47  ;;  %2118 = vmatpush.msrb.mxu0 %v2071_v8  ;;  %v2196_v47 = vld [vmem:[%s4068_s11 + $0x198] sm:$0xff] }
 0x3ba   :  { %v1998_v14 = vsel %vm1964_vm3, %v1997_v10, -inf }
 0x3bb   :  { %1999 = vmax.xlane.f32.xlu0 %v1998_v14  ;;  %2129 = vmatpush.msrb.mxu1 %v2096_v50  ;;  %v2070_v14 = vld [vmem:[%s4066_s9 + $0x8] sm:$0xff]  ;;  %v2179_v50 = vld [vmem:[%s4068_s11 + $0x110] sm:$0xff] }
 0x3bc   :  { %2119 = vmatpush.msrb.mxu0 %v2070_v14 }
 0x3bd   :  { %2130 = vmatpush.msrb.mxu1 %v2095_v54  ;;  %v2194_v54 = vld [vmem:[%s4068_s11 + $0x188] sm:$0xff] }
 0x3bf   :  { %2131 = vmatpush.msrb.mxu1 %v2094_v56  ;;  %v2193_v56 = vld [vmem:[%s4068_s11 + $0x180] sm:$0xff] }
 0x3c1   :  { %2132 = vmatpush.msrb.mxu1 %v2093_v59 }
 0x3c3   :  { %2133 = vmatpush.msrb.mxu1 %v2092_v62 }
 0x3c5   :  { %2134 = vmatpush.msrb.mxu1 %v2091_v40 }
 0x3c7   :  { %2135 = vmatpush.msrb.mxu1 %v2090_v1 }
 0x3c9   :  { %2136 = vmatpush.msrb.mxu1 %v2089_v3 }
 0x3cb   :  { %2137 = vmatpush.msrb.mxu1 %v2088_v5 }
 0x42e   :  { %v2000_v15 = vpop.xlane.xlu0 %1999 }
 0x42f   :  { %v2001_v16 = vsub.f32 %v1997_v10, %v2000_v15  ;;  %v2087_v10 = vld [vmem:[%s4066_s9 + $0x90] sm:$0xff]  ;;  %v2086_v15 = vld [vmem:[%s4066_s9 + $0x88] sm:$0xff] }
 0x430   :  { %2138 = vmatpush.msrb.mxu1 %v2087_v10 }
 0x431   :  { %v2002_v19 = vmul.f32 1.442695, %v2001_v16  ;;  %v2069_v16 = vld [vmem:[%s4066_s9] sm:$0xff] }
 0x432   :  { %2139 = vmatpush.msrb.mxu1 %v2086_v15  ;;  %2120 = vmatpush.msrb.mxu0 %v2069_v16 }
 0x433   :  { %2670 = vpow2.f32 %v2002_v19  ;;  %v2085_v19 = vld [vmem:[%s4066_s9 + $0x80] sm:$0xff] }
 0x434   :  { %2140 = vmatpush.msrb.mxu1 %v2085_v19 }
 0x439   :  { %v2671_v35 = vpop.eup %2670 }
 0x43a   :  { %v2004_v20 = vsel %vm1964_vm3, %v2671_v35, 0.0 }
 0x43b   :  { %2005 = vadd.xlane.f32.xlu1 %v2004_v20  ;;  %v2208_v20 = vld [vmem:[%s4068_s11 + $0x1f8] sm:$0xff] }
 0x43c   :  { %2401 = vmatpush.msra.mxu1 %v2208_v20 }
 0x43e   :  { %2402 = vmatpush.msra.mxu1 %v2207_v22 }
 0x4ae   :  { %v2006_v24 = vpop.xlane.xlu1 %2005 }
 0x4af   :  { %2672 = vrcp.f32 %v2006_v24  ;;  %v2018_v32 = vand.u32 2147483648, %v2006_v24  ;;  %v2016_v34 = vand.u32 2147483647, %v2006_v24  ;;  %vm2012_vm11 = vweird.f32 %v2006_v24 }
 0x4b1   :  { %v2019_v36 = vor.u32 1.1754944e-38, %v2018_v32  ;;  %vm2017_vm13 = vcmp.eq.f32.partialorder %v2016_v34, 8.507059e+37  ;;  %v2204_v32 = vld [vmem:[%s4068_s11 + $0x1d8] sm:$0xff]  ;;  %v2203_v34 = vld [vmem:[%s4068_s11 + $0x1d0] sm:$0xff] }
 0x4b5   :  { %v2673_v25 = vpop.eup %2672 }
 0x4b6   :  { %v2008_v27 = vmul.f32 %v2673_v25, %v2006_v24  ;;  %vm2013_vm10 = vweird.f32 %v2673_v25  ;;  %v2206_v24 = vld [vmem:[%s4068_s11 + $0x1e8] sm:$0xff] }
 0x4b7   :  { %vm2014_vm12 = vmor %vm2012_vm11, %vm2013_vm10  ;;  %2403 = vmatpush.msra.mxu1 %v2206_v24  ;;  %v2271_v24 = vld [vmem:[%s4068_s11 + $0x3f0] sm:$0xff] }
 0x4b8   :  { %v2009_v30 = vsub.f32 1.0, %v2008_v27  ;;  %v2205_v27 = vld [vmem:[%s4068_s11 + $0x1e0] sm:$0xff] }
 0x4b9   :  { %2404 = vmatpush.msra.mxu1 %v2205_v27  ;;  %v2270_v27 = vld [vmem:[%s4068_s11 + $0x3e8] sm:$0xff] }
 0x4ba   :  { %v2010_v33 = vmul.f32 %v2673_v25, %v2009_v30  ;;  %v2188_v30 = vld [vmem:[%s4068_s11 + $0x158] sm:$0xff] }
 0x4bb   :  { %2405 = vmatpush.msra.mxu1 %v2204_v32  ;;  %v2269_v32 = vld [vmem:[%s4068_s11 + $0x3e0] sm:$0xff] }
 0x4bc   :  { %v2011_v29 = vadd.f32 %v2673_v25, %v2010_v33  ;;  %v2187_v33 = vld [vmem:[%s4068_s11 + $0x150] sm:$0xff] }
 0x4bd   :  { %2406 = vmatpush.msra.mxu1 %v2203_v34  ;;  %v2268_v34 = vld [vmem:[%s4068_s11 + $0x3d8] sm:$0xff] }
 0x4be   :  { %v2015_v37 = vsel %vm2014_vm12, %v2673_v25, %v2011_v29  ;;  %v2189_v25 = vld [vmem:[%s4068_s11 + $0x160] sm:$0xff]  ;;  %v2186_v29 = vld [vmem:[%s4068_s11 + $0x148] sm:$0xff] }
 0x4bf   :  { %v2020_v38 = vsel %vm2017_vm13, %v2019_v36, %v2015_v37  ;;  %v2202_v36 = vld [vmem:[%s4068_s11 + $0x1c8] sm:$0xff]  ;;  %v2185_v37 = vld [vmem:[%s4068_s11 + $0x140] sm:$0xff] }
 0x4c0   :  { %v3642_v39 = vmul.f32 %v2671_v35, %v2020_v38  ;;  %v2192_v35 = vld [vmem:[%s4068_s11 + $0x178] sm:$0xff]  ;;  %2407 = vmatpush.msra.mxu1 %v2202_v36  ;;  %v2201_v38 = vld [vmem:[%s4068_s11 + $0x1c0] sm:$0xff]  ;;  %v2267_v36 = vld [vmem:[%s4068_s11 + $0x3d0] sm:$0xff] }
 0x4c1   :  { %2381 = vmatpush.msra.mxu0 %v2192_v35 }
 0x4c2   :  { %2046 = vperm.xlu0 %2659, %v3642_v39   ;;  %2030 = vperm.xlu2 %2657, %v3642_v39  }
 0x4c3   :  { %2024 = vperm.xlu1 %2656, %v3642_v39   ;;  %2382 = vmatpush.msra.mxu0 %v2191_v21 }
 0x4c4   :  { %2408 = vmatpush.msra.mxu1 %v2201_v38  ;;  %v2265_v38 = vld [vmem:[%s4068_s11 + $0x3c0] sm:$0xff] }
 0x4c5   :  { %2383 = vmatpush.msra.mxu0 %v2190_v23  ;;  %v2256_v23 = vld [vmem:[%s4068_s11 + $0x378] sm:$0xff] }
 0x4c6   :  { %2409 = vmatpush.msra.mxu1 %v2200_v41  ;;  %v2264_v41 = vld [vmem:[%s4068_s11 + $0x3b8] sm:$0xff] }
 0x4c7   :  { %2384 = vmatpush.msra.mxu0 %v2189_v25  ;;  %v2254_v25 = vld [vmem:[%s4068_s11 + $0x368] sm:$0xff] }
 0x4c8   :  { %2410 = vmatpush.msra.mxu1 %v2199_v44  ;;  %v2263_v44 = vld [vmem:[%s4068_s11 + $0x3b0] sm:$0xff] }
 0x4c9   :  { %2385 = vmatpush.msra.mxu0 %v2188_v30  ;;  %v2253_v30 = vld [vmem:[%s4068_s11 + $0x360] sm:$0xff] }
 0x4ca   :  { %2658 = vset.pattern.permute.xlu2 %v2944_v17  ;;  %2662 = vset.pattern.permute.xlu0 %v2945_v51  ;;  %v2180_v17 = vld [vmem:[%s4068_s11 + $0x118] sm:$0xff] }
 0x4cb   :  { %2038 = vperm.xlu2 %2658, %v3642_v39   ;;  %2386 = vmatpush.msra.mxu0 %v2187_v33  ;;  %v2252_v33 = vld [vmem:[%s4068_s11 + $0x358] sm:$0xff] }
 0x4cc   :  { %2411 = vmatpush.msra.mxu1 %v2198_v18  ;;  %v2262_v18 = vld [vmem:[%s4068_s11 + $0x3a8] sm:$0xff] }
 0x4cd   :  { %2387 = vmatpush.msra.mxu0 %v2186_v29  ;;  %v2251_v29 = vld [vmem:[%s4068_s11 + $0x350] sm:$0xff] }
 0x4ce   :  { %2412 = vmatpush.msra.mxu1 %v2197_v46  ;;  %v2261_v46 = vld [vmem:[%s4068_s11 + $0x3a0] sm:$0xff] }
 0x4cf   :  { %2388 = vmatpush.msra.mxu0 %v2185_v37  ;;  %v2250_v37 = vld [vmem:[%s4068_s11 + $0x348] sm:$0xff] }
 0x4d0   :  { %2413 = vmatpush.msra.mxu1 %v2196_v47  ;;  %v2260_v47 = vld [vmem:[%s4068_s11 + $0x398] sm:$0xff] }
 0x4d3   :  { %2660 = vset.pattern.permute.xlu2 %v2946_v60 }
 0x4d4   :  { %2054 = vperm.xlu2 %2660, %v3642_v39  }
 0x4dc   :  { %2661 = vset.pattern.permute.xlu2 %v2945_v51  ;;  %v2195_v51 = vld [vmem:[%s4068_s11 + $0x190] sm:$0xff] }
 0x4dd   :  { %2062 = vperm.xlu2 %2661, %v3642_v39   ;;  %2414 = vmatpush.msra.mxu1 %v2195_v51  ;;  %v2242_v51 = vld [vmem:[%s4068_s11 + $0x308] sm:$0xff] }
 0x4df   :  { %2415 = vmatpush.msra.mxu1 %v2194_v54  ;;  %v2241_v54 = vld [vmem:[%s4068_s11 + $0x300] sm:$0xff] }
 0x4e1   :  { %2416 = vmatpush.msra.mxu1 %v2193_v56  ;;  %v2320_v56 = vld [vmem:[%s4068_s11 + $0x578] sm:$0xff] }
 0x4e5   :  { %2581 = vrot.lane.b32.xlu2 %v3642_v39, %s2947_s7  ;;  %v2184_v39 = vld [vmem:[%s4068_s11 + $0x138] sm:$0xff] }
 0x4e6   :  { %2389 = vmatpush.msra.mxu0 %v2184_v39  ;;  %v2248_v39 = vld [vmem:[%s4068_s11 + $0x338] sm:$0xff] }
 0x4e8   :  { %2390 = vmatpush.msra.mxu0 %v2183_v42  ;;  %v2247_v42 = vld [vmem:[%s4068_s11 + $0x330] sm:$0xff] }
 0x4ea   :  { %2391 = vmatpush.msra.mxu0 %v2182_v45  ;;  %v2246_v45 = vld [vmem:[%s4068_s11 + $0x328] sm:$0xff] }
 0x4ec   :  { %2392 = vmatpush.msra.mxu0 %v2181_v13  ;;  %v2245_v13 = vld [vmem:[%s4068_s11 + $0x320] sm:$0xff] }
 0x4ee   :  { %2393 = vmatpush.msra.mxu0 %v2180_v17  ;;  %v2244_v17 = vld [vmem:[%s4068_s11 + $0x318] sm:$0xff] }
 0x4f0   :  { %2394 = vmatpush.msra.mxu0 %v2179_v50  ;;  %v2259_v50 = vld [vmem:[%s4068_s11 + $0x390] sm:$0xff] }
 0x4f2   :  { %2395 = vmatpush.msra.mxu0 %v2178_v53  ;;  %v2258_v53 = vld [vmem:[%s4068_s11 + $0x388] sm:$0xff] }
 0x4f4   :  { %2396 = vmatpush.msra.mxu0 %v2177_v55  ;;  %v2257_v55 = vld [vmem:[%s4068_s11 + $0x380] sm:$0xff] }
 0x51c   :  { %v2031_v49 = vpop.permute.xlu2 %2030 }
 0x51d   :  { %v2033_v61 = vmul.f32 %v2031_v49, %v3188_v28  ;;  %v2034_v62 = vmul.f32 %v2031_v49, %v3202_v31  ;;  %v2243_v49 = vld [vmem:[%s4068_s11 + $0x310] sm:$0xff] }
 0x525   :  { %v2039_v58 = vpop.permute.xlu2 %2038 }
 0x526   :  { %v2041_v1 = vmul.f32 %v2039_v58, %v3192_v52  ;;  %v2042_v2 = vmul.f32 %v2039_v58, %v3215_v9  ;;  %v2336_v58 = vld [vmem:[%s4068_s11 + $0x5f8] sm:$0xff] }
 0x52e   :  { %v2055_v59 = vpop.permute.xlu2 %2054 }
 0x52f   :  { %v2057_v16 = vmul.f32 %v2055_v59, %v3222_v11  ;;  %v2272_v11 = vld [vmem:[%s4068_s11 + $0x3f8] sm:$0xff] }
 0x534   :  { %v2047_v0 = vpop.permute.xlu0 %2046 }
 0x535   :  { %v2025_v60 = vpop.permute.xlu1 %2024  ;;  %v2049_v5 = vmul.f32 %v2047_v0, %v3207_v48  ;;  %v2050_v8 = vmul.f32 %v2047_v0, %v3213_v7  ;;  %v2315_v0 = vld [vmem:[%s4068_s11 + $0x550] sm:$0xff] }
 0x536   :  { %v2027_v63 = vmul.f32 %v2025_v60, %v3178_v57  ;;  %v2028_v40 = vmul.f32 %v2025_v60, %v3183_v12  ;;  %v2058_v57 = vmul.f32 %v2055_v59, %v3230_v43  ;;  %v2255_v43 = vld [vmem:[%s4068_s11 + $0x370] sm:$0xff] }
 0x537   :  { %v2063_v15 = vpop.permute.xlu2 %2062  ;;  %v2319_v59 = vld [vmem:[%s4068_s11 + $0x570] sm:$0xff] }
 0x538   :  { %v2035_v3 = vadd.f32 %v2033_v61, %v2027_v63  ;;  %v2036_v4 = vadd.f32 %v2034_v62, %v2028_v40  ;;  %v2065_v52 = vmul.f32 %v2063_v15, %v3211_v6  ;;  %v2066_v9 = vmul.f32 %v2063_v15, %v3227_v26  ;;  %v2335_v60 = vld [vmem:[%s4068_s11 + $0x5f0] sm:$0xff]  ;;  %v2318_v61 = vld [vmem:[%s4068_s11 + $0x568] sm:$0xff]  ;;  %v2333_v62 = vld [vmem:[%s4068_s11 + $0x5e0] sm:$0xff] }
 0x539   :  { %v2316_v63 = vld [vmem:[%s4068_s11 + $0x558] sm:$0xff]  ;;  %v2327_v15 = vld [vmem:[%s4068_s11 + $0x5b0] sm:$0xff] }
 0x53a   :  { %v2043_v10 = vadd.f32 %v2041_v1, %v2035_v3  ;;  %v2044_v14 = vadd.f32 %v2042_v2, %v2036_v4  ;;  %v2332_v40 = vld [vmem:[%s4068_s11 + $0x5d8] sm:$0xff]  ;;  %v2331_v1 = vld [vmem:[%s4068_s11 + $0x5d0] sm:$0xff]  ;;  %v2314_v2 = vld [vmem:[%s4068_s11 + $0x548] sm:$0xff] }
 0x53b   :  { %v2330_v3 = vld [vmem:[%s4068_s11 + $0x5c8] sm:$0xff]  ;;  %v2313_v4 = vld [vmem:[%s4068_s11 + $0x540] sm:$0xff] }
 0x53c   :  { %v2051_v19 = vadd.f32 %v2049_v5, %v2043_v10  ;;  %v2052_v12 = vadd.f32 %v2050_v8, %v2044_v14  ;;  %v2329_v5 = vld [vmem:[%s4068_s11 + $0x5c0] sm:$0xff]  ;;  %v2312_v8 = vld [vmem:[%s4068_s11 + $0x538] sm:$0xff]  ;;  %v2311_v14 = vld [vmem:[%s4068_s11 + $0x530] sm:$0xff] }
 0x53d   :  { %v2328_v10 = vld [vmem:[%s4068_s11 + $0x5b8] sm:$0xff] }
 0x53e   :  { %v2059_v35 = vadd.f32 %v2057_v16, %v2051_v19  ;;  %v2060_v20 = vadd.f32 %v2058_v57, %v2052_v12  ;;  %v2310_v16 = vld [vmem:[%s4068_s11 + $0x528] sm:$0xff]  ;;  %v2309_v19 = vld [vmem:[%s4068_s11 + $0x520] sm:$0xff] }
 0x53f   :  { %v2326_v57 = vld [vmem:[%s4068_s11 + $0x5a8] sm:$0xff]  ;;  %v2325_v12 = vld [vmem:[%s4068_s11 + $0x5a0] sm:$0xff] }
 0x540   :  { %v2067_v21 = vadd.f32 %v2065_v52, %v2059_v35  ;;  %v2068_v22 = vadd.f32 %v2066_v9, %v2060_v20  ;;  %v2308_v35 = vld [vmem:[%s4068_s11 + $0x518] sm:$0xff]  ;;  %v2307_v52 = vld [vmem:[%s4068_s11 + $0x510] sm:$0xff] }
 0x541   :  { %v2324_v20 = vld [vmem:[%s4068_s11 + $0x598] sm:$0xff]  ;;  %v2323_v9 = vld [vmem:[%s4068_s11 + $0x590] sm:$0xff] }
 0x542   :  { %2121 = vmatmul.f32.vlgmr.msrb.gmra.mxu0 %v2067_v21  ;;  %2141 = vmatmul.f32.vlgmr.msrb.gmra.mxu1 %v2068_v22  ;;  %v2306_v21 = vld [vmem:[%s4068_s11 + $0x508] sm:$0xff] }
 0x543   :  { %2461 = vmatpush.msrb.mxu0 %v2256_v23  ;;  %2481 = vmatpush.msrb.mxu1 %v2272_v11  ;;  %v2322_v22 = vld [vmem:[%s4068_s11 + $0x588] sm:$0xff]  ;;  %v2305_v23 = vld [vmem:[%s4068_s11 + $0x500] sm:$0xff] }
 0x544   :  { %v2321_v11 = vld [vmem:[%s4068_s11 + $0x580] sm:$0xff] }
 0x545   :  { %2462 = vmatpush.msrb.mxu0 %v2255_v43  ;;  %2482 = vmatpush.msrb.mxu1 %v2271_v24  ;;  %v2665_v43 = vld [vmem:[#allocation14] ss:$0 sm:$0xff] }
 0x547   :  { %2463 = vmatpush.msrb.mxu0 %v2254_v25  ;;  %2483 = vmatpush.msrb.mxu1 %v2270_v27 }
 0x549   :  { %2464 = vmatpush.msrb.mxu0 %v2253_v30  ;;  %2484 = vmatpush.msrb.mxu1 %v2269_v32  ;;  %v2664_v32 = vld [vmem:[#allocation16] ss:$0 sm:$0xff] }
 0x54a   :  { %2397 = vmatmul.f32.vlgmr.msra.gmra.mxu0 %v3188_v28  ;;  %2417 = vmatmul.f32.vlgmr.msra.gmra.mxu1 %v3202_v31  ;;  %v2266_v28 = vld [vmem:[%s4068_s11 + $0x3c8] sm:$0xff]  ;;  %v2249_v31 = vld [vmem:[%s4068_s11 + $0x340] sm:$0xff] }
 0x54b   :  { %2465 = vmatpush.msrb.mxu0 %v2252_v33  ;;  %2485 = vmatpush.msrb.mxu1 %v2268_v34  ;;  %v2358_v33 = vpop.f32.mrf.mxu3  ;;  %v2378_v34 = vpop.f32.mrf.mxu2 }
 0x54d   :  { %2466 = vmatpush.msrb.mxu0 %v2251_v29  ;;  %2486 = vmatpush.msrb.mxu1 %v2267_v36  ;;  %v2359_v29 = vadd.f32 %v2664_v32, %v2358_v33 }
 0x54f   :  { %2467 = vmatpush.msrb.mxu0 %v2250_v37  ;;  %2487 = vmatpush.msrb.mxu1 %v2266_v28  ;;  %v2379_v37 = vadd.f32 %v2378_v34, %v2359_v29 }
 0x551   :  { %2468 = vmatpush.msrb.mxu0 %v2249_v31  ;;  %2488 = vmatpush.msrb.mxu1 %v2265_v38 }
 0x553   :  { %2469 = vmatpush.msrb.mxu0 %v2248_v39  ;;  %2489 = vmatpush.msrb.mxu1 %v2264_v41  ;;  %v2438_v39 = vpop.f32.mrf.mxu3 }
 0x555   :  { %2470 = vmatpush.msrb.mxu0 %v2247_v42  ;;  %2490 = vmatpush.msrb.mxu1 %v2263_v44  ;;  %v2458_v42 = vpop.f32.mrf.mxu2 }
 0x557   :  { %2471 = vmatpush.msrb.mxu0 %v2246_v45  ;;  %2491 = vmatpush.msrb.mxu1 %v2262_v18 }
 0x559   :  { %2472 = vmatpush.msrb.mxu0 %v2245_v13  ;;  %2492 = vmatpush.msrb.mxu1 %v2261_v46 }
 0x55b   :  { %2473 = vmatpush.msrb.mxu0 %v2244_v17  ;;  %2493 = vmatpush.msrb.mxu1 %v2260_v47  ;;  %v2518_v13 = vpop.f32.mrf.mxu3 }
 0x55d   :  { %2474 = vmatpush.msrb.mxu0 %v2243_v49  ;;  %2494 = vmatpush.msrb.mxu1 %v2259_v50  ;;  %v2538_v17 = vpop.f32.mrf.mxu2 }
 0x55f   :  { %2475 = vmatpush.msrb.mxu0 %v2242_v51  ;;  %2495 = vmatpush.msrb.mxu1 %v2258_v53 }
 0x561   :  { %2476 = vmatpush.msrb.mxu0 %v2241_v54  ;;  %2496 = vmatpush.msrb.mxu1 %v2257_v55  ;;  %v2582_v54 = vpop.permute.xlu2 %2581 }
 0x562   :  { %2477 = vmatmul.f32.vlgmr.msrb.gmra.mxu0 %v3207_v48  ;;  %2497 = vmatmul.f32.vlgmr.msrb.gmra.mxu1 %v3213_v7  ;;  %v2334_v48 = vld [vmem:[%s4068_s11 + $0x5e8] sm:$0xff]  ;;  %v2317_v7 = vld [vmem:[%s4068_s11 + $0x560] sm:$0xff]  ;;  %s2948_s11 = smov 12  }
 0x563   :  { %2541 = vmatpush.msra.mxu0 %v2320_v56  ;;  %2561 = vmatpush.msra.mxu1 %v2336_v58 }
 0x565   :  { %2542 = vmatpush.msra.mxu0 %v2319_v59  ;;  %2562 = vmatpush.msra.mxu1 %v2335_v60 }
 0x567   :  { %2543 = vmatpush.msra.mxu0 %v2318_v61  ;;  %2563 = vmatpush.msra.mxu1 %v2334_v48 }
 0x569   :  { %2544 = vmatpush.msra.mxu0 %v2317_v7  ;;  %2564 = vmatpush.msra.mxu1 %v2333_v62 }
 0x56b   :  { %2545 = vmatpush.msra.mxu0 %v2316_v63  ;;  %2565 = vmatpush.msra.mxu1 %v2332_v40 }
 0x56d   :  { %2546 = vmatpush.msra.mxu0 %v2315_v0  ;;  %2566 = vmatpush.msra.mxu1 %v2331_v1 }
 0x56f   :  { %2547 = vmatpush.msra.mxu0 %v2314_v2  ;;  %2567 = vmatpush.msra.mxu1 %v2330_v3 }
 0x571   :  { %2548 = vmatpush.msra.mxu0 %v2313_v4  ;;  %2568 = vmatpush.msra.mxu1 %v2329_v5 }
 0x573   :  { %2549 = vmatpush.msra.mxu0 %v2312_v8  ;;  %2569 = vmatpush.msra.mxu1 %v2328_v10 }
 0x575   :  { %2550 = vmatpush.msra.mxu0 %v2311_v14  ;;  %2570 = vmatpush.msra.mxu1 %v2327_v15 }
 0x577   :  { %2551 = vmatpush.msra.mxu0 %v2310_v16  ;;  %2571 = vmatpush.msra.mxu1 %v2326_v57 }
 0x579   :  { %2552 = vmatpush.msra.mxu0 %v2309_v19  ;;  %2572 = vmatpush.msra.mxu1 %v2325_v12 }
 0x57b   :  { %2553 = vmatpush.msra.mxu0 %v2308_v35  ;;  %2573 = vmatpush.msra.mxu1 %v2324_v20 }
 0x57d   :  { %2554 = vmatpush.msra.mxu0 %v2307_v52  ;;  %2574 = vmatpush.msra.mxu1 %v2323_v9 }
 0x57f   :  { %2555 = vmatpush.msra.mxu0 %v2306_v21  ;;  %2575 = vmatpush.msra.mxu1 %v2322_v22 }
 0x581   :  { %2556 = vmatpush.msra.mxu0 %v2305_v23  ;;  %2576 = vmatpush.msra.mxu1 %v2321_v11 }
 0x582   :  { %2557 = vmatmul.f32.vlgmr.msra.gmra.mxu0 %v3211_v6  ;;  %2577 = vmatmul.f32.vlgmr.msra.gmra.mxu1 %v3227_v26 }
 0x5bf   :  { %v2122_v24 = vpop.f32.mrf.mxu0  ;;  %v2142_v27 = vpop.f32.mrf.mxu1 }
 0x5c0   :  { %v2123_v25 = vadd.f32 %v2665_v43, %v2122_v24 }
 0x5c2   :  { %v2143_v30 = vadd.f32 %v2142_v27, %v2123_v25 }
 0x5c4   :  { %v2588_v56 = vsel %vm1964_vm3, %v2143_v30, %v2582_v54 }
 0x5c7   :  { %v2398_v36 = vpop.f32.mrf.mxu0  ;;  %v2418_v31 = vpop.f32.mrf.mxu1 }
 0x5c8   :  { %v2399_v28 = vadd.f32 %v2398_v36, %v2379_v37 }
 0x5ca   :  { %v2419_v38 = vadd.f32 %v2418_v31, %v2399_v28 }
 0x5cc   :  { %v2439_v41 = vadd.f32 %v2438_v39, %v2419_v38 }
 0x5ce   :  { %v2459_v44 = vadd.f32 %v2458_v42, %v2439_v41 }
 0x5df   :  { %v2478_v6 = vpop.f32.mrf.mxu0  ;;  %v2498_v45 = vpop.f32.mrf.mxu1 }
 0x5e0   :  { %v2479_v26 = vadd.f32 %v2478_v6, %v2459_v44 }
 0x5e2   :  { %v2499_v18 = vadd.f32 %v2498_v45, %v2479_v26 }
 0x5e4   :  { %v2519_v46 = vadd.f32 %v2518_v13, %v2499_v18 }
 0x5e6   :  { %v2539_v47 = vadd.f32 %v2538_v17, %v2519_v46 }
 0x5ff   :  { %v2558_v49 = vpop.f32.mrf.mxu0  ;;  %v2578_v51 = vpop.f32.mrf.mxu1 }
 0x600   :  { %v2559_v50 = vadd.f32 %v2558_v49, %v2539_v47 }
 0x602   :  { %v2579_v53 = vadd.f32 %v2578_v51, %v2559_v50 }
 0x604   :  { %2585 = vrot.lane.b32.xlu1 %v2579_v53, %s2948_s11 }
 0x676   :  { %v2586_v55 = vpop.permute.xlu1 %2585 }
 0x677   :  { %v2590_v58 = vsel %vm2589_vm14, %v2588_v56, %v2586_v55 }
 0x678   :  { %2592 = vst.msk [vmem:[#allocation17] sm:$0xff] %vm2591_vm15, %v2590_v58 }
 0x679   :  { %2603 = dma.vmem_to_hbm [thread:$0]  %s2599_s0, 128, %s2601_s22, [#allocation4]  }
 0x67a   :  { %2924 = dma.done.wait [#allocation4], 128  }
 0x67b   :  { %2925 = vsyncadd [#allocation4], 4294967168 }
 0x67c   :  { %2608 = vsyncpa [#allocation3], 1 }
 0x67d   :  { %2609 = vsyncpa [#allocation6], 1 }
 0x67e   :  { %2610 = vsyncpa [#allocation9], 1 }
 0x67f   :  { %2611 = vsyncpa [#allocation12], 1 }
 0x680   :  { %2612 = vsyncpa [#allocation15], 1 }
 0x681   :  { %2613 = vsyncpa [#allocation4], 1 }

</bundles_post_ra>
